<compile_context>
chip_gen: v5e
topology: v5e:2x2
jax: 0.10.0
libtpu: 0.0.40
codegen_flags: <defaults>
</compile_context>

<pallas_src>
import math
from functools import partial

import jax
import jax.numpy as jnp
from jax import lax
from jax.experimental import pallas as pl
from jax.experimental.pallas import tpu as pltpu


def _round_up(x, m):
    return (x + m - 1) // m * m


_TINY = 16  # below this K or N, skip Pallas and let XLA fuse the tiny matmul


# --------------------------------------------------------------------------
# Kernel A: fused matmul + folded-BN affine + ReLU (for 1x1 convs)
# --------------------------------------------------------------------------

def _make_matmul_kernel(relu, k_steps):
    def epilogue(acc, sc_ref, sh_ref, o_ref):
        out = acc * sc_ref[...] + sh_ref[...]
        if relu:
            out = jnp.maximum(out, 0.0)
        o_ref[...] = out.astype(o_ref.dtype)

    if k_steps == 1:
        # No scratch accumulator, no zero-fill: dot -> epilogue -> store.
        def kernel(x_ref, w_ref, sc_ref, sh_ref, o_ref):
            acc = jnp.dot(x_ref[...], w_ref[...], preferred_element_type=jnp.float32)
            epilogue(acc, sc_ref, sh_ref, o_ref)
        return kernel

    def kernel(x_ref, w_ref, sc_ref, sh_ref, o_ref, acc_ref):
        k = pl.program_id(1)
        part = jnp.dot(x_ref[...], w_ref[...], preferred_element_type=jnp.float32)

        @pl.when(k == 0)
        def _():
            acc_ref[...] = part          # init with the first partial (no zero-fill)

        @pl.when(k > 0)
        def _():
            acc_ref[...] += part

        @pl.when(k == k_steps - 1)
        def _():
            epilogue(acc_ref[...], sc_ref, sh_ref, o_ref)

    return kernel


def fused_matmul(x2d, w2d, scale, shift, *, relu=False, out_dtype=jnp.float32):
    """epilogue(x2d @ w2d), epilogue = BN-affine (+ReLU)."""
    M, K = x2d.shape
    _, Nc = w2d.shape

    Np = _round_up(Nc, 128)
    Kp = _round_up(K, 128)
    # TK divides Kp exactly -> no zero-padding waste along the reduction axis.
    TK = Kp if Kp <= 512 else max(t for t in (512, 384, 256, 128) if Kp % t == 0)
    k_steps = Kp // TK

    # Keep >=2 tiles along the parallel M axis when M allows it (v7x: 2 TensorCores).
    TM = _round_up(M, 8)
    if TM > 256:
        TM = 256
    Mp = _round_up(M, TM)

    xp = x2d.astype(jnp.bfloat16)
    if (Mp - M) or (Kp - K):
        xp = jnp.pad(xp, ((0, Mp - M), (0, Kp - K)))
    wp = jnp.pad(w2d, ((0, Kp - K), (0, Np - Nc))).astype(jnp.bfloat16)
    scp = jnp.pad(scale, (0, Np - Nc)).reshape(1, Np).astype(jnp.float32)
    shp = jnp.pad(shift, (0, Np - Nc)).reshape(1, Np).astype(jnp.float32)

    scratch = [] if k_steps == 1 else [pltpu.VMEM((TM, Np), jnp.float32)]

    out = pl.pallas_call(
        _make_matmul_kernel(relu, k_steps),
        out_shape=jax.ShapeDtypeStruct((Mp, Np), out_dtype),
        grid_spec=pltpu.PrefetchScalarGridSpec(
            num_scalar_prefetch=0,
            grid=(Mp // TM, k_steps),
            in_specs=[
                pl.BlockSpec((TM, TK), lambda i, k: (i, k)),   # x tile (bf16)
                pl.BlockSpec((TK, Np), lambda i, k: (k, 0)),   # w tile (bf16)
                pl.BlockSpec((1, Np), lambda i, k: (0, 0)),    # BN scale
                pl.BlockSpec((1, Np), lambda i, k: (0, 0)),    # BN shift
            ],
            out_specs=pl.BlockSpec((TM, Np), lambda i, k: (i, 0)),
            scratch_shapes=scratch,
        ),
        compiler_params=pltpu.CompilerParams(
            dimension_semantics=("parallel", "arbitrary")),
    )(xp, wp, scp, shp)
    return out[:M, :Nc]


def conv1x1_bn_apply(x, p, *, relu=False, out_dtype=jnp.float32):
    """1x1 conv + folded BN (+ReLU) on NHWC input."""
    N, H, W, C = x.shape
    cout = p['w'].shape[-1]
    x2d = x.reshape(N * H * W, C)
    w2d = p['w'].reshape(C, cout)

    if min(C, cout) < _TINY:
        # Tiny matmul: padding K/N to 128 would waste >=8x the MXU; let XLA fuse it.
        out = jnp.dot(x2d.astype(jnp.float32), w2d.astype(jnp.float32))
        out = out * p['scale'][None, :] + p['shift'][None, :]
        if relu:
            out = jnp.maximum(out, 0.0)
        out = out.astype(out_dtype)
    else:
        out = fused_matmul(x2d, w2d, p['scale'], p['shift'],
                           relu=relu, out_dtype=out_dtype)
    return out.reshape(N, H, W, cout)


# --------------------------------------------------------------------------
# Kernel B: dilated 3x3 conv + BN + ReLU  ->  1x1 conv (c3) + BN  ->  +res -> ReLU
#           directly on padded bf16 NHWC (no HBM im2col, no intermediate HBM trip)
# --------------------------------------------------------------------------

def _make_conv3x3_tail_kernel(H, W, dil, k_steps):
    single = (k_steps == 1)

    def kernel(*refs):
        if single:
            (x_ref, w2_ref, sc2_ref, sh2_ref,
             w3_ref, sc3_ref, sh3_ref, res_ref, o_ref) = refs
            acc_ref = None
        else:
            (x_ref, w2_ref, sc2_ref, sh2_ref,
             w3_ref, sc3_ref, sh3_ref, res_ref, o_ref, acc_ref) = refs

        # 3x3 dilated conv = 9 shifted 1x1 matmuls over the zero-padded NHWC block
        # already resident in VMEM (bf16). The 9 taps are accumulated into a single
        # local f32 value -> at most one accumulator read-modify-write per k-step.
        acc = None
        for t in range(9):
            ky, kx = divmod(t, 3)
            patch = x_ref[0, ky * dil:ky * dil + H, kx * dil:kx * dil + W, :]
            patch = patch.reshape(H * W, patch.shape[-1])
            if patch.dtype != jnp.bfloat16:      # f32 fallback path (odd dilation)
                patch = patch.astype(jnp.bfloat16)
            d = jnp.dot(patch, w2_ref[t], preferred_element_type=jnp.float32)
            acc = d if acc is None else acc + d

        if not single:
            k = pl.program_id(1)

            @pl.when(k == 0)
            def _():
                acc_ref[...] = acc           # init with the partial (no zero-fill)

            @pl.when(k > 0)
            def _():
                acc_ref[...] += acc

        def epilogue(acc_val):
            # conv2 folded-BN + ReLU
            h = jnp.maximum(acc_val * sc2_ref[...] + sh2_ref[...], 0.0)
            # fused c3 1x1 conv + folded-BN (bf16 operands, f32 accumulate)
            y = jnp.dot(h.astype(jnp.bfloat16), w3_ref[...],
                        preferred_element_type=jnp.float32)
            y = y * sc3_ref[...] + sh3_ref[...]
            # residual add (bf16 stream, f32 add) + final ReLU
            y = y + res_ref[0].astype(jnp.float32)
            y = jnp.maximum(y, 0.0)
            o_ref[...] = y.reshape(o_ref.shape).astype(o_ref.dtype)

        if single:
            epilogue(acc)
        else:
            @pl.when(pl.program_id(1) == k_steps - 1)
            def _():
                epilogue(acc_ref[...])

    return kernel


def conv3x3_c3_residual_apply(x, p2, p3, res, *, dilation, out_dtype=jnp.float32):
    """Fused tail on NHWC input x:
       dilated 3x3 conv + BN + ReLU -> 1x1 conv + BN -> + residual -> ReLU."""
    N, H, W, C = x.shape
    pad = dilation * (3 - 1) // 2                    # = dilation for k=3
    cmid = p2['w'].shape[-1]
    cout = p3['w'].shape[-1]
    Cp = _round_up(C, 128)
    Cmidp = _round_up(cmid, 128)
    Coutp = _round_up(cout, 128)
    Hp = H + 2 * pad
    Wp = _round_up(W + 2 * pad, 8)                   # sublane-align the W axis

    # bf16 activation path: W-shifts (kx*dilation) stay on packed-pair boundaries
    # when dilation is even; keep f32 for odd dilation to avoid the repack.
    act_dtype = jnp.bfloat16 if dilation % 2 == 0 else jnp.float32

    # Single spatial/channel zero-pad, done once in the activation dtype.
    xp = jnp.pad(x.astype(act_dtype),
                 ((0, 0), (pad, pad), (pad, Wp - W - pad), (0, Cp - C)))

    w2 = p2['w'].reshape(9, C, cmid)
    w2p = jnp.pad(w2, ((0, 0), (0, Cp - C), (0, Cmidp - cmid))).astype(jnp.bfloat16)
    sc2 = jnp.pad(p2['scale'], (0, Cmidp - cmid)).reshape(1, Cmidp).astype(jnp.float32)
    sh2 = jnp.pad(p2['shift'], (0, Cmidp - cmid)).reshape(1, Cmidp).astype(jnp.float32)

    w3p = jnp.pad(p3['w'].reshape(cmid, cout),
                  ((0, Cmidp - cmid), (0, Coutp - cout))).astype(jnp.bfloat16)
    sc3 = jnp.pad(p3['scale'], (0, Coutp - cout)).reshape(1, Coutp).astype(jnp.float32)
    sh3 = jnp.pad(p3['shift'], (0, Coutp - cout)).reshape(1, Coutp).astype(jnp.float32)

    # Residual stream as bf16 (halves its DMA bytes); the add happens in f32 in-kernel.
    resp = jnp.pad(res.reshape(N, H * W, res.shape[-1]).astype(jnp.bfloat16),
                   ((0, 0), (0, 0), (0, Coutp - res.shape[-1])))

    TCK = Cp if Cp <= 512 else max(t for t in (512, 384, 256, 128) if Cp % t == 0)
    k_steps = Cp // TCK
    scratch = [] if k_steps == 1 else [pltpu.VMEM((H * W, Cmidp), jnp.float32)]

    out = pl.pallas_call(
        _make_conv3x3_tail_kernel(H, W, dilation, k_steps),
        out_shape=jax.ShapeDtypeStruct((N, H * W, Coutp), out_dtype),
        grid_spec=pltpu.PrefetchScalarGridSpec(
            num_scalar_prefetch=0,
            grid=(N, k_steps),                      # batch parallel, channel-K reduce
            in_specs=[
                pl.BlockSpec((1, Hp, Wp, TCK), lambda n, k: (n, 0, 0, k)),
                pl.BlockSpec((9, TCK, Cmidp), lambda n, k: (0, k, 0)),
                pl.BlockSpec((1, Cmidp), lambda n, k: (0, 0)),
                pl.BlockSpec((1, Cmidp), lambda n, k: (0, 0)),
                pl.BlockSpec((Cmidp, Coutp), lambda n, k: (0, 0)),
                pl.BlockSpec((1, Coutp), lambda n, k: (0, 0)),
                pl.BlockSpec((1, Coutp), lambda n, k: (0, 0)),
                pl.BlockSpec((1, H * W, Coutp), lambda n, k: (n, 0, 0)),
            ],
            out_specs=pl.BlockSpec((1, H * W, Coutp), lambda n, k: (n, 0, 0)),
            scratch_shapes=scratch,
        ),
        compiler_params=pltpu.CompilerParams(
            dimension_semantics=("parallel", "arbitrary")),
    )(xp, w2p, sc2, sh2, w3p, sc3, sh3, resp)
    return out[:, :, :cout].reshape(N, H, W, cout)


# --------------------------------------------------------------------------
# Parameters (conv weight + folded eval-mode BatchNorm); arrays only (jit-safe)
# --------------------------------------------------------------------------

def _init_folded_conv(key, k, cin, cout):
    k1, k2, k3 = jax.random.split(key, 3)
    fan_in = k * k * cin
    w = jax.random.normal(k1, (k, k, cin, cout), jnp.float32) * math.sqrt(2.0 / fan_in)
    gamma = 1.0 + 0.1 * jax.random.normal(k2, (cout,), jnp.float32)
    beta = 0.1 * jax.random.normal(k3, (cout,), jnp.float32)
    eps = 1e-5
    # eval-mode fold with running_mean=0, running_var=1 (conv has no bias)
    scale = gamma / jnp.sqrt(1.0 + eps)
    shift = beta
    return {'w': w, 'scale': scale, 'shift': shift}


def init_dilated_block(key, in_ch, out_ch):
    ks = jax.random.split(key, 4)
    p = {'c1': _init_folded_conv(ks[0], 1, in_ch, out_ch),
         'c2': _init_folded_conv(ks[1], 3, out_ch, out_ch),
         'c3': _init_folded_conv(ks[2], 1, out_ch, out_ch)}
    if in_ch != out_ch:
        p['skip'] = _init_folded_conv(ks[3], 1, in_ch, out_ch)  # channel_conv
    return p


# --------------------------------------------------------------------------
# DilatedBlock forward (single jax.jit over the whole block; dilation is static)
# --------------------------------------------------------------------------

def _forward(params, x_nchw, *, dilation):
    x = jnp.transpose(x_nchw, (0, 2, 3, 1)).astype(jnp.float32)          # NHWC
    # conv1x1 + BN + ReLU -> bf16 activation feeding the fused tail kernel
    h = conv1x1_bn_apply(x, params['c1'], relu=True, out_dtype=jnp.bfloat16)
    # residual path (channel_conv + BN when in_ch != out_ch, else identity)
    if 'skip' in params:
        res = conv1x1_bn_apply(x, params['skip'], out_dtype=jnp.float32)
    else:
        res = x
    # fused tail: dilated 3x3 + BN + ReLU -> 1x1 (c3) + BN -> +res -> ReLU
    out = conv3x3_c3_residual_apply(h, params['c2'], params['c3'], res,
                                    dilation=dilation, out_dtype=jnp.float32)
    return jnp.transpose(out, (0, 3, 1, 2))


def make_dilated_block_forward(dilation=1):
    # dilation is closed over statically -> no traced ints reach jnp.pad.
    return jax.jit(partial(_forward, dilation=dilation))


# --------------------------------------------------------------------------
# Pure-JAX reference (f32) for a correctness check
# --------------------------------------------------------------------------

def _ref_conv_bn(x, p, *, dil=1, pad=0):
    out = lax.conv_general_dilated(
        x, p['w'], window_strides=(1, 1),
        padding=[(pad, pad), (pad, pad)],
        rhs_dilation=(dil, dil),
        dimension_numbers=('NHWC', 'HWIO', 'NHWC'),
        precision=lax.Precision.HIGHEST)
    return out * p['scale'] + p['shift']


def _reference_forward(params, x_nchw, dilation):
    x = jnp.transpose(x_nchw, (0, 2, 3, 1)).astype(jnp.float32)
    h = jnp.maximum(_ref_conv_bn(x, params['c1']), 0.0)
    h = jnp.maximum(_ref_conv_bn(h, params['c2'], dil=dilation, pad=dilation), 0.0)
    h = _ref_conv_bn(h, params['c3'])
    res = _ref_conv_bn(x, params['skip']) if 'skip' in params else x
    out = jnp.maximum(h + res, 0.0)
    return jnp.transpose(out, (0, 3, 1, 2))


# --------------------------------------------------------------------------
# Main
# --------------------------------------------------------------------------

if __name__ == "__main__":
    in_ch, out_ch, dilation = 4, 128, 2
    key = jax.random.PRNGKey(0)
    pkey, xkey = jax.random.split(key)

    params = init_dilated_block(pkey, in_ch, out_ch)
    x = jax.random.normal(xkey, (2, in_ch, 16, 16), jnp.float32)

    fwd = make_dilated_block_forward(dilation)
    out = jax.block_until_ready(fwd(params, x))

    assert out.shape == (2, out_ch, 16, 16), out.shape
    assert bool(jnp.all(jnp.isfinite(out)))

    ref = _reference_forward(params, x, dilation)
    max_err = float(jnp.max(jnp.abs(out - ref)))
    assert max_err < 1e-1, f"max abs error vs reference: {max_err}"

    print("KERNEL_OK")
</pallas_src>

<mosaic_0001>
module attributes {stable_mosaic.version = 11 : i64} {
  func.func @kernel(%arg0: i32, %arg1: i32, %arg2: memref<1x20x24x128xbf16, #tpu.memory_space<vmem>>, %arg3: memref<9x128x128xbf16, #tpu.memory_space<vmem>>, %arg4: memref<1x128xf32, #tpu.memory_space<vmem>>, %arg5: memref<1x128xf32, #tpu.memory_space<vmem>>, %arg6: memref<128x128xbf16, #tpu.memory_space<vmem>>, %arg7: memref<1x128xf32, #tpu.memory_space<vmem>>, %arg8: memref<1x128xf32, #tpu.memory_space<vmem>>, %arg9: memref<1x256x128xbf16, #tpu.memory_space<vmem>>, %arg10: memref<1x256x128xf32, #tpu.memory_space<vmem>>) attributes {dimension_semantics = [#tpu.dimension_semantics<parallel>, #tpu.dimension_semantics<arbitrary>], iteration_bounds = array<i64: 2, 1>, scalar_prefetch = 0 : i64, scratch_operands = 0 : i64, tpu.core_type = #tpu.core_type<tc>, window_params = [{transform_indices = @transform_0, window_bounds = array<i64: 1, 20, 24, 128>}, {transform_indices = @transform_1, window_bounds = array<i64: 9, 128, 128>}, {pipeline_mode = #tpu.pipeline_mode<synchronous>, transform_indices = @transform_2, window_bounds = array<i64: 1, 128>}, {pipeline_mode = #tpu.pipeline_mode<synchronous>, transform_indices = @transform_3, window_bounds = array<i64: 1, 128>}, {pipeline_mode = #tpu.pipeline_mode<synchronous>, transform_indices = @transform_4, window_bounds = array<i64: 128, 128>}, {pipeline_mode = #tpu.pipeline_mode<synchronous>, transform_indices = @transform_5, window_bounds = array<i64: 1, 128>}, {pipeline_mode = #tpu.pipeline_mode<synchronous>, transform_indices = @transform_6, window_bounds = array<i64: 1, 128>}, {transform_indices = @transform_7, window_bounds = array<i64: 1, 256, 128>}, {transform_indices = @transform_8, window_bounds = array<i64: 1, 256, 128>}]} {
    %c0 = arith.constant 0 : index
    %c0_0 = arith.constant 0 : index
    %c0_1 = arith.constant 0 : index
    %c0_2 = arith.constant 0 : index
    %0 = vector.load %arg2[%c0, %c0_0, %c0_1, %c0_2] : memref<1x20x24x128xbf16, #tpu.memory_space<vmem>>, vector<1x16x16x128xbf16>
    %1 = vector.shape_cast %0 : vector<1x16x16x128xbf16> to vector<16x16x128xbf16>
    %2 = vector.shape_cast %1 : vector<16x16x128xbf16> to vector<256x128xbf16>
    %c0_3 = arith.constant 0 : index
    %c0_4 = arith.constant 0 : index
    %c0_5 = arith.constant 0 : index
    %3 = vector.load %arg3[%c0_3, %c0_4, %c0_5] : memref<9x128x128xbf16, #tpu.memory_space<vmem>>, vector<1x128x128xbf16>
    %4 = vector.shape_cast %3 : vector<1x128x128xbf16> to vector<128x128xbf16>
    %cst = arith.constant dense<0.000000e+00> : vector<256x128xf32>
    %5 = tpu.matmul %2, %4, %cst {dimension_numbers = #tpu.dot_dimension_numbers<[1], [0], [0], [1], [0, 0, 1, 1], [], []>} : vector<256x128xbf16>, vector<128x128xbf16>, vector<256x128xf32> -> vector<256x128xf32>
    %c0_6 = arith.constant 0 : index
    %c0_7 = arith.constant 0 : index
    %c2 = arith.constant 2 : index
    %c0_8 = arith.constant 0 : index
    %6 = vector.load %arg2[%c0_6, %c0_7, %c2, %c0_8] : memref<1x20x24x128xbf16, #tpu.memory_space<vmem>>, vector<1x16x16x128xbf16>
    %7 = vector.shape_cast %6 : vector<1x16x16x128xbf16> to vector<16x16x128xbf16>
    %8 = vector.shape_cast %7 : vector<16x16x128xbf16> to vector<256x128xbf16>
    %c1 = arith.constant 1 : index
    %c0_9 = arith.constant 0 : index
    %c0_10 = arith.constant 0 : index
    %9 = vector.load %arg3[%c1, %c0_9, %c0_10] : memref<9x128x128xbf16, #tpu.memory_space<vmem>>, vector<1x128x128xbf16>
    %10 = vector.shape_cast %9 : vector<1x128x128xbf16> to vector<128x128xbf16>
    %cst_11 = arith.constant dense<0.000000e+00> : vector<256x128xf32>
    %11 = tpu.matmul %8, %10, %cst_11 {dimension_numbers = #tpu.dot_dimension_numbers<[1], [0], [0], [1], [0, 0, 1, 1], [], []>} : vector<256x128xbf16>, vector<128x128xbf16>, vector<256x128xf32> -> vector<256x128xf32>
    %12 = arith.addf %5, %11 : vector<256x128xf32>
    %c0_12 = arith.constant 0 : index
    %c0_13 = arith.constant 0 : index
    %c4 = arith.constant 4 : index
    %c0_14 = arith.constant 0 : index
    %13 = vector.load %arg2[%c0_12, %c0_13, %c4, %c0_14] : memref<1x20x24x128xbf16, #tpu.memory_space<vmem>>, vector<1x16x16x128xbf16>
    %14 = vector.shape_cast %13 : vector<1x16x16x128xbf16> to vector<16x16x128xbf16>
    %15 = vector.shape_cast %14 : vector<16x16x128xbf16> to vector<256x128xbf16>
    %c2_15 = arith.constant 2 : index
    %c0_16 = arith.constant 0 : index
    %c0_17 = arith.constant 0 : index
    %16 = vector.load %arg3[%c2_15, %c0_16, %c0_17] : memref<9x128x128xbf16, #tpu.memory_space<vmem>>, vector<1x128x128xbf16>
    %17 = vector.shape_cast %16 : vector<1x128x128xbf16> to vector<128x128xbf16>
    %cst_18 = arith.constant dense<0.000000e+00> : vector<256x128xf32>
    %18 = tpu.matmul %15, %17, %cst_18 {dimension_numbers = #tpu.dot_dimension_numbers<[1], [0], [0], [1], [0, 0, 1, 1], [], []>} : vector<256x128xbf16>, vector<128x128xbf16>, vector<256x128xf32> -> vector<256x128xf32>
    %19 = arith.addf %12, %18 : vector<256x128xf32>
    %c0_19 = arith.constant 0 : index
    %c2_20 = arith.constant 2 : index
    %c0_21 = arith.constant 0 : index
    %c0_22 = arith.constant 0 : index
    %20 = vector.load %arg2[%c0_19, %c2_20, %c0_21, %c0_22] : memref<1x20x24x128xbf16, #tpu.memory_space<vmem>>, vector<1x16x16x128xbf16>
    %21 = vector.shape_cast %20 : vector<1x16x16x128xbf16> to vector<16x16x128xbf16>
    %22 = vector.shape_cast %21 : vector<16x16x128xbf16> to vector<256x128xbf16>
    %c3 = arith.constant 3 : index
    %c0_23 = arith.constant 0 : index
    %c0_24 = arith.constant 0 : index
    %23 = vector.load %arg3[%c3, %c0_23, %c0_24] : memref<9x128x128xbf16, #tpu.memory_space<vmem>>, vector<1x128x128xbf16>
    %24 = vector.shape_cast %23 : vector<1x128x128xbf16> to vector<128x128xbf16>
    %cst_25 = arith.constant dense<0.000000e+00> : vector<256x128xf32>
    %25 = tpu.matmul %22, %24, %cst_25 {dimension_numbers = #tpu.dot_dimension_numbers<[1], [0], [0], [1], [0, 0, 1, 1], [], []>} : vector<256x128xbf16>, vector<128x128xbf16>, vector<256x128xf32> -> vector<256x128xf32>
    %26 = arith.addf %19, %25 : vector<256x128xf32>
    %c0_26 = arith.constant 0 : index
    %c2_27 = arith.constant 2 : index
    %c2_28 = arith.constant 2 : index
    %c0_29 = arith.constant 0 : index
    %27 = vector.load %arg2[%c0_26, %c2_27, %c2_28, %c0_29] : memref<1x20x24x128xbf16, #tpu.memory_space<vmem>>, vector<1x16x16x128xbf16>
    %28 = vector.shape_cast %27 : vector<1x16x16x128xbf16> to vector<16x16x128xbf16>
    %29 = vector.shape_cast %28 : vector<16x16x128xbf16> to vector<256x128xbf16>
    %c4_30 = arith.constant 4 : index
    %c0_31 = arith.constant 0 : index
    %c0_32 = arith.constant 0 : index
    %30 = vector.load %arg3[%c4_30, %c0_31, %c0_32] : memref<9x128x128xbf16, #tpu.memory_space<vmem>>, vector<1x128x128xbf16>
    %31 = vector.shape_cast %30 : vector<1x128x128xbf16> to vector<128x128xbf16>
    %cst_33 = arith.constant dense<0.000000e+00> : vector<256x128xf32>
    %32 = tpu.matmul %29, %31, %cst_33 {dimension_numbers = #tpu.dot_dimension_numbers<[1], [0], [0], [1], [0, 0, 1, 1], [], []>} : vector<256x128xbf16>, vector<128x128xbf16>, vector<256x128xf32> -> vector<256x128xf32>
    %33 = arith.addf %26, %32 : vector<256x128xf32>
    %c0_34 = arith.constant 0 : index
    %c2_35 = arith.constant 2 : index
    %c4_36 = arith.constant 4 : index
    %c0_37 = arith.constant 0 : index
    %34 = vector.load %arg2[%c0_34, %c2_35, %c4_36, %c0_37] : memref<1x20x24x128xbf16, #tpu.memory_space<vmem>>, vector<1x16x16x128xbf16>
    %35 = vector.shape_cast %34 : vector<1x16x16x128xbf16> to vector<16x16x128xbf16>
    %36 = vector.shape_cast %35 : vector<16x16x128xbf16> to vector<256x128xbf16>
    %c5 = arith.constant 5 : index
    %c0_38 = arith.constant 0 : index
    %c0_39 = arith.constant 0 : index
    %37 = vector.load %arg3[%c5, %c0_38, %c0_39] : memref<9x128x128xbf16, #tpu.memory_space<vmem>>, vector<1x128x128xbf16>
    %38 = vector.shape_cast %37 : vector<1x128x128xbf16> to vector<128x128xbf16>
    %cst_40 = arith.constant dense<0.000000e+00> : vector<256x128xf32>
    %39 = tpu.matmul %36, %38, %cst_40 {dimension_numbers = #tpu.dot_dimension_numbers<[1], [0], [0], [1], [0, 0, 1, 1], [], []>} : vector<256x128xbf16>, vector<128x128xbf16>, vector<256x128xf32> -> vector<256x128xf32>
    %40 = arith.addf %33, %39 : vector<256x128xf32>
    %c0_41 = arith.constant 0 : index
    %c4_42 = arith.constant 4 : index
    %c0_43 = arith.constant 0 : index
    %c0_44 = arith.constant 0 : index
    %41 = vector.load %arg2[%c0_41, %c4_42, %c0_43, %c0_44] : memref<1x20x24x128xbf16, #tpu.memory_space<vmem>>, vector<1x16x16x128xbf16>
    %42 = vector.shape_cast %41 : vector<1x16x16x128xbf16> to vector<16x16x128xbf16>
    %43 = vector.shape_cast %42 : vector<16x16x128xbf16> to vector<256x128xbf16>
    %c6 = arith.constant 6 : index
    %c0_45 = arith.constant 0 : index
    %c0_46 = arith.constant 0 : index
    %44 = vector.load %arg3[%c6, %c0_45, %c0_46] : memref<9x128x128xbf16, #tpu.memory_space<vmem>>, vector<1x128x128xbf16>
    %45 = vector.shape_cast %44 : vector<1x128x128xbf16> to vector<128x128xbf16>
    %cst_47 = arith.constant dense<0.000000e+00> : vector<256x128xf32>
    %46 = tpu.matmul %43, %45, %cst_47 {dimension_numbers = #tpu.dot_dimension_numbers<[1], [0], [0], [1], [0, 0, 1, 1], [], []>} : vector<256x128xbf16>, vector<128x128xbf16>, vector<256x128xf32> -> vector<256x128xf32>
    %47 = arith.addf %40, %46 : vector<256x128xf32>
    %c0_48 = arith.constant 0 : index
    %c4_49 = arith.constant 4 : index
    %c2_50 = arith.constant 2 : index
    %c0_51 = arith.constant 0 : index
    %48 = vector.load %arg2[%c0_48, %c4_49, %c2_50, %c0_51] : memref<1x20x24x128xbf16, #tpu.memory_space<vmem>>, vector<1x16x16x128xbf16>
    %49 = vector.shape_cast %48 : vector<1x16x16x128xbf16> to vector<16x16x128xbf16>
    %50 = vector.shape_cast %49 : vector<16x16x128xbf16> to vector<256x128xbf16>
    %c7 = arith.constant 7 : index
    %c0_52 = arith.constant 0 : index
    %c0_53 = arith.constant 0 : index
    %51 = vector.load %arg3[%c7, %c0_52, %c0_53] : memref<9x128x128xbf16, #tpu.memory_space<vmem>>, vector<1x128x128xbf16>
    %52 = vector.shape_cast %51 : vector<1x128x128xbf16> to vector<128x128xbf16>
    %cst_54 = arith.constant dense<0.000000e+00> : vector<256x128xf32>
    %53 = tpu.matmul %50, %52, %cst_54 {dimension_numbers = #tpu.dot_dimension_numbers<[1], [0], [0], [1], [0, 0, 1, 1], [], []>} : vector<256x128xbf16>, vector<128x128xbf16>, vector<256x128xf32> -> vector<256x128xf32>
    %54 = arith.addf %47, %53 : vector<256x128xf32>
    %c0_55 = arith.constant 0 : index
    %c4_56 = arith.constant 4 : index
    %c4_57 = arith.constant 4 : index
    %c0_58 = arith.constant 0 : index
    %55 = vector.load %arg2[%c0_55, %c4_56, %c4_57, %c0_58] : memref<1x20x24x128xbf16, #tpu.memory_space<vmem>>, vector<1x16x16x128xbf16>
    %56 = vector.shape_cast %55 : vector<1x16x16x128xbf16> to vector<16x16x128xbf16>
    %57 = vector.shape_cast %56 : vector<16x16x128xbf16> to vector<256x128xbf16>
    %c8 = arith.constant 8 : index
    %c0_59 = arith.constant 0 : index
    %c0_60 = arith.constant 0 : index
    %58 = vector.load %arg3[%c8, %c0_59, %c0_60] : memref<9x128x128xbf16, #tpu.memory_space<vmem>>, vector<1x128x128xbf16>
    %59 = vector.shape_cast %58 : vector<1x128x128xbf16> to vector<128x128xbf16>
    %cst_61 = arith.constant dense<0.000000e+00> : vector<256x128xf32>
    %60 = tpu.matmul %57, %59, %cst_61 {dimension_numbers = #tpu.dot_dimension_numbers<[1], [0], [0], [1], [0, 0, 1, 1], [], []>} : vector<256x128xbf16>, vector<128x128xbf16>, vector<256x128xf32> -> vector<256x128xf32>
    %61 = arith.addf %54, %60 : vector<256x128xf32>
    %c0_62 = arith.constant 0 : index
    %c0_63 = arith.constant 0 : index
    %62 = vector.load %arg4[%c0_62, %c0_63] : memref<1x128xf32, #tpu.memory_space<vmem>>, vector<1x128xf32>
    %63 = vector.broadcast %62 : vector<1x128xf32> to vector<256x128xf32>
    %64 = arith.mulf %61, %63 : vector<256x128xf32>
    %c0_64 = arith.constant 0 : index
    %c0_65 = arith.constant 0 : index
    %65 = vector.load %arg5[%c0_64, %c0_65] : memref<1x128xf32, #tpu.memory_space<vmem>>, vector<1x128xf32>
    %66 = vector.broadcast %65 : vector<1x128xf32> to vector<256x128xf32>
    %67 = arith.addf %64, %66 : vector<256x128xf32>
    %cst_66 = arith.constant 0.000000e+00 : f32
    %68 = vector.broadcast %cst_66 : f32 to vector<256x128xf32>
    %69 = arith.maximumf %67, %68 : vector<256x128xf32>
    %70 = arith.truncf %69 : vector<256x128xf32> to vector<256x128xbf16>
    %c0_67 = arith.constant 0 : index
    %c0_68 = arith.constant 0 : index
    %71 = vector.load %arg6[%c0_67, %c0_68] : memref<128x128xbf16, #tpu.memory_space<vmem>>, vector<128x128xbf16>
    %cst_69 = arith.constant dense<0.000000e+00> : vector<256x128xf32>
    %72 = tpu.matmul %70, %71, %cst_69 {dimension_numbers = #tpu.dot_dimension_numbers<[1], [0], [0], [1], [0, 0, 1, 1], [], []>} : vector<256x128xbf16>, vector<128x128xbf16>, vector<256x128xf32> -> vector<256x128xf32>
    %c0_70 = arith.constant 0 : index
    %c0_71 = arith.constant 0 : index
    %73 = vector.load %arg7[%c0_70, %c0_71] : memref<1x128xf32, #tpu.memory_space<vmem>>, vector<1x128xf32>
    %74 = vector.broadcast %73 : vector<1x128xf32> to vector<256x128xf32>
    %75 = arith.mulf %72, %74 : vector<256x128xf32>
    %c0_72 = arith.constant 0 : index
    %c0_73 = arith.constant 0 : index
    %76 = vector.load %arg8[%c0_72, %c0_73] : memref<1x128xf32, #tpu.memory_space<vmem>>, vector<1x128xf32>
    %77 = vector.broadcast %76 : vector<1x128xf32> to vector<256x128xf32>
    %78 = arith.addf %75, %77 : vector<256x128xf32>
    %c0_74 = arith.constant 0 : index
    %c0_75 = arith.constant 0 : index
    %c0_76 = arith.constant 0 : index
    %79 = vector.load %arg9[%c0_74, %c0_75, %c0_76] : memref<1x256x128xbf16, #tpu.memory_space<vmem>>, vector<1x256x128xbf16>
    %80 = vector.shape_cast %79 : vector<1x256x128xbf16> to vector<256x128xbf16>
    %81 = arith.extf %80 : vector<256x128xbf16> to vector<256x128xf32>
    %82 = arith.addf %78, %81 : vector<256x128xf32>
    %cst_77 = arith.constant 0.000000e+00 : f32
    %83 = vector.broadcast %cst_77 : f32 to vector<256x128xf32>
    %84 = arith.maximumf %82, %83 : vector<256x128xf32>
    %85 = vector.shape_cast %84 : vector<256x128xf32> to vector<1x256x128xf32>
    %c0_78 = arith.constant 0 : index
    %c0_79 = arith.constant 0 : index
    %c0_80 = arith.constant 0 : index
    %86 = vector.load %arg10[%c0_78, %c0_79, %c0_80] : memref<1x256x128xf32, #tpu.memory_space<vmem>>, vector<1x256x128xf32>
    tpu.vector_store %arg10[%c0_78, %c0_79, %c0_80], %85 {strides = array<i32>} : memref<1x256x128xf32, #tpu.memory_space<vmem>>, vector<1x256x128xf32>,
    return
  }
  func.func @transform_0(%arg0: i32, %arg1: i32) -> (i32, i32, i32, i32) {
    %c0_i32 = arith.constant 0 : i32
    %c0_i32_0 = arith.constant 0 : i32
    %c0_i32_1 = arith.constant 0 : i32
    return %arg0, %c0_i32, %c0_i32_0, %arg1 : i32, i32, i32, i32
  }
  func.func @transform_1(%arg0: i32, %arg1: i32) -> (i32, i32, i32) {
    %c0_i32 = arith.constant 0 : i32
    %c0_i32_0 = arith.constant 0 : i32
    %c0_i32_1 = arith.constant 0 : i32
    return %c0_i32, %arg1, %c0_i32_0 : i32, i32, i32
  }
  func.func @transform_2(%arg0: i32, %arg1: i32) -> (i32, i32) {
    %c0_i32 = arith.constant 0 : i32
    %c0_i32_0 = arith.constant 0 : i32
    %c0_i32_1 = arith.constant 0 : i32
    return %c0_i32, %c0_i32_0 : i32, i32
  }
  func.func @transform_3(%arg0: i32, %arg1: i32) -> (i32, i32) {
    %c0_i32 = arith.constant 0 : i32
    %c0_i32_0 = arith.constant 0 : i32
    %c0_i32_1 = arith.constant 0 : i32
    return %c0_i32, %c0_i32_0 : i32, i32
  }
  func.func @transform_4(%arg0: i32, %arg1: i32) -> (i32, i32) {
    %c0_i32 = arith.constant 0 : i32
    %c0_i32_0 = arith.constant 0 : i32
    %c0_i32_1 = arith.constant 0 : i32
    return %c0_i32, %c0_i32_0 : i32, i32
  }
  func.func @transform_5(%arg0: i32, %arg1: i32) -> (i32, i32) {
    %c0_i32 = arith.constant 0 : i32
    %c0_i32_0 = arith.constant 0 : i32
    %c0_i32_1 = arith.constant 0 : i32
    return %c0_i32, %c0_i32_0 : i32, i32
  }
  func.func @transform_6(%arg0: i32, %arg1: i32) -> (i32, i32) {
    %c0_i32 = arith.constant 0 : i32
    %c0_i32_0 = arith.constant 0 : i32
    %c0_i32_1 = arith.constant 0 : i32
    return %c0_i32, %c0_i32_0 : i32, i32
  }
  func.func @transform_7(%arg0: i32, %arg1: i32) -> (i32, i32, i32) {
    %c0_i32 = arith.constant 0 : i32
    %c0_i32_0 = arith.constant 0 : i32
    %c0_i32_1 = arith.constant 0 : i32
    return %arg0, %c0_i32, %c0_i32_0 : i32, i32, i32
  }
  func.func @transform_8(%arg0: i32, %arg1: i32) -> (i32, i32, i32) {
    %c0_i32 = arith.constant 0 : i32
    %c0_i32_0 = arith.constant 0 : i32
    %c0_i32_1 = arith.constant 0 : i32
    return %arg0, %c0_i32, %c0_i32_0 : i32, i32, i32
  }
}

</mosaic_0001>

<bundles_post_ra>
// kernel: _forward.1
= control target key start
LH: loop header
LB: loop body
LE: loop exit
PB: predicated region body
PF: predicated region fallthrough
CT: control target
= control target key end

     0   :  { %13 = vsyncpa [#allocation3], 0  ;;  %s7406_s0 = inlined_call_operand.vmem [shape: bf16[2,20,24,128], index: 0, kind: input, shape index: {}]   ;;  %s7407_s1 = inlined_call_operand.vmem [shape: bf16[9,128,128], index: 1, kind: input, shape index: {}]   ;;  %s7408_s2 = inlined_call_operand.vmem [shape: f32[1,128], index: 2, kind: input, shape index: {}]   ;;  %s7409_s3 = inlined_call_operand.vmem [shape: f32[1,128], index: 3, kind: input, shape index: {}]   ;;  %s7410_s4 = inlined_call_operand.vmem [shape: bf16[128,128], index: 4, kind: input, shape index: {}]   ;;  %s7411_s5 = inlined_call_operand.vmem [shape: f32[1,128], index: 5, kind: input, shape index: {}]   ;;  %s7412_s6 = inlined_call_operand.vmem [shape: f32[1,128], index: 6, kind: input, shape index: {}]   ;;  %s7413_s7 = inlined_call_operand.vmem [shape: bf16[2,256,128], index: 7, kind: input, shape index: {}]   ;;  %s7414_s8 = inlined_call_operand.hbm [shape: f32[2,256,128], index: 8, kind: output, shape index: {}]  }
   0x1   :  { %15 = vsyncpa [#allocation3 + $0x1], 0  ;;  %s5897_s27 = smov 0   ;;  %s5899_s28 = smov 0  }
   0x2   :  { %s5901_s29 = smov 0   ;;  %s5903_s30 = smov 0  }
   0x3   :  { %s5905_s9 = smov 0   ;;  %s5907_s10 = smov 0  }
   0x4 LB: > { %s4498_s11 = sadd.s32 4294967295, %s5848_s10   ;;  %s4499_s12 = sadd.s32 4294967294, %s5848_s10   ;;  %s5848_s10 = sphi %s5907_s10, %s21_s10   ;;  %s5844_s9 = sphi %s5905_s9, %s7441_s9   ;;  %s5840_s30 = sphi %s5903_s30, %s7440_s30   ;;  %s5836_s29 = sphi %s5901_s29, %s7439_s29   ;;  %s5832_s28 = sphi %s5899_s28, %s7438_s28   ;;  %s5828_s27 = sphi %s5897_s27, %s7437_s27  }
   0x5   : > { %s33_s13 = sadd.s32 1, %s5844_s9  ;;  %s225_s14 = sadd.s32 1, %s5836_s29 }
   0x6   : > { %p35_p0 = scmp.ge.s32.totalorder %s33_s13, 2  ;;  %p235_p1 = scmp.ne.s32.totalorder %s5836_s29, %s5832_s28 }
   0x7   : > { %p236_p2 = scmp.eq.s32.totalorder %s4498_s11, 1  ;;  %p241_p3 = scmp.ne.s32.totalorder %s5832_s28, %s5828_s27 }
   0x8   : > { %s7443_s13 = smov (%p35_p0, %s33_s13), 0  ;;  %p242_p5 = scmp.eq.s32.totalorder %s4499_s12, 1 }
   0x9   : > { %p5937_p4 = por %p236_p2, %p235_p1  ;;  %s222_s16 = ssub.s32 %s5844_s9, %s7443_s13 }
   0xa   : > { %p4503_p6 = scmp.ge.s32.totalorder %s5848_s10, 1  ;;  %p223_p7 = scmp.eq.s32.totalorder %s222_s16, 0 }
   0xb   : > { %p5944_p8 = por %p242_p5, %p241_p3  ;;  %p303_p9 = scmp.lt.s32.totalorder %s5848_s10, 3 }
   0xc   : > { %s5950_s18 = scalar_select %p223_p7, %s5836_s29, %s225_s14  }
   0xd   : > { %p304_p10 = pnand %p4503_p6, %p303_p9 }
   0xf   : > { %307 = sbr.rel (%p304_p10) target bundleno = 976 (0x3d0), region = 52 }
  0x14   : > { %v5505_v0 = vld [vmem:[%s7407_s1 + $0x78] sm:$0xff]  ;;  %p350_p11 = scmp.lt.s32.totalorder %s5840_s30, 1  ;;  %v5504_v2 = vld [vmem:[%s7407_s1 + $0x70] sm:$0xff]  ;;  %v5503_v4 = vld [vmem:[%s7407_s1 + $0x68] sm:$0xff]  ;;  %vm497_vm0 = vcmask 1042432   ;;  %vm498_vm1 = vcmask 1046532  }
  0x15   : > { %v5497_v1 = vld [vmem:[%s7407_s1 + $0x38] sm:$0xff]  ;;  %5682 = vmatpush.bf16.msra.mxu2 %v5505_v0  ;;  %v5496_v3 = vld [vmem:[%s7407_s1 + $0x30] sm:$0xff]  ;;  %741 = vmatpush.bf16.msra.mxu0 %v5505_v0  ;;  %v5495_v5 = vld [vmem:[%s7407_s1 + $0x28] sm:$0xff]  ;;  %vm1111_vm3 = vcmask 1041408   ;;  %vm1112_vm4 = vcmask 1045508   ;;  %s347_s21 = sand.u32 1, %s5832_s28  }
  0x16   : > { %5690 = vmatpush.bf16.msra.mxu3 %v5497_v1  ;;  %s5966_s11 = scalar_select %p350_p11, %s5840_s30, 1  ;;  %958 = vmatpush.bf16.msra.mxu1 %v5497_v1  ;;  %v5502_v6 = vld [vmem:[%s7407_s1 + $0x60] sm:$0xff]  ;;  %v5501_v10 = vld [vmem:[%s7407_s1 + $0x58] sm:$0xff]  ;;  %v5500_v18 = vld [vmem:[%s7407_s1 + $0x50] sm:$0xff] }
  0x17   : > { %v5494_v7 = vld [vmem:[%s7407_s1 + $0x20] sm:$0xff]  ;;  %v5493_v11 = vld [vmem:[%s7407_s1 + $0x18] sm:$0xff]  ;;  %v5492_v19 = vld [vmem:[%s7407_s1 + $0x10] sm:$0xff]  ;;  %s4504_s22 = sshll.u32 %s347_s21, 8  ;;  %s5602_s16 = sshll.u32 %s5840_s30, 8 }
  0x18   : > { %s5698_s12 = smul.u32 240, %s5966_s11  ;;  %vm6007_vm2 = vmor %vm497_vm0, %vm498_vm1  ;;  %v5499_v27 = vld [vmem:[%s7407_s1 + $0x48] sm:$0xff]  ;;  %v5498_v35 = vld [vmem:[%s7407_s1 + $0x40] sm:$0xff]  ;;  %s7201_s24 = scalar_lea.vmem [#allocation2], %s4504_s22 }
  0x19   : > { %5683 = vmatpush.bf16.msra.mxu2 %v5504_v2  ;;  %742 = vmatpush.bf16.msra.mxu0 %v5504_v2  ;;  %v5491_v28 = vld [vmem:[%s7407_s1 + $0x8] sm:$0xff]  ;;  %v5490_v36 = vld [vmem:[%s7407_s1] sm:$0xff]  ;;  %v5513_v40 = vld [vmem:[%s7407_s1 + $0xb8] sm:$0xff]  ;;  %s4391_s20 = scalar_lea.hbm %s7414_s8, %s5602_s16  ;;  %s4380_s30 = scalar_lea.sflag [#allocation3], %s347_s21 }
  0x1a   : > { %5691 = vmatpush.bf16.msra.mxu3 %v5496_v3  ;;  %959 = vmatpush.bf16.msra.mxu1 %v5496_v3  ;;  %s5978_s23 = scalar_lea.vmem %s7406_s0, %s5698_s12  ;;  %v5537_v41 = vld [vmem:[%s7407_s1 + $0xf8] sm:$0xff]  ;;  %v5512_v53 = vld [vmem:[%s7407_s1 + $0xb0] sm:$0xff]  ;;  %v5511_v63 = vld [vmem:[%s7407_s1 + $0xa8] sm:$0xff]  ;;  %s4394_s22 = sshll.u32 %s4391_s20, 4  ;;  %s4395_s22 = int_to_ptr.hbm [resolvable:$true] %s4394_s22 }
  0x1b   : > { %v386_v8 = vld [vmem:[%s5978_s23 + $0x64] sm:$0xf]  ;;  %v433_v12 = vld [vmem:[%s5978_s23 + $0x60] sm:$0xe]  ;;  %v434_v14 = vld [vmem:[%s5978_s23 + $0x68] sm:$0x1] }
  0x1c   : > { %v5988_v9 = vld [vmem:[%s5978_s23 + $0x4] sm:$0xf]  ;;  %v558_v13 = vrot.slane %v386_v8, 5  ;;  %v417_v16 = vld [vmem:[%s5978_s23] sm:$0xe]  ;;  %v4516_v20 = vrot.slane %v433_v12, 9  ;;  %vm6279_vm5 = vmor %vm1111_vm3, %vm1112_vm4 }
  0x1d   : > { %5684 = vmatpush.bf16.msra.mxu2 %v5503_v4  ;;  %743 = vmatpush.bf16.msra.mxu0 %v5503_v4  ;;  %v502_v15 = vrot.slane %v5988_v9, 5  ;;  %v418_v17 = vld [vmem:[%s5978_s23 + $0x8] sm:$0x1]  ;;  %v561_v22 = vrot.slane %v434_v14, 5  ;;  %v4508_v24 = vrot.slane %v417_v16, 9  ;;  %v5482_v44 = vld [vmem:[%s5978_s23 + $0x60] sm:$0xff] }
  0x1e   : > { %5692 = vmatpush.bf16.msra.mxu3 %v5495_v5  ;;  %960 = vmatpush.bf16.msra.mxu1 %v5495_v5  ;;  %v560_v21 = vrot.slane %v558_v13, 4  ;;  %v505_v26 = vrot.slane %v418_v17, 5  ;;  %v559_v29 = vsel %vm6007_vm2, %v4516_v20, %v558_v13  ;;  %v388_v39 = vld [vmem:[%s5978_s23 + $0x70] sm:$0xf]  ;;  %v5474_v46 = vld [vmem:[%s5978_s23] sm:$0xff]  ;;  %v5545_v49 = vld [vmem:[%s7407_s1 + $0x138] sm:$0xff] }
  0x1f   : > { %v504_v25 = vrot.slane %v502_v15, 4  ;;  %v503_v31 = vsel %vm6007_vm2, %v4508_v24, %v502_v15  ;;  %v645_v33 = vunpack.c.l.b16 %v559_v29  ;;  %v6039_v42 = vld [vmem:[%s5978_s23 + $0x10] sm:$0xf]  ;;  %v435_v47 = vld [vmem:[%s5978_s23 + $0x6c] sm:$0xe]  ;;  %v565_v48 = vrot.slane %v388_v39, 5 }
  0x20   : > { %v562_v30 = vsel %vm6007_vm2, %v560_v21, %v561_v22  ;;  %v629_v37 = vunpack.c.l.b16 %v503_v31  ;;  %v436_v50 = vld [vmem:[%s5978_s23 + $0x74] sm:$0x1]  ;;  %v419_v51 = vld [vmem:[%s5978_s23 + $0xc] sm:$0xe]  ;;  %v509_v52 = vrot.slane %v6039_v42, 5  ;;  %v4517_v56 = vrot.slane %v435_v47, 9 }
  0x21   : > { %5685 = vmatpush.bf16.msra.mxu2 %v5502_v6  ;;  %744 = vmatpush.bf16.msra.mxu0 %v5502_v6  ;;  %v506_v32 = vsel %vm6007_vm2, %v504_v25, %v505_v26  ;;  %v646_v34 = vunpack.c.l.b16 %v562_v30  ;;  %v420_v54 = vld [vmem:[%s5978_s23 + $0x14] sm:$0x1]  ;;  %v567_v57 = vrot.slane %v565_v48, 4  ;;  %v568_v58 = vrot.slane %v436_v50, 5  ;;  %v5535_v0 = vld [vmem:[%s7407_s1 + $0xe8] sm:$0xff]  ;;  %v5510_v24 = vld [vmem:[%s7407_s1 + $0xa0] sm:$0xff] }
  0x22   : > { %5693 = vmatpush.bf16.msra.mxu3 %v5494_v7  ;;  %961 = vmatpush.bf16.msra.mxu1 %v5494_v7  ;;  %v630_v38 = vunpack.c.l.b16 %v506_v32  ;;  %v5536_v55 = vld [vmem:[%s7407_s1 + $0xf0] sm:$0xff]  ;;  %v4509_v59 = vrot.slane %v419_v51, 9  ;;  %v511_v60 = vrot.slane %v509_v52, 4  ;;  %v512_v61 = vrot.slane %v420_v54, 5  ;;  %v5543_v5 = vld [vmem:[%s7407_s1 + $0x128] sm:$0xff]  ;;  %v5542_v29 = vld [vmem:[%s7407_s1 + $0x120] sm:$0xff] }
  0x23   : > { %v669_v43 = vpack.c.b16 %v646_v34, %v645_v33  ;;  %v5544_v62 = vld [vmem:[%s7407_s1 + $0x130] sm:$0xff]  ;;  %v566_v1 = vsel %vm6007_vm2, %v4517_v56, %v565_v48  ;;  %v569_v2 = vsel %vm6007_vm2, %v567_v57, %v568_v58  ;;  %v6079_v12 = vld [vmem:[%s5978_s23 + $0x1c] sm:$0xf]  ;;  %v421_v21 = vld [vmem:[%s5978_s23 + $0x18] sm:$0xe]  ;;  %s5784_s25 = sshra.s32 %s4395_s22, 4  ;;  %s5785_s25 = int_to_ptr.hbm [resolvable:$true] %s5784_s25 }
  0x24   : > { %v661_v45 = vpack.c.b16 %v630_v38, %v629_v37  ;;  %v510_v3 = vsel %vm6007_vm2, %v4509_v59, %v509_v52  ;;  %v513_v4 = vsel %vm6007_vm2, %v511_v60, %v512_v61  ;;  %v647_v6 = vunpack.c.l.b16 %v566_v1  ;;  %v5483_v14 = vld [vmem:[%s5978_s23 + $0x6c] sm:$0xff]  ;;  %v422_v22 = vld [vmem:[%s5978_s23 + $0x20] sm:$0x1]  ;;  %v5476_v47 = vld [vmem:[%s5978_s23 + $0x18] sm:$0xff]  ;;  %s5790_s16 = scalar_lea.hbm %s7414_s8, 512  ;;  %p5791_p1 = scmp.lt.s32.totalorder %s5785_s25, %s7414_s8 }
  0x25   : > { %5686 = vmatpush.bf16.msra.mxu2 %v5501_v10  ;;  %745 = vmatpush.bf16.msra.mxu0 %v5501_v10  ;;  %v648_v7 = vunpack.c.l.b16 %v569_v2  ;;  %v631_v8 = vunpack.c.l.b16 %v510_v3  ;;  %v632_v10 = vunpack.c.l.b16 %v513_v4  ;;  %v5475_v16 = vld [vmem:[%s5978_s23 + $0xc] sm:$0xff]  ;;  %v516_v20 = vrot.slane %v6079_v12, 5  ;;  %v423_v52 = vld [vmem:[%s5978_s23 + $0x24] sm:$0xe]  ;;  %v5509_v54 = vld [vmem:[%s7407_s1 + $0x98] sm:$0xff] }
  0x26   : > { %5694 = vmatpush.bf16.msra.mxu3 %v5493_v11  ;;  %962 = vmatpush.bf16.msra.mxu1 %v5493_v11  ;;  %v390_v11 = vld [vmem:[%s5978_s23 + $0x7c] sm:$0xf]  ;;  %v4510_v30 = vrot.slane %v421_v21, 9  ;;  %v519_v32 = vrot.slane %v422_v22, 5  ;;  %v440_v50 = vld [vmem:[%s5978_s23 + $0x8c] sm:$0x1] }
  0x27   : > { %v670_v13 = vpack.c.b16 %v648_v7, %v647_v6  ;;  %v662_v15 = vpack.c.b16 %v632_v10, %v631_v8  ;;  %v572_v17 = vrot.slane %v390_v11, 5  ;;  %v518_v31 = vrot.slane %v516_v20, 4  ;;  %v5533_v58 = vld [vmem:[%s7407_s1 + $0xd8] sm:$0xff]  ;;  %v394_v7 = vld [vmem:[%s5978_s23 + $0x94] sm:$0xf]  ;;  %v5485_v11 = vld [vmem:[%s5978_s23 + $0x84] sm:$0xff] }
  0x28   : > { %v582_v57 = vrot.slane %v440_v50, 5  ;;  %v5541_v59 = vld [vmem:[%s7407_s1 + $0x118] sm:$0xff]  ;;  %v4511_v60 = vrot.slane %v423_v52, 9  ;;  %v6135_v8 = vld [vmem:[%s5978_s23 + $0x34] sm:$0xf] }
  0x29   : > { %5687 = vmatpush.bf16.msra.mxu2 %v5500_v18  ;;  %746 = vmatpush.bf16.msra.mxu0 %v5500_v18  ;;  %v437_v18 = vld [vmem:[%s5978_s23 + $0x78] sm:$0xe]  ;;  %v574_v26 = vrot.slane %v572_v17, 4  ;;  %v5508_v21 = vld [vmem:[%s7407_s1 + $0x90] sm:$0xff]  ;;  %v428_v52 = vld [vmem:[%s5978_s23 + $0x44] sm:$0x1] }
  0x2a   : > { %5695 = vmatpush.bf16.msra.mxu3 %v5492_v19  ;;  %963 = vmatpush.bf16.msra.mxu1 %v5492_v19  ;;  %v438_v19 = vld [vmem:[%s5978_s23 + $0x80] sm:$0x1]  ;;  %v4518_v25 = vrot.slane %v437_v18, 9  ;;  %v530_v18 = vrot.slane %v6135_v8, 5 }
  0x2c   : > { %v573_v33 = vsel %vm6007_vm2, %v4518_v25, %v572_v17  ;;  %v442_v17 = vld [vmem:[%s5978_s23 + $0x98] sm:$0x1] }
  0x2d   : > { %5688 = vmatpush.bf16.msra.mxu2 %v5499_v27  ;;  %747 = vmatpush.bf16.msra.mxu0 %v5499_v27  ;;  %v575_v27 = vrot.slane %v438_v19, 5  ;;  %v649_v37 = vunpack.c.l.b16 %v573_v33  ;;  %v425_v19 = vld [vmem:[%s5978_s23 + $0x30] sm:$0xe]  ;;  %v589_v25 = vrot.slane %v442_v17, 5  ;;  %v445_v17 = vld [vmem:[%s5978_s23 + $0xa8] sm:$0xe] }
  0x2e   : > { %5696 = vmatpush.bf16.msra.mxu3 %v5491_v28  ;;  %964 = vmatpush.bf16.msra.mxu1 %v5491_v28  ;;  %v5534_v28 = vld [vmem:[%s7407_s1 + $0xe0] sm:$0xff] }
  0x2f   : > { %v576_v34 = vsel %vm6007_vm2, %v574_v26, %v575_v27  ;;  %v5532_v26 = vld [vmem:[%s7407_s1 + $0xd0] sm:$0xff] }
  0x30   : > { %v650_v38 = vunpack.c.l.b16 %v576_v34  ;;  %v5540_v27 = vld [vmem:[%s7407_s1 + $0x110] sm:$0xff] }
  0x31   : > { %5689 = vmatpush.bf16.msra.mxu2 %v5498_v35  ;;  %748 = vmatpush.bf16.msra.mxu0 %v5498_v35  ;;  %v517_v35 = vsel %vm6007_vm2, %v4510_v30, %v516_v20  ;;  %v426_v20 = vld [vmem:[%s5978_s23 + $0x38] sm:$0x1] }
  0x32   : > { %5697 = vmatpush.bf16.msra.mxu3 %v5490_v36  ;;  %965 = vmatpush.bf16.msra.mxu1 %v5490_v36  ;;  %v520_v36 = vsel %vm6007_vm2, %v518_v31, %v519_v32  ;;  %v633_v39 = vunpack.c.l.b16 %v517_v35  ;;  %v533_v30 = vrot.slane %v426_v20, 5  ;;  %v429_v20 = vld [vmem:[%s5978_s23 + $0x48] sm:$0xe] }
  0x34   : > { %789 = vmatmul.bf16.vlgmr.msra.gmra.mxu2 %v669_v43  ;;  %749 = vmatmul.bf16.vlgmr.msra.gmra.mxu0 %v661_v45  ;;  %v6107_v43 = vld [vmem:[%s5978_s23 + $0x28] sm:$0xf]  ;;  %v5484_v45 = vld [vmem:[%s5978_s23 + $0x78] sm:$0xff] }
  0x35   : > { %1355 = vmatpush.bf16.msrb.mxu2 %v5513_v40  ;;  %1006 = vmatmul.bf16.vlgmr.msra.gmra.mxu3 %v5482_v44  ;;  %v634_v40 = vunpack.c.l.b16 %v520_v36  ;;  %v671_v44 = vpack.c.b16 %v650_v38, %v649_v37  ;;  %v523_v51 = vrot.slane %v6107_v43, 5 }
  0x36   : > { %1670 = vmatpush.bf16.msrb.mxu3 %v5537_v41  ;;  %966 = vmatmul.bf16.vlgmr.msra.gmra.mxu1 %v5474_v46  ;;  %v392_v41 = vld [vmem:[%s5978_s23 + $0x88] sm:$0xf] }
  0x37   : > { %2128 = vmatpush.bf16.msrb.mxu0 %v5545_v49  ;;  %v663_v46 = vpack.c.b16 %v634_v40, %v633_v39  ;;  %v579_v48 = vrot.slane %v392_v41, 5  ;;  %v439_v49 = vld [vmem:[%s5978_s23 + $0x84] sm:$0xe]  ;;  %v525_v61 = vrot.slane %v523_v51, 4  ;;  %v524_v1 = vsel %vm6007_vm2, %v4511_v60, %v523_v51  ;;  %v396_v39 = vld [vmem:[%s5978_s23 + $0xa0] sm:$0xf] }
  0x38   : > { %v6163_v40 = vld [vmem:[%s5978_s23 + $0x40] sm:$0xf]  ;;  %v427_v51 = vld [vmem:[%s5978_s23 + $0x3c] sm:$0xe] }
  0x39   : > { %1356 = vmatpush.bf16.msrb.mxu2 %v5512_v53  ;;  %v424_v53 = vld [vmem:[%s5978_s23 + $0x2c] sm:$0x1]  ;;  %v581_v56 = vrot.slane %v579_v48, 4  ;;  %v537_v50 = vrot.slane %v6163_v40, 5  ;;  %v4513_v60 = vrot.slane %v427_v51, 9 }
  0x3a   : > { %1671 = vmatpush.bf16.msrb.mxu3 %v5536_v55  ;;  %v4519_v55 = vrot.slane %v439_v49, 9  ;;  %v444_v49 = vld [vmem:[%s5978_s23 + $0xa4] sm:$0x1] }
  0x3b   : > { %2129 = vmatpush.bf16.msrb.mxu0 %v5544_v62  ;;  %v526_v62 = vrot.slane %v424_v53, 5  ;;  %v5507_v53 = vld [vmem:[%s7407_s1 + $0x88] sm:$0xff] }
  0x3d   : > { %1357 = vmatpush.bf16.msrb.mxu2 %v5511_v63  ;;  %v580_v63 = vsel %vm6007_vm2, %v4519_v55, %v579_v48  ;;  %v527_v2 = vsel %vm6007_vm2, %v525_v61, %v526_v62  ;;  %v443_v48 = vld [vmem:[%s5978_s23 + $0x9c] sm:$0xe]  ;;  %v539_v61 = vrot.slane %v537_v50, 4  ;;  %v540_v62 = vrot.slane %v428_v52, 5  ;;  %v5480_v52 = vld [vmem:[%s5978_s23 + $0x48] sm:$0xff] }
  0x3e   : > { %1672 = vmatpush.bf16.msrb.mxu3 %v5535_v0  ;;  %v583_v0 = vsel %vm6007_vm2, %v581_v56, %v582_v57  ;;  %v651_v3 = vunpack.c.l.b16 %v580_v63  ;;  %v636_v6 = vunpack.c.l.b16 %v527_v2  ;;  %v596_v56 = vrot.slane %v444_v49, 5  ;;  %v5531_v57 = vld [vmem:[%s7407_s1 + $0xc8] sm:$0xff] }
  0x3f   : > { %2130 = vmatpush.bf16.msrb.mxu0 %v5543_v5  ;;  %v652_v4 = vunpack.c.l.b16 %v583_v0  ;;  %v635_v5 = vunpack.c.l.b16 %v524_v1  ;;  %v538_v1 = vsel %vm6007_vm2, %v4513_v60, %v537_v50  ;;  %v541_v2 = vsel %vm6007_vm2, %v539_v61, %v540_v62  ;;  %v5488_v50 = vld [vmem:[%s5978_s23 + $0xa8] sm:$0xff]  ;;  %v5577_v60 = vld [vmem:[%s7407_s1 + $0x1b8] sm:$0xff] }
  0x41   : > { %1358 = vmatpush.bf16.msrb.mxu2 %v5510_v24  ;;  %v672_v10 = vpack.c.b16 %v652_v4, %v651_v3 }
  0x42   : > { %1673 = vmatpush.bf16.msrb.mxu3 %v5534_v28  ;;  %v4512_v28 = vrot.slane %v425_v19, 9 }
  0x43   : > { %2131 = vmatpush.bf16.msrb.mxu0 %v5542_v29  ;;  %v532_v29 = vrot.slane %v530_v18, 4 }
  0x44   : > { %794 = vmatmul.bf16.gmra.mxu2 %v670_v13  ;;  %754 = vmatmul.bf16.gmra.mxu0 %v662_v15  ;;  %v664_v13 = vpack.c.b16 %v636_v6, %v635_v5  ;;  %v586_v15 = vrot.slane %v394_v7, 5  ;;  %v531_v33 = vsel %vm6007_vm2, %v4512_v28, %v530_v18  ;;  %v639_v5 = vunpack.c.l.b16 %v538_v1  ;;  %v398_v7 = vld [vmem:[%s5978_s23 + $0xac] sm:$0xf]  ;;  %v446_v18 = vld [vmem:[%s5978_s23 + $0xb0] sm:$0x1]  ;;  %v5530_v28 = vld [vmem:[%s7407_s1 + $0xc0] sm:$0xff] }
  0x45   : > { %1011 = vmatmul.bf16.gmra.mxu3 %v5483_v14  ;;  %1359 = vmatpush.bf16.msrb.mxu2 %v5509_v54  ;;  %v5477_v14 = vld [vmem:[%s5978_s23 + $0x24] sm:$0xff]  ;;  %v534_v34 = vsel %vm6007_vm2, %v532_v29, %v533_v30  ;;  %v637_v37 = vunpack.c.l.b16 %v531_v33  ;;  %v4521_v54 = vrot.slane %v443_v48, 9  ;;  %v640_v6 = vunpack.c.l.b16 %v541_v2  ;;  %v6234_v48 = vld [vmem:[%s5978_s23 + $0x58] sm:$0xf] }
  0x46   : > { %971 = vmatmul.bf16.gmra.mxu1 %v5475_v16  ;;  %1674 = vmatpush.bf16.msrb.mxu3 %v5533_v58  ;;  %v441_v16 = vld [vmem:[%s5978_s23 + $0x90] sm:$0xe]  ;;  %v588_v24 = vrot.slane %v586_v15, 4  ;;  %v638_v38 = vunpack.c.l.b16 %v534_v34  ;;  %v5539_v58 = vld [vmem:[%s7407_s1 + $0x108] sm:$0xff]  ;;  %v4514_v29 = vrot.slane %v429_v20, 9  ;;  %v5538_v33 = vld [vmem:[%s7407_s1 + $0x100] sm:$0xff] }
  0x47   : > { %2132 = vmatpush.bf16.msrb.mxu0 %v5541_v59  ;;  %v4520_v22 = vrot.slane %v441_v16, 9  ;;  %v5553_v59 = vld [vmem:[%s7407_s1 + $0x178] sm:$0xff]  ;;  %v600_v16 = vrot.slane %v398_v7, 5 }
  0x48   : > { %v590_v32 = vsel %vm6007_vm2, %v588_v24, %v589_v25  ;;  %2554 = vmatpush.bf16.msrb.mxu1 %v5553_v59  ;;  %v5506_v24 = vld [vmem:[%s7407_s1 + $0x80] sm:$0xff]  ;;  %v4522_v25 = vrot.slane %v445_v17, 9  ;;  %v5548_v59 = vld [vmem:[%s7407_s1 + $0x150] sm:$0xff] }
  0x49   : > { %1360 = vmatpush.bf16.msrb.mxu2 %v5508_v21  ;;  %v587_v31 = vsel %vm6007_vm2, %v4520_v22, %v586_v15  ;;  %v654_v36 = vunpack.c.l.b16 %v590_v32  ;;  %v5479_v15 = vld [vmem:[%s5978_s23 + $0x3c] sm:$0xff]  ;;  %v430_v21 = vld [vmem:[%s5978_s23 + $0x50] sm:$0x1]  ;;  %v5551_v32 = vld [vmem:[%s7407_s1 + $0x168] sm:$0xff] }
  0x4a   : > { %1675 = vmatpush.bf16.msrb.mxu3 %v5532_v26  ;;  %v653_v35 = vunpack.c.l.b16 %v587_v31  ;;  %v5552_v22 = vld [vmem:[%s7407_s1 + $0x170] sm:$0xff]  ;;  %v602_v26 = vrot.slane %v600_v16, 4  ;;  %v547_v31 = vrot.slane %v430_v21, 5  ;;  %v601_v34 = vsel %vm6007_vm2, %v4522_v25, %v600_v16 }
  0x4b   : > { %2133 = vmatpush.bf16.msrb.mxu0 %v5540_v27  ;;  %v603_v27 = vrot.slane %v446_v18, 5  ;;  %v5489_v21 = vld [vmem:[%s5978_s23 + $0xb4] sm:$0xff] }
  0x4c   : > { %v673_v41 = vpack.c.b16 %v654_v36, %v653_v35  ;;  %2555 = vmatpush.bf16.msrb.mxu1 %v5552_v22  ;;  %v1116_v22 = vrot.slane %v5988_v9, 6  ;;  %v5481_v25 = vld [vmem:[%s5978_s23 + $0x54] sm:$0xff] }
  0x4d   : > { %1361 = vmatpush.bf16.msrb.mxu2 %v5507_v53  ;;  %v604_v35 = vsel %vm6007_vm2, %v602_v26, %v603_v27  ;;  %v1047_v26 = vld [vmem:[%s5978_s23] sm:$0xc]  ;;  %v1048_v27 = vld [vmem:[%s5978_s23 + $0x8] sm:$0x3] }
  0x4e   : > { %1676 = vmatpush.bf16.msrb.mxu3 %v5531_v57  ;;  %v431_v57 = vld [vmem:[%s5978_s23 + $0x54] sm:$0xe] }
  0x4f   : > { %2134 = vmatpush.bf16.msrb.mxu0 %v5539_v58  ;;  %v432_v58 = vld [vmem:[%s5978_s23 + $0x5c] sm:$0x1]  ;;  %v4515_v1 = vrot.slane %v431_v57, 9 }
  0x50   : > { %2556 = vmatpush.bf16.msrb.mxu1 %v5551_v32  ;;  %v4988_v32 = vld [vmem:[%s5978_s23 + $0x18] sm:$0xc] }
  0x51   : > { %1362 = vmatpush.bf16.msrb.mxu2 %v5506_v24 }
  0x52   : > { %1677 = vmatpush.bf16.msrb.mxu3 %v5530_v28  ;;  %v4876_v28 = vld [vmem:[%s5978_s23 + $0x18] sm:$0xe] }
  0x53   : > { %2135 = vmatpush.bf16.msrb.mxu0 %v5538_v33  ;;  %v4989_v33 = vld [vmem:[%s5978_s23 + $0x20] sm:$0x3]  ;;  %v4924_v9 = vrot.slane %v4876_v28, 9 }
  0x54   : > { %799 = vmatmul.bf16.gmra.mxu2 %v671_v44  ;;  %759 = vmatmul.bf16.gmra.mxu0 %v663_v46  ;;  %v5486_v44 = vld [vmem:[%s5978_s23 + $0x90] sm:$0xff] }
  0x55   : > { %1016 = vmatmul.bf16.gmra.mxu3 %v5484_v45  ;;  %v665_v45 = vpack.c.b16 %v638_v38, %v637_v37  ;;  %v5478_v46 = vld [vmem:[%s5978_s23 + $0x30] sm:$0xff]  ;;  %v5550_v38 = vld [vmem:[%s7407_s1 + $0x160] sm:$0xff]  ;;  %2869 = vmatpush.bf16.msra.mxu2 %v5577_v60 }
  0x56   : > { %976 = vmatmul.bf16.gmra.mxu1 %v5476_v47  ;;  %v593_v47 = vrot.slane %v396_v39, 5  ;;  %v657_v39 = vunpack.c.l.b16 %v601_v34  ;;  %v4668_v34 = vrot.slane %v1047_v26, 10 }
  0x57   : > { %2557 = vmatpush.bf16.msrb.mxu1 %v5550_v38 }
  0x58   : > { %v595_v55 = vrot.slane %v593_v47, 4  ;;  %v594_v63 = vsel %vm6007_vm2, %v4521_v54, %v593_v47  ;;  %v5549_v47 = vld [vmem:[%s7407_s1 + $0x158] sm:$0xff]  ;;  %v447_v54 = vld [vmem:[%s5978_s23 + $0xb4] sm:$0xe] }
  0x59   : > { %v655_v3 = vunpack.c.l.b16 %v594_v63  ;;  %v4523_v61 = vrot.slane %v447_v54, 9 }
  0x5a   : > { %v597_v0 = vsel %vm6007_vm2, %v595_v55, %v596_v56  ;;  %v448_v55 = vld [vmem:[%s5978_s23 + $0xbc] sm:$0x1]  ;;  %v551_v56 = vrot.slane %v6234_v48, 5 }
  0x5b   : > { %v656_v4 = vunpack.c.l.b16 %v597_v0  ;;  %2558 = vmatpush.bf16.msrb.mxu1 %v5549_v47  ;;  %v610_v63 = vrot.slane %v448_v55, 5  ;;  %v5585_v0 = vld [vmem:[%s7407_s1 + $0x1f8] sm:$0xff] }
  0x5c   : > { %v553_v2 = vrot.slane %v551_v56, 4  ;;  %3327 = vmatpush.bf16.msra.mxu3 %v5585_v0  ;;  %v552_v7 = vsel %vm6007_vm2, %v4515_v1, %v551_v56  ;;  %v1049_v0 = vld [vmem:[%s5978_s23 + $0xc] sm:$0xc]  ;;  %v1123_v1 = vrot.slane %v6039_v42, 6 }
  0x5d   : > { %v643_v17 = vunpack.c.l.b16 %v552_v7 }
  0x5e   : > { %v1125_v42 = vrot.slane %v1123_v1, 4 }
  0x5f   : > { %2559 = vmatpush.bf16.msrb.mxu1 %v5548_v59  ;;  %v4880_v59 = vld [vmem:[%s5978_s23 + $0x28] sm:$0xf] }
  0x60   : > { %v2322_v7 = vrot.slane %v4880_v59, 6 }
  0x64   : > { %804 = vmatmul.bf16.gmra.mxu2 %v672_v10  ;;  %764 = vmatmul.bf16.gmra.mxu0 %v664_v13  ;;  %v6194_v10 = vld [vmem:[%s5978_s23 + $0x4c] sm:$0xf]  ;;  %v5487_v13 = vld [vmem:[%s5978_s23 + $0x9c] sm:$0xff] }
  0x65   : > { %1021 = vmatmul.bf16.gmra.mxu3 %v5485_v11  ;;  %v674_v11 = vpack.c.b16 %v656_v4, %v655_v3  ;;  %v544_v19 = vrot.slane %v6194_v10, 5  ;;  %v554_v3 = vrot.slane %v432_v58, 5  ;;  %v5547_v4 = vld [vmem:[%s7407_s1 + $0x148] sm:$0xff] }
  0x66   : > { %981 = vmatmul.bf16.gmra.mxu1 %v5477_v14  ;;  %v666_v14 = vpack.c.b16 %v640_v6, %v639_v5 }
  0x67   : > { %v546_v30 = vrot.slane %v544_v19, 4  ;;  %v545_v36 = vsel %vm6007_vm2, %v4514_v29, %v544_v19  ;;  %2560 = vmatpush.bf16.msrb.mxu1 %v5547_v4  ;;  %v4877_v19 = vld [vmem:[%s5978_s23 + $0x1c] sm:$0xf]  ;;  %v4878_v29 = vld [vmem:[%s5978_s23 + $0x20] sm:$0x1] }
  0x69   : > { %v548_v37 = vsel %vm6007_vm2, %v546_v30, %v547_v31  ;;  %v1889_v30 = vrot.slane %v4877_v19, 5  ;;  %v2315_v31 = vrot.slane %v4877_v19, 6 }
  0x74   : > { %809 = vmatmul.bf16.gmra.mxu2 %v673_v41  ;;  %769 = vmatmul.bf16.gmra.mxu0 %v665_v45  ;;  %v658_v41 = vunpack.c.l.b16 %v604_v35  ;;  %v642_v45 = vunpack.c.l.b16 %v548_v37  ;;  %v1118_v35 = vrot.slane %v1116_v22, 4  ;;  %v1892_v37 = vrot.slane %v4878_v29, 5 }
  0x75   : > { %1026 = vmatmul.bf16.gmra.mxu3 %v5486_v44  ;;  %v641_v44 = vunpack.c.l.b16 %v545_v36  ;;  %v1119_v36 = vrot.slane %v1048_v27, 6 }
  0x76   : > { %986 = vmatmul.bf16.gmra.mxu1 %v5478_v46  ;;  %v400_v46 = vld [vmem:[%s5978_s23 + $0xb8] sm:$0xf]  ;;  %v675_v49 = vpack.c.b16 %v658_v41, %v657_v39  ;;  %v1891_v39 = vrot.slane %v1889_v30, 4  ;;  %v5020_v41 = vrot.slane %v4988_v32, 10 }
  0x77   : > { %v667_v51 = vpack.c.b16 %v642_v45, %v641_v44  ;;  %v607_v53 = vrot.slane %v400_v46, 5  ;;  %v2317_v44 = vrot.slane %v2315_v31, 4  ;;  %v2318_v45 = vrot.slane %v4989_v33, 6 }
  0x78   : > { %v1117_v46 = vsel %vm6279_vm5, %v4668_v34, %v1116_v22  ;;  %v1120_v47 = vsel %vm6279_vm5, %v1118_v35, %v1119_v36 }
  0x79   : > { %v609_v62 = vrot.slane %v607_v53, 4  ;;  %v608_v5 = vsel %vm6007_vm2, %v4523_v61, %v607_v53  ;;  %v1243_v53 = vunpack.c.l.b16 %v1117_v46  ;;  %v1244_v54 = vunpack.c.l.b16 %v1120_v47  ;;  %v5514_v61 = vld [vmem:[%s5978_s23 + $0x18] sm:$0xff] }
  0x7b   : > { %v611_v6 = vsel %vm6007_vm2, %v609_v62, %v610_v63  ;;  %v1275_v60 = vpack.c.b16 %v1244_v54, %v1243_v53 }
  0x7c   : > { %v660_v16 = vunpack.c.l.b16 %v611_v6  ;;  %v4879_v6 = vld [vmem:[%s5978_s23 + $0x24] sm:$0xe] }
  0x7d   : > { %v4925_v19 = vrot.slane %v4879_v6, 9 }
  0x84   : > { %814 = vmatmul.bf16.gmra.mxu2 %v674_v11  ;;  %774 = vmatmul.bf16.gmra.mxu0 %v666_v14  ;;  %v555_v11 = vsel %vm6007_vm2, %v553_v2, %v554_v3  ;;  %v5593_v14 = vld [vmem:[%s7407_s1 + $0x238] sm:$0xff]  ;;  %v1896_v2 = vrot.slane %v4880_v59, 5  ;;  %v1130_v59 = vrot.slane %v6079_v12, 6 }
  0x85   : > { %1031 = vmatmul.bf16.gmra.mxu3 %v5487_v13  ;;  %v5546_v13 = vld [vmem:[%s7407_s1 + $0x140] sm:$0xff]  ;;  %v644_v18 = vunpack.c.l.b16 %v555_v11  ;;  %3753 = vmatpush.bf16.msra.mxu0 %v5593_v14 }
  0x86   : > { %991 = vmatmul.bf16.gmra.mxu1 %v5479_v15  ;;  %v659_v15 = vunpack.c.l.b16 %v608_v5  ;;  %v1050_v5 = vld [vmem:[%s5978_s23 + $0x14] sm:$0x3]  ;;  %v4990_v14 = vld [vmem:[%s5978_s23 + $0x24] sm:$0xc]  ;;  %v1897_v34 = vsel %vm6007_vm2, %v4925_v19, %v1896_v2 }
  0x87   : > { %2561 = vmatpush.bf16.msrb.mxu1 %v5546_v13  ;;  %v668_v24 = vpack.c.b16 %v644_v18, %v643_v17  ;;  %v4881_v13 = vld [vmem:[%s5978_s23 + $0x2c] sm:$0x1]  ;;  %v5576_v17 = vld [vmem:[%s7407_s1 + $0x1b0] sm:$0xff]  ;;  %v1126_v18 = vrot.slane %v1050_v5, 6  ;;  %v4993_v5 = vld [vmem:[%s5978_s23 + $0x38] sm:$0x3] }
  0x88   : > { %v676_v20 = vpack.c.b16 %v660_v16, %v659_v15  ;;  %v4991_v15 = vld [vmem:[%s5978_s23 + $0x2c] sm:$0x3]  ;;  %v4669_v16 = vrot.slane %v1049_v0, 10  ;;  %v1899_v22 = vrot.slane %v4881_v13, 5  ;;  %2870 = vmatpush.bf16.msra.mxu2 %v5576_v17  ;;  %v4882_v0 = vld [vmem:[%s5978_s23 + $0x30] sm:$0xe] }
  0x89   : > { %v2325_v26 = vrot.slane %v4991_v15, 6 }
  0x94   : > { %819 = vmatmul.bf16.gmra.mxu2 %v675_v49  ;;  %779 = vmatmul.bf16.gmra.mxu0 %v667_v51  ;;  %v1890_v49 = vsel %vm6007_vm2, %v4924_v9, %v1889_v30  ;;  %v2316_v51 = vsel %vm6279_vm5, %v5020_v41, %v2315_v31  ;;  %v1124_v30 = vsel %vm6279_vm5, %v4669_v16, %v1123_v1 }
  0x95   : > { %1036 = vmatmul.bf16.gmra.mxu3 %v5488_v50  ;;  %v1893_v50 = vsel %vm6007_vm2, %v1891_v39, %v1892_v37  ;;  %v2016_v55 = vunpack.c.l.b16 %v1890_v49  ;;  %v2442_v57 = vunpack.c.l.b16 %v2316_v51  ;;  %v1127_v31 = vsel %vm6279_vm5, %v1125_v42, %v1126_v18  ;;  %v5592_v39 = vld [vmem:[%s7407_s1 + $0x230] sm:$0xff] }
  0x96   : > { %996 = vmatmul.bf16.gmra.mxu1 %v5480_v52  ;;  %v2319_v52 = vsel %vm6279_vm5, %v2317_v44, %v2318_v45  ;;  %v2017_v56 = vunpack.c.l.b16 %v1893_v50  ;;  %v1245_v41 = vunpack.c.l.b16 %v1124_v30  ;;  %v1246_v44 = vunpack.c.l.b16 %v1127_v31  ;;  %3754 = vmatpush.bf16.msra.mxu0 %v5592_v39  ;;  %v4883_v50 = vld [vmem:[%s5978_s23 + $0x34] sm:$0xf]  ;;  %v4886_v39 = vld [vmem:[%s5978_s23 + $0x40] sm:$0xf] }
  0x97   : > { %v2443_v58 = vunpack.c.l.b16 %v2319_v52  ;;  %v2018_v45 = vunpack.c.l.b16 %v1897_v34  ;;  %v2329_v1 = vrot.slane %v4883_v50, 6  ;;  %v2332_v42 = vrot.slane %v4993_v5, 6 }
  0x98   : > { %v2048_v62 = vpack.c.b16 %v2017_v56, %v2016_v55  ;;  %v1276_v54 = vpack.c.b16 %v1246_v44, %v1245_v41  ;;  %v5515_v55 = vld [vmem:[%s5978_s23 + $0x24] sm:$0xff] }
  0x99   : > { %v2474_v63 = vpack.c.b16 %v2443_v58, %v2442_v57  ;;  %v1051_v58 = vld [vmem:[%s5978_s23 + $0x18] sm:$0xc]  ;;  %v2331_v17 = vrot.slane %v2329_v1, 4 }
  0x9a   : > { %v4670_v6 = vrot.slane %v1051_v58, 10  ;;  %v4885_v58 = vld [vmem:[%s5978_s23 + $0x3c] sm:$0xe] }
  0x9b   : > { %v2333_v30 = vsel %vm6279_vm5, %v2331_v17, %v2332_v42 }
  0xa4   : > { %824 = vmatmul.bf16.gmra.mxu2 %v676_v20  ;;  %784 = vmatmul.bf16.gmra.mxu0 %v668_v24  ;;  %v1898_v20 = vrot.slane %v1896_v2, 4  ;;  %v5021_v24 = vrot.slane %v4990_v14, 10  ;;  %v4926_v14 = vrot.slane %v4882_v0, 9 }
  0xa5   : > { %1041 = vmatmul.bf16.gmra.mxu3 %v5489_v21  ;;  %v5584_v21 = vld [vmem:[%s7407_s1 + $0x1f0] sm:$0xff] }
  0xa6   : > { %1001 = vmatmul.bf16.gmra.mxu1 %v5481_v25  ;;  %v2324_v25 = vrot.slane %v2322_v7, 4  ;;  %3328 = vmatpush.bf16.msra.mxu3 %v5584_v21  ;;  %v1900_v35 = vsel %vm6007_vm2, %v1898_v20, %v1899_v22  ;;  %v2323_v36 = vsel %vm6279_vm5, %v5021_v24, %v2322_v7  ;;  %v1132_v7 = vrot.slane %v1130_v59, 4 }
  0xa7   : > { %v2019_v46 = vunpack.c.l.b16 %v1900_v35  ;;  %v2444_v47 = vunpack.c.l.b16 %v2323_v36  ;;  %v1131_v21 = vsel %vm6279_vm5, %v4670_v6, %v1130_v59  ;;  %v2336_v59 = vrot.slane %v4886_v39, 6  ;;  %v5583_v6 = vld [vmem:[%s7407_s1 + $0x1e8] sm:$0xff] }
  0xa8   : > { %v2326_v9 = vsel %vm6279_vm5, %v2324_v25, %v2325_v26 }
  0xa9   : > { %v2445_v49 = vunpack.c.l.b16 %v2326_v9  ;;  %v2049_v56 = vpack.c.b16 %v2019_v46, %v2018_v45  ;;  %v2447_v9 = vunpack.c.l.b16 %v2333_v30 }
  0xaa   : > { %3329 = vmatpush.bf16.msra.mxu3 %v5583_v6 }
  0xab   : > { %v2475_v57 = vpack.c.b16 %v2445_v49, %v2444_v47  ;;  %v5516_v47 = vld [vmem:[%s5978_s23 + $0x30] sm:$0xff] }
  0xb1   : > { %v750_v3 = vpop.f32.mrf.mxu0 }
  0xb3   : > { %v967_v4 = vpop.f32.mrf.mxu1 }
  0xb4   : > { %v6301_v11 = vadd.f32 %v967_v4, %v750_v3  ;;  %1363 = vmatmul.bf16.vlgmr.msrb.gmra.mxu2 %v1275_v60  ;;  %2136 = vmatmul.bf16.vlgmr.msrb.gmra.mxu0 %v2048_v62  ;;  %v1903_v60 = vrot.slane %v4883_v50, 5  ;;  %v4884_v3 = vld [vmem:[%s5978_s23 + $0x38] sm:$0x1]  ;;  %v4992_v4 = vld [vmem:[%s5978_s23 + $0x30] sm:$0xc] }
  0xb5   : > { %1678 = vmatmul.bf16.vlgmr.msrb.gmra.mxu3 %v5514_v61  ;;  %v1906_v15 = vrot.slane %v4884_v3, 5  ;;  %v5022_v16 = vrot.slane %v4992_v4, 10  ;;  %v4927_v4 = vrot.slane %v4885_v58, 9  ;;  %v4888_v58 = vld [vmem:[%s5978_s23 + $0x48] sm:$0xe] }
  0xb6   : > { %2562 = vmatmul.bf16.vlgmr.msrb.gmra.mxu1 %v2474_v63  ;;  %v1052_v63 = vld [vmem:[%s5978_s23 + $0x20] sm:$0x3]  ;;  %v1905_v12 = vrot.slane %v1903_v60, 4  ;;  %v1904_v26 = vsel %vm6007_vm2, %v4926_v14, %v1903_v60  ;;  %v2338_v14 = vrot.slane %v2336_v59, 4 }
  0xb7   : > { %v790_v27 = vpop.f32.mrf.mxu2  ;;  %v1133_v13 = vrot.slane %v1052_v63, 6  ;;  %v2020_v34 = vunpack.c.l.b16 %v1904_v26  ;;  %v4995_v63 = vld [vmem:[%s5978_s23 + $0x44] sm:$0x3] }
  0xb8   : > { %v1007_v28 = vpop.f32.mrf.mxu3 }
  0xb9   : > { %v6312_v29 = vadd.f32 %v1007_v28, %v790_v27  ;;  %v752_v32 = vpop.f32.mrf.mxu0  ;;  %v1134_v22 = vsel %vm6279_vm5, %v1132_v7, %v1133_v13  ;;  %v1907_v27 = vsel %vm6007_vm2, %v1905_v12, %v1906_v15  ;;  %v2330_v28 = vsel %vm6279_vm5, %v5022_v16, %v2329_v1  ;;  %v5575_v1 = vld [vmem:[%s7407_s1 + $0x1a8] sm:$0xff] }
  0xba   : > { %v2021_v35 = vunpack.c.l.b16 %v1907_v27  ;;  %v2446_v36 = vunpack.c.l.b16 %v2330_v28  ;;  %v2339_v12 = vrot.slane %v4995_v63, 6  ;;  %2871 = vmatpush.bf16.msra.mxu2 %v5575_v1  ;;  %v5591_v28 = vld [vmem:[%s7407_s1 + $0x228] sm:$0xff] }
  0xbb   : > { %v969_v33 = vpop.f32.mrf.mxu1  ;;  %3755 = vmatpush.bf16.msra.mxu0 %v5591_v28  ;;  %v4996_v63 = vld [vmem:[%s5978_s23 + $0x48] sm:$0xc] }
  0xbc   : > { %v6326_v37 = vadd.f32 %v969_v33, %v752_v32  ;;  %v1247_v32 = vunpack.c.l.b16 %v1131_v21  ;;  %v1248_v33 = vunpack.c.l.b16 %v1134_v22  ;;  %v2050_v49 = vpack.c.b16 %v2021_v35, %v2020_v34 }
  0xbd   : > { %v2476_v50 = vpack.c.b16 %v2447_v9, %v2446_v36  ;;  %v2340_v26 = vsel %vm6279_vm5, %v2338_v14, %v2339_v12  ;;  %v4889_v9 = vld [vmem:[%s5978_s23 + $0x4c] sm:$0xf]  ;;  %v5024_v6 = vrot.slane %v4996_v63, 10  ;;  %v4893_v63 = vld [vmem:[%s5978_s23 + $0x5c] sm:$0x1] }
  0xbe   : > { %v1277_v46 = vpack.c.b16 %v1248_v33, %v1247_v32  ;;  %v2449_v36 = vunpack.c.l.b16 %v2340_v26 }
  0xbf   : > { %v792_v51 = vpop.f32.mrf.mxu2 }
  0xc0   : > { %v1009_v52 = vpop.f32.mrf.mxu3 }
  0xc1   : > { %v6332_v53 = vadd.f32 %v1009_v52, %v792_v51  ;;  %v755_v61 = vpop.f32.mrf.mxu0  ;;  %v1053_v51 = vld [vmem:[%s5978_s23 + $0x24] sm:$0xc]  ;;  %v1137_v52 = vrot.slane %v6107_v43, 6 }
  0xc2   : > { %v4671_v0 = vrot.slane %v1053_v51, 10 }
  0xc3   : > { %v972_v62 = vpop.f32.mrf.mxu1  ;;  %v1139_v43 = vrot.slane %v1137_v52, 4 }
  0xc4   : > { %v6339_v2 = vadd.f32 %v972_v62, %v755_v61  ;;  %1368 = vmatmul.bf16.gmra.mxu2 %v1276_v54  ;;  %2141 = vmatmul.bf16.gmra.mxu0 %v2049_v56  ;;  %v1910_v54 = vrot.slane %v4886_v39, 5  ;;  %v4887_v61 = vld [vmem:[%s5978_s23 + $0x44] sm:$0x1]  ;;  %v4994_v62 = vld [vmem:[%s5978_s23 + $0x3c] sm:$0xc]  ;;  %v1138_v42 = vsel %vm6279_vm5, %v4671_v0, %v1137_v52 }
  0xc5   : > { %1683 = vmatmul.bf16.gmra.mxu3 %v5515_v55  ;;  %v1913_v7 = vrot.slane %v4887_v61, 5  ;;  %v5023_v13 = vrot.slane %v4994_v62, 10  ;;  %v1249_v30 = vunpack.c.l.b16 %v1138_v42  ;;  %v1055_v52 = vld [vmem:[%s5978_s23 + $0x30] sm:$0xc]  ;;  %v4890_v62 = vld [vmem:[%s5978_s23 + $0x50] sm:$0x1] }
  0xc6   : > { %2567 = vmatmul.bf16.gmra.mxu1 %v2475_v57  ;;  %v1054_v57 = vld [vmem:[%s5978_s23 + $0x2c] sm:$0x3]  ;;  %v1912_v5 = vrot.slane %v1910_v54, 4  ;;  %v1911_v22 = vsel %vm6007_vm2, %v4927_v4, %v1910_v54  ;;  %v1917_v54 = vrot.slane %v4889_v9, 5  ;;  %v4997_v0 = vld [vmem:[%s5978_s23 + $0x50] sm:$0x3] }
  0xc7   : > { %v795_v18 = vpop.f32.mrf.mxu2  ;;  %v1140_v3 = vrot.slane %v1054_v57, 6  ;;  %v2022_v33 = vunpack.c.l.b16 %v1911_v22  ;;  %v1056_v57 = vld [vmem:[%s5978_s23 + $0x38] sm:$0x3]  ;;  %v4672_v1 = vrot.slane %v1055_v52, 10  ;;  %v1057_v52 = vld [vmem:[%s5978_s23 + $0x3c] sm:$0xc] }
  0xc8   : > { %v1012_v19 = vpop.f32.mrf.mxu3  ;;  %v1919_v4 = vrot.slane %v1917_v54, 4 }
  0xc9   : > { %v6344_v20 = vadd.f32 %v1012_v19, %v795_v18  ;;  %v757_v24 = vpop.f32.mrf.mxu0  ;;  %v1141_v18 = vsel %vm6279_vm5, %v1139_v43, %v1140_v3  ;;  %v1147_v43 = vrot.slane %v1056_v57, 6  ;;  %v4928_v3 = vrot.slane %v4888_v58, 9  ;;  %v1058_v57 = vld [vmem:[%s5978_s23 + $0x44] sm:$0x3]  ;;  %v4891_v58 = vld [vmem:[%s5978_s23 + $0x54] sm:$0xe] }
  0xca   : > { %v1250_v32 = vunpack.c.l.b16 %v1141_v18 }
  0xcb   : > { %v974_v25 = vpop.f32.mrf.mxu1 }
  0xcc   : > { %v6358_v31 = vadd.f32 %v974_v25, %v757_v24  ;;  %v1914_v24 = vsel %vm6007_vm2, %v1912_v5, %v1913_v7  ;;  %v2337_v25 = vsel %vm6279_vm5, %v5023_v13, %v2336_v59  ;;  %v2343_v59 = vrot.slane %v4889_v9, 6 }
  0xcd   : > { %v2023_v34 = vunpack.c.l.b16 %v1914_v24  ;;  %v2448_v35 = vunpack.c.l.b16 %v2337_v25  ;;  %v1920_v5 = vrot.slane %v4890_v62, 5  ;;  %v2346_v13 = vrot.slane %v4997_v0, 6  ;;  %v4998_v0 = vld [vmem:[%s5978_s23 + $0x54] sm:$0xc] }
  0xce   : > { %v2345_v7 = vrot.slane %v2343_v59, 4  ;;  %v2344_v24 = vsel %vm6279_vm5, %v5024_v6, %v2343_v59  ;;  %v5582_v6 = vld [vmem:[%s7407_s1 + $0x1e0] sm:$0xff] }
  0xcf   : > { %v797_v41 = vpop.f32.mrf.mxu2  ;;  %v2477_v51 = vpack.c.b16 %v2449_v36, %v2448_v35  ;;  %v1921_v22 = vsel %vm6007_vm2, %v1919_v4, %v1920_v5  ;;  %v4892_v36 = vld [vmem:[%s5978_s23 + $0x58] sm:$0xf]  ;;  %v4929_v4 = vrot.slane %v4891_v58, 9  ;;  %3330 = vmatpush.bf16.msra.mxu3 %v5582_v6  ;;  %v5001_v6 = vld [vmem:[%s5978_s23 + $0x68] sm:$0x3] }
  0xd0   : > { %v1014_v44 = vpop.f32.mrf.mxu3  ;;  %v2347_v25 = vsel %vm6279_vm5, %v2345_v7, %v2346_v13  ;;  %v2350_v59 = vrot.slane %v4892_v36, 6  ;;  %v1927_v7 = vrot.slane %v4893_v63, 5  ;;  %v5025_v13 = vrot.slane %v4998_v0, 10 }
  0xd1   : > { %v6361_v45 = vadd.f32 %v1014_v44, %v797_v41  ;;  %v760_v55 = vpop.f32.mrf.mxu0  ;;  %v2451_v35 = vunpack.c.l.b16 %v2347_v25 }
  0xd3   : > { %v977_v56 = vpop.f32.mrf.mxu1 }
  0xd4   : > { %v6368_v60 = vadd.f32 %v977_v56, %v760_v55  ;;  %1373 = vmatmul.bf16.gmra.mxu2 %v1277_v46  ;;  %2146 = vmatmul.bf16.gmra.mxu0 %v2050_v49  ;;  %v1278_v46 = vpack.c.b16 %v1250_v32, %v1249_v30  ;;  %v1144_v49 = vrot.slane %v6135_v8, 6 }
  0xd5   : > { %1688 = vmatmul.bf16.gmra.mxu3 %v5516_v47  ;;  %v5517_v47 = vld [vmem:[%s5978_s23 + $0x3c] sm:$0xff] }
  0xd6   : > { %2572 = vmatmul.bf16.gmra.mxu1 %v2476_v50  ;;  %v2051_v50 = vpack.c.b16 %v2023_v34, %v2022_v33  ;;  %v1146_v8 = vrot.slane %v1144_v49, 4  ;;  %v2025_v33 = vunpack.c.l.b16 %v1921_v22  ;;  %v2450_v34 = vunpack.c.l.b16 %v2344_v24 }
  0xd7   : > { %v800_v15 = vpop.f32.mrf.mxu2 }
  0xd8   : > { %v1017_v16 = vpop.f32.mrf.mxu3  ;;  %v1148_v42 = vsel %vm6279_vm5, %v1146_v8, %v1147_v43  ;;  %v4673_v8 = vrot.slane %v1057_v52, 10 }
  0xd9   : > { %v6379_v17 = vadd.f32 %v1017_v16, %v800_v15  ;;  %v762_v19 = vpop.f32.mrf.mxu0  ;;  %v1145_v16 = vsel %vm6279_vm5, %v4672_v1, %v1144_v49  ;;  %v1252_v30 = vunpack.c.l.b16 %v1148_v42  ;;  %v1151_v49 = vrot.slane %v6163_v40, 6  ;;  %v4999_v1 = vld [vmem:[%s5978_s23 + $0x5c] sm:$0x3]  ;;  %v5574_v40 = vld [vmem:[%s7407_s1 + $0x1a0] sm:$0xff] }
  0xda   : > { %v1251_v28 = vunpack.c.l.b16 %v1145_v16  ;;  %2872 = vmatpush.bf16.msra.mxu2 %v5574_v40  ;;  %v4894_v40 = vld [vmem:[%s5978_s23 + $0x60] sm:$0xe] }
  0xdb   : > { %v979_v21 = vpop.f32.mrf.mxu1  ;;  %v1153_v43 = vrot.slane %v1151_v49, 4 }
  0xdc   : > { %v6393_v27 = vadd.f32 %v979_v21, %v762_v19  ;;  %v1918_v21 = vsel %vm6007_vm2, %v4928_v3, %v1917_v54  ;;  %v1924_v54 = vrot.slane %v4892_v36, 5  ;;  %v1154_v3 = vrot.slane %v1058_v57, 6 }
  0xdd   : > { %v2024_v32 = vunpack.c.l.b16 %v1918_v21 }
  0xde   : > { %v1926_v5 = vrot.slane %v1924_v54, 4  ;;  %v1155_v21 = vsel %vm6279_vm5, %v1153_v43, %v1154_v3  ;;  %v1925_v25 = vsel %vm6007_vm2, %v4929_v4, %v1924_v54  ;;  %v4896_v4 = vld [vmem:[%s5978_s23 + $0x68] sm:$0x1] }
  0xdf   : > { %v802_v39 = vpop.f32.mrf.mxu2  ;;  %v1254_v36 = vunpack.c.l.b16 %v1155_v21  ;;  %v2360_v21 = vrot.slane %v5001_v6, 6 }
  0xe0   : > { %v1019_v41 = vpop.f32.mrf.mxu3 }
  0xe1   : > { %v6399_v44 = vadd.f32 %v1019_v41, %v802_v39  ;;  %v765_v55 = vpop.f32.mrf.mxu0 }
  0xe3   : > { %v982_v56 = vpop.f32.mrf.mxu1 }
  0xe4   : > { %v6406_v61 = vadd.f32 %v982_v56, %v765_v55  ;;  %1378 = vmatmul.bf16.gmra.mxu2 %v1278_v46  ;;  %2151 = vmatmul.bf16.gmra.mxu0 %v2051_v50  ;;  %v1279_v46 = vpack.c.b16 %v1252_v30, %v1251_v28  ;;  %v2052_v50 = vpack.c.b16 %v2025_v33, %v2024_v32 }
  0xe5   : > { %1693 = vmatmul.bf16.gmra.mxu3 %v5517_v47  ;;  %v5518_v47 = vld [vmem:[%s5978_s23 + $0x48] sm:$0xff]  ;;  %v1928_v28 = vsel %vm6007_vm2, %v1926_v5, %v1927_v7  ;;  %v2351_v30 = vsel %vm6279_vm5, %v5025_v13, %v2350_v59  ;;  %v5000_v5 = vld [vmem:[%s5978_s23 + $0x60] sm:$0xc] }
  0xe6   : > { %2577 = vmatmul.bf16.gmra.mxu1 %v2477_v51  ;;  %v2478_v51 = vpack.c.b16 %v2451_v35, %v2450_v34  ;;  %v5590_v34 = vld [vmem:[%s7407_s1 + $0x220] sm:$0xff] }
  0xe7   : > { %v805_v14 = vpop.f32.mrf.mxu2  ;;  %3756 = vmatpush.bf16.msra.mxu0 %v5590_v34 }
  0xe8   : > { %v1022_v12 = vpop.f32.mrf.mxu3 }
  0xe9   : > { %v6411_v15 = vadd.f32 %v1022_v12, %v805_v14  ;;  %v767_v18 = vpop.f32.mrf.mxu0  ;;  %v2352_v14 = vrot.slane %v2350_v59, 4  ;;  %v2353_v12 = vrot.slane %v4999_v1, 6  ;;  %v1059_v59 = vld [vmem:[%s5978_s23 + $0x48] sm:$0xc] }
  0xea   : > { %v4674_v7 = vrot.slane %v1059_v59, 10 }
  0xeb   : > { %v984_v19 = vpop.f32.mrf.mxu1  ;;  %v2354_v32 = vsel %vm6279_vm5, %v2352_v14, %v2353_v12  ;;  %v4930_v14 = vrot.slane %v4894_v40, 9 }
  0xec   : > { %v6425_v26 = vadd.f32 %v984_v19, %v767_v18  ;;  %v1152_v19 = vsel %vm6279_vm5, %v4673_v8, %v1151_v49  ;;  %v4895_v49 = vld [vmem:[%s5978_s23 + $0x64] sm:$0xf]  ;;  %v1060_v8 = vld [vmem:[%s5978_s23 + $0x50] sm:$0x3] }
  0xed   : > { %v1253_v35 = vunpack.c.l.b16 %v1152_v19  ;;  %v1931_v63 = vrot.slane %v4895_v49, 5  ;;  %v2357_v43 = vrot.slane %v4895_v49, 6  ;;  %v1161_v13 = vrot.slane %v1060_v8, 6 }
  0xef   : > { %v807_v9 = vpop.f32.mrf.mxu2  ;;  %v1280_v54 = vpack.c.b16 %v1254_v36, %v1253_v35  ;;  %v1933_v12 = vrot.slane %v1931_v63, 4  ;;  %v2359_v19 = vrot.slane %v2357_v43, 4  ;;  %v1932_v35 = vsel %vm6007_vm2, %v4930_v14, %v1931_v63 }
  0xf0   : > { %v1024_v39 = vpop.f32.mrf.mxu3 }
  0xf1   : > { %v6428_v41 = vadd.f32 %v1024_v39, %v807_v9  ;;  %v770_v55 = vpop.f32.mrf.mxu0  ;;  %v2026_v9 = vunpack.c.l.b16 %v1925_v25  ;;  %v2027_v39 = vunpack.c.l.b16 %v1928_v28 }
  0xf3   : > { %v987_v56 = vpop.f32.mrf.mxu1  ;;  %v2053_v57 = vpack.c.b16 %v2027_v39, %v2026_v9  ;;  %v2361_v39 = vsel %vm6279_vm5, %v2359_v19, %v2360_v21 }
  0xf4   : > { %v6435_v62 = vadd.f32 %v987_v56, %v770_v55  ;;  %1383 = vmatmul.bf16.gmra.mxu2 %v1279_v46  ;;  %2156 = vmatmul.bf16.gmra.mxu0 %v2052_v50  ;;  %v2452_v46 = vunpack.c.l.b16 %v2351_v30  ;;  %v5519_v55 = vld [vmem:[%s5978_s23 + $0x54] sm:$0xff]  ;;  %v1158_v56 = vrot.slane %v6194_v10, 6 }
  0xf5   : > { %1698 = vmatmul.bf16.gmra.mxu3 %v5518_v47  ;;  %v2453_v47 = vunpack.c.l.b16 %v2354_v32 }
  0xf6   : > { %2582 = vmatmul.bf16.gmra.mxu1 %v2478_v51  ;;  %v1160_v10 = vrot.slane %v1158_v56, 4  ;;  %v1159_v28 = vsel %vm6279_vm5, %v4674_v7, %v1158_v56  ;;  %v4898_v56 = vld [vmem:[%s5978_s23 + $0x70] sm:$0xf]  ;;  %v1062_v7 = vld [vmem:[%s5978_s23 + $0x5c] sm:$0x3] }
  0xf7   : > { %v810_v16 = vpop.f32.mrf.mxu2  ;;  %v2479_v58 = vpack.c.b16 %v2453_v47, %v2452_v46  ;;  %v1255_v47 = vunpack.c.l.b16 %v1159_v28 }
  0xf8   : > { %v1027_v42 = vpop.f32.mrf.mxu3  ;;  %v1162_v30 = vsel %vm6279_vm5, %v1160_v10, %v1161_v13  ;;  %v4897_v10 = vld [vmem:[%s5978_s23 + $0x6c] sm:$0xe]  ;;  %v2364_v13 = vrot.slane %v4898_v56, 6 }
  0xf9   : > { %v6446_v18 = vadd.f32 %v1027_v42, %v810_v16  ;;  %v772_v22 = vpop.f32.mrf.mxu0  ;;  %v1934_v16 = vrot.slane %v4896_v4, 5  ;;  %v5026_v42 = vrot.slane %v5000_v5, 10  ;;  %v1256_v49 = vunpack.c.l.b16 %v1162_v30  ;;  %v5581_v30 = vld [vmem:[%s7407_s1 + $0x1d8] sm:$0xff] }
  0xfa   : > { %v1938_v4 = vrot.slane %v4898_v56, 5  ;;  %3331 = vmatpush.bf16.msra.mxu3 %v5581_v30 }
  0xfb   : > { %v989_v24 = vpop.f32.mrf.mxu1  ;;  %v1935_v36 = vsel %vm6007_vm2, %v1933_v12, %v1934_v16  ;;  %v2358_v9 = vsel %vm6279_vm5, %v5026_v42, %v2357_v43  ;;  %v1281_v63 = vpack.c.b16 %v1256_v49, %v1255_v47  ;;  %v1061_v43 = vld [vmem:[%s5978_s23 + $0x54] sm:$0xc]  ;;  %v4899_v12 = vld [vmem:[%s5978_s23 + $0x74] sm:$0x1]  ;;  %v5002_v16 = vld [vmem:[%s5978_s23 + $0x6c] sm:$0xc] }
  0xfc   : > { %v6460_v33 = vadd.f32 %v989_v24, %v772_v22  ;;  %v5003_v42 = vld [vmem:[%s5978_s23 + $0x74] sm:$0x3]  ;;  %v4675_v19 = vrot.slane %v1061_v43, 10  ;;  %v1940_v28 = vrot.slane %v1938_v4, 4 }
  0xff   : > { %v812_v50 = vpop.f32.mrf.mxu2 }
 0x100   : > { %v1029_v51 = vpop.f32.mrf.mxu3 }
 0x101   : > { %v6466_v52 = vadd.f32 %v1029_v51, %v812_v50  ;;  %v775_v0 = vpop.f32.mrf.mxu0  ;;  %v2028_v50 = vunpack.c.l.b16 %v1932_v35  ;;  %v2029_v51 = vunpack.c.l.b16 %v1935_v36  ;;  %v2366_v35 = vrot.slane %v2364_v13, 4 }
 0x102   : > { %v2367_v36 = vrot.slane %v5003_v42, 6  ;;  %v5760_v42 = vld [vmem:[%s5978_s23 + $0x64] sm:$0xf] }
 0x103   : > { %v992_v1 = vpop.f32.mrf.mxu1  ;;  %v2054_v8 = vpack.c.b16 %v2029_v51, %v2028_v50 }
 0x104   : > { %v6473_v3 = vadd.f32 %v992_v1, %v775_v0  ;;  %1388 = vmatmul.bf16.gmra.mxu2 %v1280_v54  ;;  %2161 = vmatmul.bf16.gmra.mxu0 %v2053_v57  ;;  %v2454_v54 = vunpack.c.l.b16 %v2358_v9  ;;  %v5520_v0 = vld [vmem:[%s5978_s23 + $0x60] sm:$0xff]  ;;  %v1165_v1 = vrot.slane %v6234_v48, 6  ;;  %v5573_v48 = vld [vmem:[%s7407_s1 + $0x198] sm:$0xff] }
 0x105   : > { %1703 = vmatmul.bf16.gmra.mxu3 %v5519_v55  ;;  %v2455_v55 = vunpack.c.l.b16 %v2361_v39  ;;  %2873 = vmatpush.bf16.msra.mxu2 %v5573_v48 }
 0x106   : > { %2587 = vmatmul.bf16.gmra.mxu1 %v2479_v58  ;;  %v1167_v21 = vrot.slane %v1165_v1, 4  ;;  %v1166_v49 = vsel %vm6279_vm5, %v4675_v19, %v1165_v1  ;;  %v1172_v19 = vrot.slane %v5760_v42, 6 }
 0x107   : > { %v815_v22 = vpop.f32.mrf.mxu2  ;;  %v2480_v40 = vpack.c.b16 %v2455_v55, %v2454_v54 }
 0x108   : > { %v1032_v24 = vpop.f32.mrf.mxu3 }
 0x109   : > { %v6478_v25 = vadd.f32 %v1032_v24, %v815_v22  ;;  %v777_v32 = vpop.f32.mrf.mxu0  ;;  %v1168_v22 = vrot.slane %v1062_v7, 6  ;;  %v4931_v24 = vrot.slane %v4897_v10, 9 }
 0x10b   : > { %v994_v34 = vpop.f32.mrf.mxu1  ;;  %v1169_v50 = vsel %vm6279_vm5, %v1167_v21, %v1168_v22  ;;  %v1939_v55 = vsel %vm6007_vm2, %v4931_v24, %v1938_v4  ;;  %v1063_v22 = vld [vmem:[%s5978_s23 + $0x60] sm:$0xc] }
 0x10c   : > { %v6492_v46 = vadd.f32 %v994_v34, %v777_v32  ;;  %v1941_v32 = vrot.slane %v4899_v12, 5  ;;  %v5027_v34 = vrot.slane %v5002_v16, 10  ;;  %v1258_v1 = vunpack.c.l.b16 %v1169_v50  ;;  %v5521_v16 = vld [vmem:[%s5978_s23 + $0x6c] sm:$0xff] }
 0x10d   : > { %v4676_v50 = vrot.slane %v1063_v22, 10 }
 0x10e   : > { %v1942_v56 = vsel %vm6007_vm2, %v1940_v28, %v1941_v32  ;;  %v1064_v32 = vld [vmem:[%s5978_s23 + $0x68] sm:$0x3] }
 0x10f   : > { %v817_v57 = vpop.f32.mrf.mxu2 }
 0x110   : > { %v1034_v58 = vpop.f32.mrf.mxu3 }
 0x111   : > { %v6495_v59 = vadd.f32 %v1034_v58, %v817_v57  ;;  %v780_v5 = vpop.f32.mrf.mxu0  ;;  %v2365_v57 = vsel %vm6279_vm5, %v5027_v34, %v2364_v13  ;;  %v2368_v58 = vsel %vm6279_vm5, %v2366_v35, %v2367_v36  ;;  %v4900_v34 = vld [vmem:[%s5978_s23 + $0x78] sm:$0xe] }
 0x112   : > { %v2456_v43 = vunpack.c.l.b16 %v2365_v57  ;;  %v2457_v4 = vunpack.c.l.b16 %v2368_v58 }
 0x113   : > { %v997_v6 = vpop.f32.mrf.mxu1 }
 0x114   : > { %v6502_v14 = vadd.f32 %v997_v6, %v780_v5  ;;  %1393 = vmatmul.bf16.gmra.mxu2 %v1281_v63  ;;  %2166 = vmatmul.bf16.gmra.mxu0 %v2054_v8  ;;  %v2030_v8 = vunpack.c.l.b16 %v1939_v55  ;;  %v4901_v5 = vld [vmem:[%s5978_s23 + $0x7c] sm:$0xf]  ;;  %v2481_v21 = vpack.c.b16 %v2457_v4, %v2456_v43  ;;  %v4932_v55 = vrot.slane %v4900_v34, 9 }
 0x115   : > { %1708 = vmatmul.bf16.gmra.mxu3 %v5520_v0  ;;  %v1257_v0 = vunpack.c.l.b16 %v1166_v49  ;;  %v5589_v6 = vld [vmem:[%s7407_s1 + $0x218] sm:$0xff]  ;;  %v1945_v24 = vrot.slane %v4901_v5, 5  ;;  %v2371_v35 = vrot.slane %v4901_v5, 6  ;;  %v5005_v49 = vld [vmem:[%s5978_s23 + $0x80] sm:$0x3]  ;;  %v1173_v4 = vsel %vm6279_vm5, %v4676_v50, %v1172_v19 }
 0x116   : > { %2592 = vmatmul.bf16.gmra.mxu1 %v2480_v40  ;;  %v2031_v40 = vunpack.c.l.b16 %v1942_v56  ;;  %3757 = vmatpush.bf16.msra.mxu0 %v5589_v6  ;;  %v5601_v34 = vld [vmem:[%s7410_s4 + $0x38] sm:$0xff] }
 0x117   : > { %v820_v9 = vpop.f32.mrf.mxu2  ;;  %v1282_v12 = vpack.c.b16 %v1258_v1, %v1257_v0  ;;  %v1947_v56 = vrot.slane %v1945_v24, 4  ;;  %v2373_v0 = vrot.slane %v2371_v35, 4  ;;  %v2374_v1 = vrot.slane %v5005_v49, 6  ;;  %v5522_v50 = vld [vmem:[%s5978_s23 + $0x78] sm:$0xff]  ;;  %4058 = vmatpush.bf16.msra.mxu1 %v5601_v34 }
 0x118   : > { %v1037_v39 = vpop.f32.mrf.mxu3  ;;  %v2055_v48 = vpack.c.b16 %v2031_v40, %v2030_v8 }
 0x119   : > { %v6513_v47 = vadd.f32 %v1037_v39, %v820_v9  ;;  %v782_v51 = vpop.f32.mrf.mxu0  ;;  %v4902_v9 = vld [vmem:[%s5978_s23 + $0x80] sm:$0x1]  ;;  %v5004_v39 = vld [vmem:[%s5978_s23 + $0x78] sm:$0xc]  ;;  %v2375_v42 = vsel %vm6279_vm5, %v2373_v0, %v2374_v1 }
 0x11a   : > { %v1948_v57 = vrot.slane %v4902_v9, 5  ;;  %v5028_v58 = vrot.slane %v5004_v39, 10 }
 0x11b   : > { %v999_v54 = vpop.f32.mrf.mxu1 }
 0x11c   : > { %v6527_v63 = vadd.f32 %v999_v54, %v782_v51  ;;  %v1174_v51 = vrot.slane %v1172_v19, 4  ;;  %v1175_v54 = vrot.slane %v1064_v32, 6  ;;  %v4904_v32 = vld [vmem:[%s5978_s23 + $0x88] sm:$0xf] }
 0x11e   : > { %v1176_v5 = vsel %vm6279_vm5, %v1174_v51, %v1175_v54  ;;  %v5761_v51 = vld [vmem:[%s5978_s23 + $0x70] sm:$0xf] }
 0x11f   : > { %v822_v7 = vpop.f32.mrf.mxu2  ;;  %v1179_v54 = vrot.slane %v5761_v51, 6 }
 0x120   : > { %v1039_v10 = vpop.f32.mrf.mxu3 }
 0x121   : > { %v6533_v13 = vadd.f32 %v1039_v10, %v822_v7  ;;  %v785_v28 = vpop.f32.mrf.mxu0  ;;  %v1946_v10 = vsel %vm6007_vm2, %v4932_v55, %v1945_v24  ;;  %v2459_v24 = vunpack.c.l.b16 %v2375_v42 }
 0x122   : > { %v2032_v22 = vunpack.c.l.b16 %v1946_v10 }
 0x123   : > { %v1002_v30 = vpop.f32.mrf.mxu1 }
 0x124   : > { %v6540_v36 = vadd.f32 %v1002_v30, %v785_v28  ;;  %1398 = vmatmul.bf16.gmra.mxu2 %v1282_v12  ;;  %2171 = vmatmul.bf16.gmra.mxu0 %v2055_v48  ;;  %v1949_v12 = vsel %vm6007_vm2, %v1947_v56, %v1948_v57  ;;  %v1259_v48 = vunpack.c.l.b16 %v1173_v4  ;;  %v1065_v57 = vld [vmem:[%s5978_s23 + $0x6c] sm:$0xc]  ;;  %v2378_v4 = vrot.slane %v4904_v32, 6 }
 0x125   : > { %1713 = vmatmul.bf16.gmra.mxu3 %v5521_v16  ;;  %v2372_v16 = vsel %vm6279_vm5, %v5028_v58, %v2371_v35  ;;  %v2033_v28 = vunpack.c.l.b16 %v1949_v12  ;;  %v1952_v58 = vrot.slane %v4904_v32, 5  ;;  %v4677_v10 = vrot.slane %v1065_v57, 10  ;;  %v5572_v12 = vld [vmem:[%s7407_s1 + $0x190] sm:$0xff] }
 0x126   : > { %2597 = vmatmul.bf16.gmra.mxu1 %v2481_v21  ;;  %v1260_v21 = vunpack.c.l.b16 %v1176_v5  ;;  %v2458_v30 = vunpack.c.l.b16 %v2372_v16  ;;  %v4905_v5 = vld [vmem:[%s5978_s23 + $0x8c] sm:$0x1]  ;;  %v1181_v16 = vrot.slane %v1179_v54, 4  ;;  %2874 = vmatpush.bf16.msra.mxu2 %v5572_v12  ;;  %v5580_v32 = vld [vmem:[%s7407_s1 + $0x1d0] sm:$0xff] }
 0x127   : > { %v825_v8 = vpop.f32.mrf.mxu2  ;;  %v2056_v55 = vpack.c.b16 %v2033_v28, %v2032_v22  ;;  %v1955_v22 = vrot.slane %v4905_v5, 5  ;;  %3332 = vmatpush.bf16.msra.mxu3 %v5580_v32 }
 0x128   : > { %v1042_v40 = vpop.f32.mrf.mxu3  ;;  %v1283_v49 = vpack.c.b16 %v1260_v21, %v1259_v48  ;;  %v2482_v56 = vpack.c.b16 %v2459_v24, %v2458_v30  ;;  %v1954_v21 = vrot.slane %v1952_v58, 4  ;;  %v2380_v30 = vrot.slane %v2378_v4, 4 }
 0x129   : > { %v6545_v43 = vadd.f32 %v1042_v40, %v825_v8  ;;  %v787_v6 = vpop.f32.mrf.mxu0  ;;  %v1066_v8 = vld [vmem:[%s5978_s23 + $0x74] sm:$0x3]  ;;  %v4903_v40 = vld [vmem:[%s5978_s23 + $0x84] sm:$0xe] }
 0x12a   : > { %v1182_v42 = vrot.slane %v1066_v8, 6  ;;  %v4933_v48 = vrot.slane %v4903_v40, 9  ;;  %v1956_v8 = vsel %vm6007_vm2, %v1954_v21, %v1955_v22 }
 0x12b   : > { %v1004_v7 = vpop.f32.mrf.mxu1 }
 0x12c   : > { %v6559_v19 = vadd.f32 %v1004_v7, %v787_v6  ;;  %v5006_v6 = vld [vmem:[%s5978_s23 + $0x84] sm:$0xc]  ;;  %v5007_v7 = vld [vmem:[%s5978_s23 + $0x8c] sm:$0x3]  ;;  %v1953_v51 = vsel %vm6007_vm2, %v4933_v48, %v1952_v58 }
 0x12d   : > { %v5029_v28 = vrot.slane %v5006_v6, 10  ;;  %v2381_v24 = vrot.slane %v5007_v7, 6  ;;  %v2034_v7 = vunpack.c.l.b16 %v1953_v51 }
 0x12f   : > { %v827_v35 = vpop.f32.mrf.mxu2 }
 0x130   : > { %v1044_v9 = vpop.f32.mrf.mxu3 }
 0x131   : > { %v6565_v39 = vadd.f32 %v1044_v9, %v827_v35  ;;  %v2137_v0 = vpop.f32.mrf.mxu0 }
 0x133   : > { %v2563_v1 = vpop.f32.mrf.mxu1 }
 0x134   : > { %1403 = vmatmul.bf16.gmra.mxu2 %v1283_v49  ;;  %2176 = vmatmul.bf16.gmra.mxu0 %v2056_v55  ;;  %v1180_v49 = vsel %vm6279_vm5, %v4677_v10, %v1179_v54  ;;  %v2382_v54 = vsel %vm6279_vm5, %v2380_v30, %v2381_v24  ;;  %v2035_v10 = vunpack.c.l.b16 %v1956_v8  ;;  %v5523_v24 = vld [vmem:[%s5978_s23 + $0x84] sm:$0xff]  ;;  %v4908_v8 = vld [vmem:[%s5978_s23 + $0x98] sm:$0x1] }
 0x135   : > { %1718 = vmatmul.bf16.gmra.mxu3 %v5522_v50  ;;  %v1183_v50 = vsel %vm6279_vm5, %v1181_v16, %v1182_v42  ;;  %v1261_v5 = vunpack.c.l.b16 %v1180_v49  ;;  %v2461_v12 = vunpack.c.l.b16 %v2382_v54  ;;  %v4907_v42 = vld [vmem:[%s5978_s23 + $0x94] sm:$0xf]  ;;  %v5008_v54 = vld [vmem:[%s5978_s23 + $0x90] sm:$0xc] }
 0x136   : > { %2602 = vmatmul.bf16.gmra.mxu1 %v2482_v56  ;;  %v1262_v6 = vunpack.c.l.b16 %v1183_v50 }
 0x137   : > { %v1364_v34 = vpop.f32.mrf.mxu2 }
 0x138   : > { %v1679_v35 = vpop.f32.mrf.mxu3  ;;  %v1444_v9 = vadd.f32 %v1364_v34, %v6301_v11  ;;  %v2379_v11 = vsel %vm6279_vm5, %v5029_v28, %v2378_v4  ;;  %v5588_v4 = vld [vmem:[%s7407_s1 + $0x210] sm:$0xff]  ;;  %v1284_v30 = vpack.c.b16 %v1262_v6, %v1261_v5  ;;  %v1067_v34 = vld [vmem:[%s5978_s23 + $0x78] sm:$0xc] }
 0x139   : > { %v2139_v56 = vpop.f32.mrf.mxu0  ;;  %v2460_v58 = vunpack.c.l.b16 %v2379_v11  ;;  %3758 = vmatpush.bf16.msra.mxu0 %v5588_v4  ;;  %v2385_v11 = vrot.slane %v4907_v42, 6  ;;  %v5030_v4 = vrot.slane %v5008_v54, 10 }
 0x13a   : > { %v1759_v55 = vadd.f32 %v1679_v35, %v1444_v9  ;;  %v1068_v35 = vld [vmem:[%s5978_s23 + $0x80] sm:$0x3]  ;;  %v1959_v9 = vrot.slane %v4907_v42, 5 }
 0x13b   : > { %v2565_v57 = vpop.f32.mrf.mxu1  ;;  %v2483_v32 = vpack.c.b16 %v2461_v12, %v2460_v58  ;;  %v1189_v6 = vrot.slane %v1068_v35, 6  ;;  %v1962_v58 = vrot.slane %v4908_v8, 5 }
 0x13c   : > { %v2217_v40 = vadd.f32 %v2137_v0, %v1759_v55  ;;  %v5762_v0 = vld [vmem:[%s5978_s23 + $0x7c] sm:$0xf]  ;;  %v4906_v55 = vld [vmem:[%s5978_s23 + $0x90] sm:$0xe] }
 0x13d   : > { %v1186_v22 = vrot.slane %v5762_v0, 6 }
 0x13e   : > { %v6594_v16 = vadd.f32 %v2563_v1, %v2217_v40  ;;  %v2057_v1 = vpack.c.b16 %v2035_v10, %v2034_v7  ;;  %v5009_v40 = vld [vmem:[%s5978_s23 + $0x98] sm:$0x3]  ;;  %v4934_v7 = vrot.slane %v4906_v55, 9  ;;  %v1961_v10 = vrot.slane %v1959_v9, 4 }
 0x13f   : > { %v1366_v48 = vpop.f32.mrf.mxu2  ;;  %v1188_v5 = vrot.slane %v1186_v22, 4  ;;  %v2388_v0 = vrot.slane %v5009_v40, 6 }
 0x140   : > { %7421 = vst [vmem:[#allocation5_spill] sm:$0xff] %v6594_v16  ;;  %v1681_v21 = vpop.f32.mrf.mxu3  ;;  %v1445_v28 = vadd.f32 %v1366_v48, %v6326_v37  ;;  %v4678_v48 = vrot.slane %v1067_v34, 10  ;;  %v1963_v34 = vsel %vm6007_vm2, %v1961_v10, %v1962_v58  ;;  %v5524_v58 = vld [vmem:[%s5978_s23 + $0x90] sm:$0xff] }
 0x141   : > { %v2142_v50 = vpop.f32.mrf.mxu0  ;;  %v2037_v54 = vunpack.c.l.b16 %v1963_v34 }
 0x142   : > { %v1760_v49 = vadd.f32 %v1681_v21, %v1445_v28  ;;  %v2387_v21 = vrot.slane %v2385_v11, 4 }
 0x143   : > { %v2568_v51 = vpop.f32.mrf.mxu1 }
 0x144   : > { %1408 = vmatmul.bf16.gmra.mxu2 %v1284_v30  ;;  %v2218_v37 = vadd.f32 %v2139_v56, %v1760_v49  ;;  %2181 = vmatmul.bf16.gmra.mxu0 %v2057_v1  ;;  %v1187_v56 = vsel %vm6279_vm5, %v4678_v48, %v1186_v22  ;;  %v1190_v30 = vsel %vm6279_vm5, %v1188_v5, %v1189_v6 }
 0x145   : > { %1723 = vmatmul.bf16.gmra.mxu3 %v5523_v24  ;;  %v1960_v24 = vsel %vm6007_vm2, %v4934_v7, %v1959_v9  ;;  %v2389_v22 = vsel %vm6279_vm5, %v2387_v21, %v2388_v0  ;;  %v1263_v49 = vunpack.c.l.b16 %v1187_v56  ;;  %v1264_v55 = vunpack.c.l.b16 %v1190_v30  ;;  %v1069_v21 = vld [vmem:[%s5978_s23 + $0x84] sm:$0xc]  ;;  %v1070_v0 = vld [vmem:[%s5978_s23 + $0x8c] sm:$0x3] }
 0x146   : > { %2607 = vmatmul.bf16.gmra.mxu1 %v2483_v32  ;;  %v6609_v12 = vadd.f32 %v2565_v57, %v2218_v37  ;;  %v2036_v8 = vunpack.c.l.b16 %v1960_v24  ;;  %v2463_v9 = vunpack.c.l.b16 %v2389_v22  ;;  %v4910_v37 = vld [vmem:[%s5978_s23 + $0xa0] sm:$0xf]  ;;  %v4909_v24 = vld [vmem:[%s5978_s23 + $0x9c] sm:$0xe]  ;;  %v5011_v22 = vld [vmem:[%s5978_s23 + $0xa4] sm:$0x3] }
 0x147   : > { %v1369_v28 = vpop.f32.mrf.mxu2  ;;  %v1285_v10 = vpack.c.b16 %v1264_v55, %v1263_v49  ;;  %v2392_v34 = vrot.slane %v4910_v37, 6  ;;  %v5571_v55 = vld [vmem:[%s7407_s1 + $0x188] sm:$0xff] }
 0x148   : > { %v1684_v42 = vpop.f32.mrf.mxu3  ;;  %v1446_v16 = vadd.f32 %v1369_v28, %v6339_v2  ;;  %v2386_v2 = vsel %vm6279_vm5, %v5030_v4, %v2385_v11  ;;  %v5600_v11 = vld [vmem:[%s7410_s4 + $0x30] sm:$0xff]  ;;  %v1966_v28 = vrot.slane %v4910_v37, 5  ;;  %2875 = vmatpush.bf16.msra.mxu2 %v5571_v55  ;;  %v4913_v55 = vld [vmem:[%s5978_s23 + $0xac] sm:$0xf] }
 0x149   : > { %v2144_v57 = vpop.f32.mrf.mxu0  ;;  %4059 = vmatpush.bf16.msra.mxu1 %v5600_v11 }
 0x14a   : > { %v1761_v1 = vadd.f32 %v1684_v42, %v1446_v16  ;;  %v2462_v16 = vunpack.c.l.b16 %v2386_v2  ;;  %v5010_v2 = vld [vmem:[%s5978_s23 + $0x9c] sm:$0xc] }
 0x14b   : > { %v2570_v32 = vpop.f32.mrf.mxu1  ;;  %v5031_v37 = vrot.slane %v5010_v2, 10 }
 0x14c   : > { %v2219_v35 = vadd.f32 %v2142_v50, %v1761_v1  ;;  %v5763_v50 = vld [vmem:[%s5978_s23 + $0x88] sm:$0xf]  ;;  %v2484_v4 = vpack.c.b16 %v2463_v9, %v2462_v16  ;;  %v4911_v1 = vld [vmem:[%s5978_s23 + $0xa4] sm:$0x1]  ;;  %v1968_v16 = vrot.slane %v1966_v28, 4 }
 0x14d   : > { %v1193_v6 = vrot.slane %v5763_v50, 6  ;;  %v1969_v9 = vrot.slane %v4911_v1, 5 }
 0x14e   : > { %v6624_v40 = vadd.f32 %v2568_v51, %v2219_v35  ;;  %v2058_v51 = vpack.c.b16 %v2037_v54, %v2036_v8  ;;  %v4679_v35 = vrot.slane %v1069_v21, 10  ;;  %v1196_v8 = vrot.slane %v1070_v0, 6 }
 0x14f   : > { %v1371_v48 = vpop.f32.mrf.mxu2  ;;  %v1195_v49 = vrot.slane %v1193_v6, 4  ;;  %v4935_v54 = vrot.slane %v4909_v24, 9 }
 0x150   : > { %v1686_v5 = vpop.f32.mrf.mxu3  ;;  %v1447_v7 = vadd.f32 %v1371_v48, %v6358_v31  ;;  %v2394_v48 = vrot.slane %v2392_v34, 4 }
 0x151   : > { %v2147_v56 = vpop.f32.mrf.mxu0 }
 0x152   : > { %v1762_v42 = vadd.f32 %v1686_v5, %v1447_v7  ;;  %v2395_v5 = vrot.slane %v5011_v22, 6 }
 0x153   : > { %v2573_v30 = vpop.f32.mrf.mxu1 }
 0x154   : > { %1413 = vmatmul.bf16.gmra.mxu2 %v1285_v10  ;;  %v2220_v31 = vadd.f32 %v2144_v57, %v1762_v42  ;;  %2186 = vmatmul.bf16.gmra.mxu0 %v2058_v51  ;;  %v5579_v57 = vld [vmem:[%s7407_s1 + $0x1c8] sm:$0xff]  ;;  %v1967_v51 = vsel %vm6007_vm2, %v4935_v54, %v1966_v28  ;;  %v1970_v42 = vsel %vm6007_vm2, %v1968_v16, %v1969_v9 }
 0x155   : > { %1728 = vmatmul.bf16.gmra.mxu3 %v5524_v58  ;;  %v1194_v58 = vsel %vm6279_vm5, %v4679_v35, %v1193_v6  ;;  %v2396_v6 = vsel %vm6279_vm5, %v2394_v48, %v2395_v5  ;;  %v2038_v22 = vunpack.c.l.b16 %v1967_v51  ;;  %v5525_v48 = vld [vmem:[%s5978_s23 + $0x9c] sm:$0xff]  ;;  %v4912_v51 = vld [vmem:[%s5978_s23 + $0xa8] sm:$0xe] }
 0x156   : > { %2612 = vmatmul.bf16.gmra.mxu1 %v2484_v4  ;;  %v6642_v11 = vadd.f32 %v2570_v32, %v2220_v31  ;;  %3333 = vmatpush.bf16.msra.mxu3 %v5579_v57  ;;  %v1197_v32 = vsel %vm6279_vm5, %v1195_v49, %v1196_v8  ;;  %v1265_v1 = vunpack.c.l.b16 %v1194_v58  ;;  %v2039_v31 = vunpack.c.l.b16 %v1970_v42  ;;  %v1071_v57 = vld [vmem:[%s5978_s23 + $0x90] sm:$0xc] }
 0x157   : > { %v1374_v50 = vpop.f32.mrf.mxu2  ;;  %v1266_v2 = vunpack.c.l.b16 %v1197_v32  ;;  %v2465_v35 = vunpack.c.l.b16 %v2396_v6  ;;  %v2399_v42 = vrot.slane %v4913_v55, 6  ;;  %v5013_v6 = vld [vmem:[%s5978_s23 + $0xb0] sm:$0x3] }
 0x158   : > { %v1689_v7 = vpop.f32.mrf.mxu3  ;;  %v1448_v10 = vadd.f32 %v1374_v50, %v6368_v60  ;;  %v2393_v60 = vsel %vm6279_vm5, %v5031_v37, %v2392_v34  ;;  %v5587_v34 = vld [vmem:[%s7407_s1 + $0x208] sm:$0xff]  ;;  %v1072_v50 = vld [vmem:[%s5978_s23 + $0x98] sm:$0x3] }
 0x159   : > { %v2149_v21 = vpop.f32.mrf.mxu0  ;;  %v2464_v28 = vunpack.c.l.b16 %v2393_v60  ;;  %v1286_v37 = vpack.c.b16 %v1266_v2, %v1265_v1  ;;  %3759 = vmatpush.bf16.msra.mxu0 %v5587_v34  ;;  %v5012_v60 = vld [vmem:[%s5978_s23 + $0xa8] sm:$0xc]  ;;  %v1203_v2 = vrot.slane %v1072_v50, 6 }
 0x15a   : > { %v1763_v4 = vadd.f32 %v1689_v7, %v1448_v10  ;;  %v1973_v7 = vrot.slane %v4913_v55, 5  ;;  %v5032_v34 = vrot.slane %v5012_v60, 10 }
 0x15b   : > { %v2575_v0 = vpop.f32.mrf.mxu1  ;;  %v2485_v5 = vpack.c.b16 %v2465_v35, %v2464_v28 }
 0x15c   : > { %v2221_v24 = vadd.f32 %v2147_v56, %v1763_v4  ;;  %v5764_v56 = vld [vmem:[%s5978_s23 + $0x94] sm:$0xf]  ;;  %v4914_v4 = vld [vmem:[%s5978_s23 + $0xb0] sm:$0x1] }
 0x15d   : > { %v1200_v16 = vrot.slane %v5764_v56, 6  ;;  %v1976_v28 = vrot.slane %v4914_v4, 5 }
 0x15e   : > { %v6660_v49 = vadd.f32 %v2573_v30, %v2221_v24  ;;  %v2059_v30 = vpack.c.b16 %v2039_v31, %v2038_v22  ;;  %v4680_v24 = vrot.slane %v1071_v57, 10  ;;  %v4936_v22 = vrot.slane %v4912_v51, 9 }
 0x15f   : > { %v1376_v8 = vpop.f32.mrf.mxu2  ;;  %v1202_v1 = vrot.slane %v1200_v16, 4  ;;  %v1975_v31 = vrot.slane %v1973_v7, 4 }
 0x160   : > { %v1691_v54 = vpop.f32.mrf.mxu3  ;;  %v1449_v9 = vadd.f32 %v1376_v8, %v6393_v27  ;;  %v2401_v8 = vrot.slane %v2399_v42, 4 }
 0x161   : > { %v2152_v58 = vpop.f32.mrf.mxu0  ;;  %v1977_v57 = vsel %vm6007_vm2, %v1975_v31, %v1976_v28 }
 0x162   : > { %v1764_v10 = vadd.f32 %v1691_v54, %v1449_v9  ;;  %v2402_v54 = vrot.slane %v5013_v6, 6  ;;  %v2041_v60 = vunpack.c.l.b16 %v1977_v57 }
 0x163   : > { %v2578_v32 = vpop.f32.mrf.mxu1 }
 0x164   : > { %1418 = vmatmul.bf16.gmra.mxu2 %v1286_v37  ;;  %v2222_v27 = vadd.f32 %v2149_v21, %v1764_v10  ;;  %2191 = vmatmul.bf16.gmra.mxu0 %v2059_v30  ;;  %v1201_v21 = vsel %vm6279_vm5, %v4680_v24, %v1200_v16  ;;  %v1204_v37 = vsel %vm6279_vm5, %v1202_v1, %v1203_v2  ;;  %v4916_v24 = vld [vmem:[%s5978_s23 + $0xb8] sm:$0xf] }
 0x165   : > { %1733 = vmatmul.bf16.gmra.mxu3 %v5525_v48  ;;  %v1974_v48 = vsel %vm6007_vm2, %v4936_v22, %v1973_v7  ;;  %v2403_v16 = vsel %vm6279_vm5, %v2401_v8, %v2402_v54  ;;  %v1267_v10 = vunpack.c.l.b16 %v1201_v21  ;;  %v1268_v51 = vunpack.c.l.b16 %v1204_v37  ;;  %v1073_v54 = vld [vmem:[%s5978_s23 + $0x9c] sm:$0xc] }
 0x166   : > { %2617 = vmatmul.bf16.gmra.mxu1 %v2485_v5  ;;  %v6675_v35 = vadd.f32 %v2575_v0, %v2222_v27  ;;  %v2040_v4 = vunpack.c.l.b16 %v1974_v48  ;;  %v2467_v6 = vunpack.c.l.b16 %v2403_v16  ;;  %v4915_v48 = vld [vmem:[%s5978_s23 + $0xb4] sm:$0xe]  ;;  %v2406_v57 = vrot.slane %v4916_v24, 6  ;;  %v5015_v16 = vld [vmem:[%s5978_s23 + $0xbc] sm:$0x3] }
 0x167   : > { %v1379_v56 = vpop.f32.mrf.mxu2  ;;  %v1287_v28 = vpack.c.b16 %v1268_v51, %v1267_v10  ;;  %v5570_v51 = vld [vmem:[%s7407_s1 + $0x180] sm:$0xff] }
 0x168   : > { %v1694_v55 = vpop.f32.mrf.mxu3  ;;  %v1450_v9 = vadd.f32 %v1379_v56, %v6406_v61  ;;  %v2400_v61 = vsel %vm6279_vm5, %v5032_v34, %v2399_v42  ;;  %v5599_v42 = vld [vmem:[%s7410_s4 + $0x28] sm:$0xff]  ;;  %v1074_v56 = vld [vmem:[%s5978_s23 + $0xa4] sm:$0x3]  ;;  %2876 = vmatpush.bf16.msra.mxu2 %v5570_v51 }
 0x169   : > { %v2154_v0 = vpop.f32.mrf.mxu0  ;;  %v2466_v7 = vunpack.c.l.b16 %v2400_v61  ;;  %v5526_v34 = vld [vmem:[%s5978_s23 + $0xa8] sm:$0xff]  ;;  %4060 = vmatpush.bf16.msra.mxu1 %v5599_v42  ;;  %v5014_v61 = vld [vmem:[%s5978_s23 + $0xb4] sm:$0xc]  ;;  %v4919_v51 = vld [vmem:[%s5978_s23 + $0xc4] sm:$0xf] }
 0x16a   : > { %v1765_v30 = vadd.f32 %v1694_v55, %v1450_v9  ;;  %v1980_v55 = vrot.slane %v4916_v24, 5  ;;  %v5033_v24 = vrot.slane %v5014_v61, 10 }
 0x16b   : > { %v2580_v5 = vpop.f32.mrf.mxu1  ;;  %v2486_v8 = vpack.c.b16 %v2467_v6, %v2466_v7 }
 0x16c   : > { %v2223_v50 = vadd.f32 %v2152_v58, %v1765_v30  ;;  %v5765_v58 = vld [vmem:[%s5978_s23 + $0xa0] sm:$0xf]  ;;  %v4917_v30 = vld [vmem:[%s5978_s23 + $0xbc] sm:$0x1]  ;;  %v1982_v7 = vrot.slane %v1980_v55, 4 }
 0x16d   : > { %v1207_v22 = vrot.slane %v5765_v58, 6  ;;  %v1983_v6 = vrot.slane %v4917_v30, 5 }
 0x16e   : > { %v6690_v27 = vadd.f32 %v2578_v32, %v2223_v50  ;;  %v2060_v32 = vpack.c.b16 %v2041_v60, %v2040_v4  ;;  %v4681_v50 = vrot.slane %v1073_v54, 10  ;;  %v1210_v4 = vrot.slane %v1074_v56, 6 }
 0x16f   : > { %v1381_v1 = vpop.f32.mrf.mxu2  ;;  %v1209_v10 = vrot.slane %v1207_v22, 4  ;;  %v4937_v60 = vrot.slane %v4915_v48, 9 }
 0x170   : > { %v1696_v2 = vpop.f32.mrf.mxu3  ;;  %v1451_v31 = vadd.f32 %v1381_v1, %v6425_v26  ;;  %v2408_v1 = vrot.slane %v2406_v57, 4 }
 0x171   : > { %v2157_v21 = vpop.f32.mrf.mxu0 }
 0x172   : > { %v1766_v9 = vadd.f32 %v1696_v2, %v1451_v31  ;;  %v2409_v2 = vrot.slane %v5015_v16, 6 }
 0x173   : > { %v2583_v37 = vpop.f32.mrf.mxu1 }
 0x174   : > { %1423 = vmatmul.bf16.gmra.mxu2 %v1287_v28  ;;  %v2224_v26 = vadd.f32 %v2154_v0, %v1766_v9  ;;  %2196 = vmatmul.bf16.gmra.mxu0 %v2060_v32  ;;  %v5578_v0 = vld [vmem:[%s7407_s1 + $0x1c0] sm:$0xff]  ;;  %v1981_v32 = vsel %vm6007_vm2, %v4937_v60, %v1980_v55  ;;  %v1984_v9 = vsel %vm6007_vm2, %v1982_v7, %v1983_v6  ;;  %v5527_v6 = vld [vmem:[%s5978_s23 + $0xb4] sm:$0xff] }
 0x175   : > { %1738 = vmatmul.bf16.gmra.mxu3 %v5526_v34  ;;  %v1208_v34 = vsel %vm6279_vm5, %v4681_v50, %v1207_v22  ;;  %v2410_v22 = vsel %vm6279_vm5, %v2408_v1, %v2409_v2  ;;  %v2042_v16 = vunpack.c.l.b16 %v1981_v32  ;;  %v2043_v55 = vunpack.c.l.b16 %v1984_v9  ;;  %v4918_v32 = vld [vmem:[%s5978_s23 + $0xc0] sm:$0xe]  ;;  %v4920_v9 = vld [vmem:[%s5978_s23 + $0xc8] sm:$0x1] }
 0x176   : > { %2622 = vmatmul.bf16.gmra.mxu1 %v2486_v8  ;;  %v6708_v42 = vadd.f32 %v2580_v5, %v2224_v26  ;;  %3334 = vmatpush.bf16.msra.mxu3 %v5578_v0  ;;  %v1211_v5 = vsel %vm6279_vm5, %v1209_v10, %v1210_v4  ;;  %v1269_v30 = vunpack.c.l.b16 %v1208_v34  ;;  %v2469_v50 = vunpack.c.l.b16 %v2410_v22  ;;  %v1075_v0 = vld [vmem:[%s5978_s23 + $0xa8] sm:$0xc] }
 0x177   : > { %v1384_v58 = vpop.f32.mrf.mxu2  ;;  %v1270_v61 = vunpack.c.l.b16 %v1211_v5  ;;  %v2061_v1 = vpack.c.b16 %v2043_v55, %v2042_v16  ;;  %v1076_v5 = vld [vmem:[%s5978_s23 + $0xb0] sm:$0x3]  ;;  %v4938_v16 = vrot.slane %v4918_v32, 9 }
 0x178   : > { %v1699_v31 = vpop.f32.mrf.mxu3  ;;  %v1452_v28 = vadd.f32 %v1384_v58, %v6435_v62  ;;  %v2407_v62 = vsel %vm6279_vm5, %v5033_v24, %v2406_v57  ;;  %v5586_v57 = vld [vmem:[%s7407_s1 + $0x200] sm:$0xff]  ;;  %v5766_v24 = vld [vmem:[%s5978_s23 + $0xac] sm:$0xf]  ;;  %v1987_v58 = vrot.slane %v4919_v51, 5 }
 0x179   : > { %v2159_v54 = vpop.f32.mrf.mxu0  ;;  %v2468_v26 = vunpack.c.l.b16 %v2407_v62  ;;  %v1288_v7 = vpack.c.b16 %v1270_v61, %v1269_v30  ;;  %3760 = vmatpush.bf16.msra.mxu0 %v5586_v57  ;;  %v5017_v62 = vld [vmem:[%s5978_s23 + $0xc8] sm:$0x3]  ;;  %v1217_v61 = vrot.slane %v1076_v5, 6 }
 0x17a   : > { %v1767_v8 = vadd.f32 %v1699_v31, %v1452_v28  ;;  %v1989_v55 = vrot.slane %v1987_v58, 4 }
 0x17b   : > { %v6720_v56 = vpop.f32.mrf.mxu1  ;;  %v2487_v2 = vpack.c.b16 %v2469_v50, %v2468_v26  ;;  %v1990_v26 = vrot.slane %v4920_v9, 5 }
 0x17c   : > { %v2225_v48 = vadd.f32 %v2157_v21, %v1767_v8  ;;  %v2413_v8 = vrot.slane %v4919_v51, 6 }
 0x17e   : > { %v6728_v10 = vadd.f32 %v2583_v37, %v2225_v48  ;;  %v1214_v37 = vrot.slane %v5766_v24, 6  ;;  %v4682_v48 = vrot.slane %v1075_v0, 10  ;;  %v2415_v57 = vrot.slane %v2413_v8, 4 }
 0x17f   : > { %v1386_v4 = vpop.f32.mrf.mxu2  ;;  %v1991_v0 = vsel %vm6007_vm2, %v1989_v55, %v1990_v26  ;;  %v5528_v26 = vld [vmem:[%s5978_s23 + $0xc0] sm:$0xff] }
 0x180   : > { %v1701_v60 = vpop.f32.mrf.mxu3  ;;  %v1453_v21 = vadd.f32 %v1386_v4, %v6460_v33  ;;  %v5016_v33 = vld [vmem:[%s5978_s23 + $0xc0] sm:$0xc]  ;;  %v1216_v30 = vrot.slane %v1214_v37, 4  ;;  %v2416_v4 = vrot.slane %v5017_v62, 6 }
 0x181   : > { %v2162_v28 = vpop.f32.mrf.mxu0  ;;  %v5034_v50 = vrot.slane %v5016_v33, 10 }
 0x182   : > { %v1768_v31 = vadd.f32 %v1701_v60, %v1453_v21 }
 0x183   : > { %v2588_v34 = vpop.f32.mrf.mxu1 }
 0x184   : > { %1428 = vmatmul.bf16.gmra.mxu2 %v1288_v7  ;;  %v6743_v22 = vadd.f32 %v2159_v54, %v1768_v31  ;;  %2201 = vmatmul.bf16.gmra.mxu0 %v2061_v1  ;;  %v1215_v7 = vsel %vm6279_vm5, %v4682_v48, %v1214_v37  ;;  %v1218_v54 = vsel %vm6279_vm5, %v1216_v30, %v1217_v61  ;;  %v4922_v30 = vld [vmem:[%s5978_s23 + $0xd0] sm:$0xf] }
 0x185   : > { %1743 = vmatmul.bf16.gmra.mxu3 %v5527_v6  ;;  %v1988_v6 = vsel %vm6007_vm2, %v4938_v16, %v1987_v58  ;;  %v2417_v37 = vsel %vm6279_vm5, %v2415_v57, %v2416_v4  ;;  %v1271_v5 = vunpack.c.l.b16 %v1215_v7  ;;  %v1272_v32 = vunpack.c.l.b16 %v1218_v54 }
 0x186   : > { %2627 = vmatmul.bf16.gmra.mxu1 %v2487_v2  ;;  %v2044_v9 = vunpack.c.l.b16 %v1988_v6  ;;  %v2045_v58 = vunpack.c.l.b16 %v1991_v0  ;;  %v2471_v62 = vunpack.c.l.b16 %v2417_v37  ;;  %v1078_v6 = vld [vmem:[%s5978_s23 + $0xbc] sm:$0x3]  ;;  %v2420_v0 = vrot.slane %v4922_v30, 6  ;;  %v5019_v37 = vld [vmem:[%s5978_s23 + $0xd4] sm:$0x3] }
 0x187   : > { %v1389_v60 = vpop.f32.mrf.mxu2  ;;  %v1289_v55 = vpack.c.b16 %v1272_v32, %v1271_v5 }
 0x188   : > { %v1704_v51 = vpop.f32.mrf.mxu3  ;;  %v1454_v21 = vadd.f32 %v1389_v60, %v6473_v3  ;;  %v2414_v3 = vsel %vm6279_vm5, %v5034_v50, %v2413_v8  ;;  %v5598_v8 = vld [vmem:[%s7410_s4 + $0x20] sm:$0xff]  ;;  %v5767_v50 = vld [vmem:[%s5978_s23 + $0xb8] sm:$0xf]  ;;  %v2062_v57 = vpack.c.b16 %v2045_v58, %v2044_v9  ;;  %v1077_v60 = vld [vmem:[%s5978_s23 + $0xb4] sm:$0xc]  ;;  %v1224_v9 = vrot.slane %v1078_v6, 6 }
 0x189   : > { %v2164_v1 = vpop.f32.mrf.mxu0  ;;  %v2470_v33 = vunpack.c.l.b16 %v2414_v3  ;;  %4061 = vmatpush.bf16.msra.mxu1 %v5598_v8  ;;  %v4923_v3 = vld [vmem:[%s5978_s23 + $0xd4] sm:$0x1]  ;;  %v4683_v5 = vrot.slane %v1077_v60, 10 }
 0x18a   : > { %v1769_v24 = vadd.f32 %v1704_v51, %v1454_v21  ;;  %v1994_v51 = vrot.slane %v4922_v30, 5 }
 0x18b   : > { %v6752_v2 = vpop.f32.mrf.mxu1  ;;  %v2488_v4 = vpack.c.b16 %v2471_v62, %v2470_v33  ;;  %v1997_v62 = vrot.slane %v4923_v3, 5 }
 0x18c   : > { %v2227_v31 = vadd.f32 %v2162_v28, %v1769_v24  ;;  %v4921_v24 = vld [vmem:[%s5978_s23 + $0xcc] sm:$0xe]  ;;  %v1996_v33 = vrot.slane %v1994_v51, 4 }
 0x18d   : > { %v4939_v58 = vrot.slane %v4921_v24, 9 }
 0x18e   : > { %v6760_v48 = vadd.f32 %v2588_v34, %v2227_v31  ;;  %v1221_v34 = vrot.slane %v5767_v50, 6 }
 0x18f   : > { %v1391_v61 = vpop.f32.mrf.mxu2 }
 0x190   : > { %v1706_v16 = vpop.f32.mrf.mxu3  ;;  %v1455_v28 = vadd.f32 %v1391_v61, %v6492_v46  ;;  %v5018_v46 = vld [vmem:[%s5978_s23 + $0xcc] sm:$0xc]  ;;  %v1223_v32 = vrot.slane %v1221_v34, 4  ;;  %v2422_v61 = vrot.slane %v2420_v0, 4 }
 0x191   : > { %v2167_v7 = vpop.f32.mrf.mxu0  ;;  %v5035_v8 = vrot.slane %v5018_v46, 10 }
 0x192   : > { %v1770_v21 = vadd.f32 %v1706_v16, %v1455_v28  ;;  %v2423_v16 = vrot.slane %v5019_v37, 6 }
 0x193   : > { %v2593_v54 = vpop.f32.mrf.mxu1 }
 0x194   : > { %1433 = vmatmul.bf16.gmra.mxu2 %v1289_v55  ;;  %v6775_v31 = vadd.f32 %v2164_v1, %v1770_v21  ;;  %2206 = vmatmul.bf16.gmra.mxu0 %v2062_v57  ;;  %v1222_v55 = vsel %vm6279_vm5, %v4683_v5, %v1221_v34  ;;  %v1225_v1 = vsel %vm6279_vm5, %v1223_v32, %v1224_v9  ;;  %v5229_v9 = vld [vmem:[%s5978_s23 + $0x34] sm:$0xf] }
 0x195   : > { %1748 = vmatmul.bf16.gmra.mxu3 %v5528_v26  ;;  %v1995_v26 = vsel %vm6007_vm2, %v4939_v58, %v1994_v51  ;;  %v1998_v21 = vsel %vm6007_vm2, %v1996_v33, %v1997_v62  ;;  %v2424_v34 = vsel %vm6279_vm5, %v2422_v61, %v2423_v16  ;;  %v1273_v24 = vunpack.c.l.b16 %v1222_v55  ;;  %v5228_v55 = vld [vmem:[%s5978_s23 + $0x30] sm:$0xe] }
 0x196   : > { %2632 = vmatmul.bf16.gmra.mxu1 %v2488_v4  ;;  %v1274_v3 = vunpack.c.l.b16 %v1225_v1  ;;  %v2046_v46 = vunpack.c.l.b16 %v1995_v26  ;;  %v2047_v37 = vunpack.c.l.b16 %v1998_v21  ;;  %v2473_v5 = vunpack.c.l.b16 %v2424_v34  ;;  %v5230_v1 = vld [vmem:[%s5978_s23 + $0x38] sm:$0x1] }
 0x197   : > { %v1394_v28 = vpop.f32.mrf.mxu2  ;;  %v3088_v16 = vrot.slane %v5229_v9, 5  ;;  %v3514_v26 = vrot.slane %v5229_v9, 6  ;;  %v3091_v34 = vrot.slane %v5230_v1, 5  ;;  %v5597_v1 = vld [vmem:[%s7410_s4 + $0x18] sm:$0xff] }
 0x198   : > { %v1709_v30 = vpop.f32.mrf.mxu3  ;;  %v1456_v50 = vadd.f32 %v1394_v28, %v6502_v14  ;;  %v2421_v14 = vsel %vm6279_vm5, %v5035_v8, %v2420_v0  ;;  %v1290_v62 = vpack.c.b16 %v1274_v3, %v1273_v24  ;;  %v5529_v8 = vld [vmem:[%s5978_s23 + $0xcc] sm:$0xff]  ;;  %4062 = vmatpush.bf16.msra.mxu1 %v5597_v1 }
 0x199   : > { %v2169_v4 = vpop.f32.mrf.mxu0  ;;  %v2472_v51 = vunpack.c.l.b16 %v2421_v14  ;;  %v3090_v14 = vrot.slane %v3088_v16, 4  ;;  %v3516_v24 = vrot.slane %v3514_v26, 4 }
 0x19a   : > { %v1771_v57 = vadd.f32 %v1709_v30, %v1456_v50 }
 0x19b   : > { %v6784_v60 = vpop.f32.mrf.mxu1  ;;  %v2489_v61 = vpack.c.b16 %v2473_v5, %v2472_v51 }
 0x19c   : > { %v2229_v6 = vadd.f32 %v2167_v7, %v1771_v57  ;;  %v2063_v7 = vpack.c.b16 %v2047_v37, %v2046_v46  ;;  %v5341_v57 = vld [vmem:[%s5978_s23 + $0x38] sm:$0x3] }
 0x19d   : > { %v3517_v3 = vrot.slane %v5341_v57, 6 }
 0x19e   : > { %v6792_v32 = vadd.f32 %v2593_v54, %v2229_v6  ;;  %v5340_v54 = vld [vmem:[%s5978_s23 + $0x30] sm:$0xc] }
 0x19f   : > { %v1396_v58 = vpop.f32.mrf.mxu2  ;;  %v5372_v6 = vrot.slane %v5340_v54, 10 }
 0x1a0   : > { %v1711_v33 = vpop.f32.mrf.mxu3  ;;  %v1457_v0 = vadd.f32 %v1396_v58, %v6527_v63  ;;  %v5276_v63 = vrot.slane %v5228_v55, 9  ;;  %v5232_v55 = vld [vmem:[%s5978_s23 + $0x40] sm:$0xf] }
 0x1a1   : > { %v2172_v30 = vpop.f32.mrf.mxu0 }
 0x1a2   : > { %v1772_v28 = vadd.f32 %v1711_v33, %v1457_v0  ;;  %v3089_v5 = vsel %vm6007_vm2, %v5276_v63, %v3088_v16  ;;  %v3515_v0 = vsel %vm6279_vm5, %v5372_v6, %v3514_v26 }
 0x1a3   : > { %v2598_v50 = vpop.f32.mrf.mxu1 }
 0x1a4   : > { %1438 = vmatmul.bf16.gmra.mxu2 %v1290_v62  ;;  %v6801_v21 = vadd.f32 %v2169_v4, %v1772_v28  ;;  %2211 = vmatmul.bf16.gmra.mxu0 %v2063_v7  ;;  %v3092_v4 = vsel %vm6007_vm2, %v3090_v14, %v3091_v34  ;;  %v3518_v62 = vsel %vm6279_vm5, %v3516_v24, %v3517_v3  ;;  %v3215_v7 = vunpack.c.l.b16 %v3089_v5  ;;  %v5231_v3 = vld [vmem:[%s5978_s23 + $0x3c] sm:$0xe]  ;;  %v5343_v5 = vld [vmem:[%s5978_s23 + $0x44] sm:$0x3] }
 0x1a5   : > { %1753 = vmatmul.bf16.gmra.mxu3 %v5529_v8  ;;  %v3642_v16 = vunpack.c.l.b16 %v3518_v62  ;;  %v3095_v34 = vrot.slane %v5232_v55, 5 }
 0x1a6   : > { %2637 = vmatmul.bf16.gmra.mxu1 %v2489_v61  ;;  %v3641_v61 = vunpack.c.l.b16 %v3515_v0  ;;  %v2656_v23 = vadd.f32 %v6784_v60, %v6801_v21 }
 0x1a7   : > { %v1399_v46 = vpop.f32.mrf.mxu2 }
 0x1a8   : > { %v1714_v37 = vpop.f32.mrf.mxu3  ;;  %v1458_v51 = vadd.f32 %v1399_v46, %v6540_v36  ;;  %v3216_v36 = vunpack.c.l.b16 %v3092_v4  ;;  %v3673_v14 = vpack.c.b16 %v3642_v16, %v3641_v61  ;;  %v5233_v46 = vld [vmem:[%s5978_s23 + $0x44] sm:$0x1] }
 0x1a9   : > { %v2174_v58 = vpop.f32.mrf.mxu0  ;;  %v3098_v0 = vrot.slane %v5233_v46, 5  ;;  %v5235_v46 = vld [vmem:[%s5978_s23 + $0x4c] sm:$0xf] }
 0x1aa   : > { %v1773_v9 = vadd.f32 %v1714_v37, %v1458_v51  ;;  %v3247_v63 = vpack.c.b16 %v3216_v36, %v3215_v7  ;;  %v3521_v37 = vrot.slane %v5232_v55, 6  ;;  %v5342_v51 = vld [vmem:[%s5978_s23 + $0x3c] sm:$0xc]  ;;  %v3524_v7 = vrot.slane %v5343_v5, 6 }
 0x1ab   : > { %v6808_v33 = vpop.f32.mrf.mxu1  ;;  %v5373_v62 = vrot.slane %v5342_v51, 10 }
 0x1ac   : > { %v2231_v8 = vadd.f32 %v2172_v30, %v1773_v9  ;;  %v5554_v30 = vld [vmem:[%s5978_s23 + $0x30] sm:$0xff]  ;;  %v5277_v9 = vrot.slane %v5231_v3, 9 }
 0x1ae   : > { %v6814_v28 = vadd.f32 %v2598_v50, %v2231_v8  ;;  %v3523_v8 = vrot.slane %v3521_v37, 4  ;;  %v3096_v55 = vsel %vm6007_vm2, %v5277_v9, %v3095_v34 }
 0x1af   : > { %v1401_v26 = vpop.f32.mrf.mxu2 }
 0x1b0   : > { %v1716_v54 = vpop.f32.mrf.mxu3  ;;  %v1459_v57 = vadd.f32 %v1401_v26, %v6559_v19  ;;  %v3097_v19 = vrot.slane %v3095_v34, 4 }
 0x1b1   : > { %v2177_v24 = vpop.f32.mrf.mxu0 }
 0x1b2   : > { %v1774_v6 = vadd.f32 %v1716_v54, %v1459_v57  ;;  %v3099_v1 = vsel %vm6007_vm2, %v3097_v19, %v3098_v0  ;;  %v3522_v57 = vsel %vm6279_vm5, %v5373_v62, %v3521_v37  ;;  %v5555_v37 = vld [vmem:[%s5978_s23 + $0x3c] sm:$0xff]  ;;  %v3102_v62 = vrot.slane %v5235_v46, 5 }
 0x1b3   : > { %v2603_v50 = vpop.f32.mrf.mxu1  ;;  %v3643_v34 = vunpack.c.l.b16 %v3522_v57 }
 0x1b4   : > { %2877 = vmatmul.bf16.vlgmr.msra.gmra.mxu2 %v5554_v30  ;;  %v6826_v4 = vadd.f32 %v2174_v58, %v1774_v6  ;;  %3761 = vmatmul.bf16.vlgmr.msra.gmra.mxu0 %v3673_v14  ;;  %v3525_v30 = vsel %vm6279_vm5, %v3523_v8, %v3524_v7  ;;  %v3217_v14 = vunpack.c.l.b16 %v3096_v55  ;;  %v5344_v55 = vld [vmem:[%s5978_s23 + $0x48] sm:$0xc]  ;;  %v3104_v57 = vrot.slane %v3102_v62, 4 }
 0x1b5   : > { %3335 = vmatmul.bf16.vlgmr.msra.gmra.mxu3 %v3247_v63  ;;  %v3644_v6 = vunpack.c.l.b16 %v3525_v30  ;;  %v5374_v30 = vrot.slane %v5344_v55, 10  ;;  %v5238_v55 = vld [vmem:[%s5978_s23 + $0x58] sm:$0xf] }
 0x1b7   : > { %v1404_v36 = vpop.f32.mrf.mxu2  ;;  %v3674_v0 = vpack.c.b16 %v3644_v6, %v3643_v34 }
 0x1b8   : > { %v1719_v61 = vpop.f32.mrf.mxu3  ;;  %v1460_v16 = vadd.f32 %v1404_v36, %v6312_v29  ;;  %v3218_v29 = vunpack.c.l.b16 %v3099_v1  ;;  %v5234_v36 = vld [vmem:[%s5978_s23 + $0x48] sm:$0xe]  ;;  %v5345_v1 = vld [vmem:[%s5978_s23 + $0x50] sm:$0x3] }
 0x1b9   : > { %v2179_v26 = vpop.f32.mrf.mxu0 }
 0x1ba   : > { %v1775_v58 = vadd.f32 %v1719_v61, %v1460_v16  ;;  %v3248_v19 = vpack.c.b16 %v3218_v29, %v3217_v14  ;;  %v5236_v61 = vld [vmem:[%s5978_s23 + $0x50] sm:$0x1]  ;;  %v3528_v16 = vrot.slane %v5235_v46, 6  ;;  %v3531_v14 = vrot.slane %v5345_v1, 6 }
 0x1bb   : > { %v6833_v54 = vpop.f32.mrf.mxu1  ;;  %v5596_v1 = vld [vmem:[%s7410_s4 + $0x10] sm:$0xff] }
 0x1bc   : > { %v2233_v63 = vadd.f32 %v2177_v24, %v1775_v58  ;;  %v5278_v58 = vrot.slane %v5234_v36, 9  ;;  %4063 = vmatpush.bf16.msra.mxu1 %v5596_v1 }
 0x1be   : > { %v6839_v3 = vadd.f32 %v2603_v50, %v2233_v63  ;;  %v3530_v63 = vrot.slane %v3528_v16, 4  ;;  %v3103_v46 = vsel %vm6007_vm2, %v5278_v58, %v3102_v62 }
 0x1bf   : > { %v1406_v51 = vpop.f32.mrf.mxu2 }
 0x1c0   : > { %v1721_v5 = vpop.f32.mrf.mxu3  ;;  %v1461_v9 = vadd.f32 %v1406_v51, %v6332_v53  ;;  %v3105_v53 = vrot.slane %v5236_v61, 5 }
 0x1c1   : > { %v2182_v8 = vpop.f32.mrf.mxu0 }
 0x1c2   : > { %v1776_v24 = vadd.f32 %v1721_v5, %v1461_v9  ;;  %v3106_v51 = vsel %vm6007_vm2, %v3104_v57, %v3105_v53 }
 0x1c3   : > { %v2608_v7 = vpop.f32.mrf.mxu1 }
 0x1c4   : > { %2882 = vmatmul.bf16.gmra.mxu2 %v5555_v37  ;;  %v6848_v50 = vadd.f32 %v2179_v26, %v1776_v24  ;;  %3766 = vmatmul.bf16.gmra.mxu0 %v3674_v0  ;;  %v3529_v37 = vsel %vm6279_vm5, %v5374_v30, %v3528_v16  ;;  %v3219_v24 = vunpack.c.l.b16 %v3103_v46  ;;  %v3535_v46 = vrot.slane %v5238_v55, 6 }
 0x1c5   : > { %3340 = vmatmul.bf16.gmra.mxu3 %v3248_v19  ;;  %v3532_v19 = vsel %vm6279_vm5, %v3530_v63, %v3531_v14  ;;  %v3645_v36 = vunpack.c.l.b16 %v3529_v37  ;;  %v3109_v63 = vrot.slane %v5238_v55, 5 }
 0x1c6   : > { %v3646_v62 = vunpack.c.l.b16 %v3532_v19 }
 0x1c7   : > { %v1409_v29 = vpop.f32.mrf.mxu2 }
 0x1c8   : > { %v1724_v34 = vpop.f32.mrf.mxu3  ;;  %v1462_v6 = vadd.f32 %v1409_v29, %v6344_v20  ;;  %v3220_v20 = vunpack.c.l.b16 %v3106_v51  ;;  %v3675_v30 = vpack.c.b16 %v3646_v62, %v3645_v36  ;;  %v5346_v51 = vld [vmem:[%s5978_s23 + $0x54] sm:$0xc] }
 0x1c9   : > { %v2184_v5 = vpop.f32.mrf.mxu0 }
 0x1ca   : > { %v1777_v26 = vadd.f32 %v1724_v34, %v1462_v6  ;;  %v3249_v53 = vpack.c.b16 %v3220_v20, %v3219_v24  ;;  %v5237_v34 = vld [vmem:[%s5978_s23 + $0x54] sm:$0xe]  ;;  %v5239_v6 = vld [vmem:[%s5978_s23 + $0x5c] sm:$0x1]  ;;  %v5375_v24 = vrot.slane %v5346_v51, 10  ;;  %v3537_v20 = vrot.slane %v3535_v46, 4 }
 0x1cb   : > { %v6855_v9 = vpop.f32.mrf.mxu1  ;;  %v5279_v19 = vrot.slane %v5237_v34, 9 }
 0x1cc   : > { %v2235_v0 = vadd.f32 %v2182_v8, %v1777_v26  ;;  %v5556_v8 = vld [vmem:[%s5978_s23 + $0x48] sm:$0xff]  ;;  %v5347_v26 = vld [vmem:[%s5978_s23 + $0x5c] sm:$0x3] }
 0x1cd   : > { %v3538_v36 = vrot.slane %v5347_v26, 6  ;;  %v3110_v55 = vsel %vm6007_vm2, %v5279_v19, %v3109_v63  ;;  %v5241_v26 = vld [vmem:[%s5978_s23 + $0x64] sm:$0xf] }
 0x1ce   : > { %v6861_v61 = vadd.f32 %v2608_v7, %v2235_v0  ;;  %v3112_v0 = vrot.slane %v5239_v6, 5  ;;  %v3221_v34 = vunpack.c.l.b16 %v3110_v55  ;;  %v5242_v55 = vld [vmem:[%s5978_s23 + $0x68] sm:$0x1] }
 0x1cf   : > { %v1411_v16 = vpop.f32.mrf.mxu2 }
 0x1d0   : > { %v1726_v58 = vpop.f32.mrf.mxu3  ;;  %v1463_v57 = vadd.f32 %v1411_v16, %v6361_v45  ;;  %v3111_v45 = vrot.slane %v3109_v63, 4 }
 0x1d1   : > { %v2187_v29 = vpop.f32.mrf.mxu0 }
 0x1d2   : > { %v1778_v14 = vadd.f32 %v1726_v58, %v1463_v57  ;;  %v3113_v58 = vsel %vm6007_vm2, %v3111_v45, %v3112_v0 }
 0x1d3   : > { %v2613_v7 = vpop.f32.mrf.mxu1 }
 0x1d4   : > { %2887 = vmatmul.bf16.gmra.mxu2 %v5556_v8  ;;  %v6873_v37 = vadd.f32 %v2184_v5, %v1778_v14  ;;  %3771 = vmatmul.bf16.gmra.mxu0 %v3675_v30  ;;  %v3539_v30 = vsel %vm6279_vm5, %v3537_v20, %v3538_v36  ;;  %v3116_v20 = vrot.slane %v5241_v26, 5 }
 0x1d5   : > { %3345 = vmatmul.bf16.gmra.mxu3 %v3249_v53  ;;  %v3536_v53 = vsel %vm6279_vm5, %v5375_v24, %v3535_v46  ;;  %v3648_v6 = vunpack.c.l.b16 %v3539_v30  ;;  %v5557_v46 = vld [vmem:[%s5978_s23 + $0x54] sm:$0xff] }
 0x1d6   : > { %v3647_v63 = vunpack.c.l.b16 %v3536_v53  ;;  %v5349_v53 = vld [vmem:[%s5978_s23 + $0x68] sm:$0x3] }
 0x1d7   : > { %v1414_v62 = vpop.f32.mrf.mxu2 }
 0x1d8   : > { %v1729_v1 = vpop.f32.mrf.mxu3  ;;  %v1464_v16 = vadd.f32 %v1414_v62, %v6379_v17  ;;  %v3222_v17 = vunpack.c.l.b16 %v3113_v58  ;;  %v3676_v62 = vpack.c.b16 %v3648_v6, %v3647_v63  ;;  %v3542_v58 = vrot.slane %v5241_v26, 6 }
 0x1d9   : > { %v2189_v57 = vpop.f32.mrf.mxu0 }
 0x1da   : > { %v1779_v5 = vadd.f32 %v1729_v1, %v1464_v16  ;;  %v3250_v24 = vpack.c.b16 %v3222_v17, %v3221_v34  ;;  %v5240_v16 = vld [vmem:[%s5978_s23 + $0x60] sm:$0xe]  ;;  %v3544_v34 = vrot.slane %v3542_v58, 4  ;;  %v3545_v17 = vrot.slane %v5349_v53, 6 }
 0x1db   : > { %v6880_v8 = vpop.f32.mrf.mxu1  ;;  %v5280_v30 = vrot.slane %v5240_v16, 9 }
 0x1dc   : > { %v2237_v14 = vadd.f32 %v2187_v29, %v1779_v5  ;;  %v5348_v5 = vld [vmem:[%s5978_s23 + $0x60] sm:$0xc] }
 0x1dd   : > { %v3117_v26 = vsel %vm6007_vm2, %v5280_v30, %v3116_v20  ;;  %v5244_v30 = vld [vmem:[%s5978_s23 + $0x70] sm:$0xf] }
 0x1de   : > { %v6886_v51 = vadd.f32 %v2613_v7, %v2237_v14  ;;  %v3118_v14 = vrot.slane %v3116_v20, 4 }
 0x1df   : > { %v1416_v19 = vpop.f32.mrf.mxu2 }
 0x1e0   : > { %v1731_v45 = vpop.f32.mrf.mxu3  ;;  %v1465_v0 = vadd.f32 %v1416_v19, %v6399_v44  ;;  %v3119_v44 = vrot.slane %v5242_v55, 5  ;;  %v5376_v19 = vrot.slane %v5348_v5, 10  ;;  %v3223_v55 = vunpack.c.l.b16 %v3117_v26  ;;  %v5243_v26 = vld [vmem:[%s5978_s23 + $0x6c] sm:$0xe] }
 0x1e1   : > { %v2192_v36 = vpop.f32.mrf.mxu0 }
 0x1e2   : > { %v1780_v29 = vadd.f32 %v1731_v45, %v1465_v0  ;;  %v3120_v0 = vsel %vm6007_vm2, %v3118_v14, %v3119_v44  ;;  %v5595_v14 = vld [vmem:[%s7410_s4 + $0x8] sm:$0xff] }
 0x1e3   : > { %v2618_v1 = vpop.f32.mrf.mxu1  ;;  %4064 = vmatpush.bf16.msra.mxu1 %v5595_v14 }
 0x1e4   : > { %2892 = vmatmul.bf16.gmra.mxu2 %v5557_v46  ;;  %v6895_v7 = vadd.f32 %v2189_v57, %v1780_v29  ;;  %3776 = vmatmul.bf16.gmra.mxu0 %v3676_v62  ;;  %v3543_v62 = vsel %vm6279_vm5, %v5376_v19, %v3542_v58  ;;  %v3546_v29 = vsel %vm6279_vm5, %v3544_v34, %v3545_v17 }
 0x1e5   : > { %3350 = vmatmul.bf16.gmra.mxu3 %v3250_v24  ;;  %v3649_v5 = vunpack.c.l.b16 %v3543_v62  ;;  %v3650_v20 = vunpack.c.l.b16 %v3546_v29  ;;  %v5350_v62 = vld [vmem:[%s5978_s23 + $0x6c] sm:$0xc]  ;;  %v5351_v29 = vld [vmem:[%s5978_s23 + $0x74] sm:$0x3] }
 0x1e7   : > { %v1419_v63 = vpop.f32.mrf.mxu2  ;;  %v3677_v17 = vpack.c.b16 %v3650_v20, %v3649_v5  ;;  %v3552_v5 = vrot.slane %v5351_v29, 6  ;;  %v5247_v29 = vld [vmem:[%s5978_s23 + $0x7c] sm:$0xf] }
 0x1e8   : > { %v1734_v6 = vpop.f32.mrf.mxu3  ;;  %v1466_v45 = vadd.f32 %v1419_v63, %v6411_v15  ;;  %v3224_v15 = vunpack.c.l.b16 %v3120_v0  ;;  %v3123_v63 = vrot.slane %v5244_v30, 5  ;;  %v5245_v0 = vld [vmem:[%s5978_s23 + $0x74] sm:$0x1] }
 0x1e9   : > { %v2194_v46 = vpop.f32.mrf.mxu0 }
 0x1ea   : > { %v1781_v57 = vadd.f32 %v1734_v6, %v1466_v45  ;;  %v3251_v34 = vpack.c.b16 %v3224_v15, %v3223_v55  ;;  %v5377_v55 = vrot.slane %v5350_v62, 10 }
 0x1eb   : > { %v6902_v24 = vpop.f32.mrf.mxu1 }
 0x1ec   : > { %7422 = vst [vmem:[#allocation6_spill] sm:$0xff] %v6902_v24  ;;  %v2239_v16 = vadd.f32 %v2192_v36, %v1781_v57  ;;  %v5558_v36 = vld [vmem:[%s5978_s23 + $0x60] sm:$0xff]  ;;  %v3549_v57 = vrot.slane %v5244_v30, 6  ;;  %v5281_v24 = vrot.slane %v5243_v26, 9 }
 0x1ee   : > { %v6908_v53 = vadd.f32 %v2618_v1, %v2239_v16  ;;  %v3551_v15 = vrot.slane %v3549_v57, 4  ;;  %v3124_v30 = vsel %vm6007_vm2, %v5281_v24, %v3123_v63 }
 0x1ef   : > { %v1421_v58 = vpop.f32.mrf.mxu2 }
 0x1f0   : > { %v1736_v44 = vpop.f32.mrf.mxu3  ;;  %v1467_v19 = vadd.f32 %v1421_v58, %v6428_v41  ;;  %v3125_v41 = vrot.slane %v3123_v63, 4  ;;  %v3126_v58 = vrot.slane %v5245_v0, 5  ;;  %v3225_v0 = vunpack.c.l.b16 %v3124_v30  ;;  %v5246_v30 = vld [vmem:[%s5978_s23 + $0x78] sm:$0xe] }
 0x1f1   : > { %v2197_v45 = vpop.f32.mrf.mxu0 }
 0x1f2   : > { %v1782_v6 = vadd.f32 %v1736_v44, %v1467_v19  ;;  %v3127_v19 = vsel %vm6007_vm2, %v3125_v41, %v3126_v58 }
 0x1f3   : > { %v2623_v1 = vpop.f32.mrf.mxu1 }
 0x1f4   : > { %2897 = vmatmul.bf16.gmra.mxu2 %v5558_v36  ;;  %v6920_v16 = vadd.f32 %v2194_v46, %v1782_v6  ;;  %3781 = vmatmul.bf16.gmra.mxu0 %v3677_v17  ;;  %v3550_v17 = vsel %vm6279_vm5, %v5377_v55, %v3549_v57  ;;  %v3553_v6 = vsel %vm6279_vm5, %v3551_v15, %v3552_v5  ;;  %v5559_v57 = vld [vmem:[%s5978_s23 + $0x6c] sm:$0xff]  ;;  %v3130_v15 = vrot.slane %v5247_v29, 5 }
 0x1f5   : > { %3355 = vmatmul.bf16.gmra.mxu3 %v3251_v34  ;;  %v3651_v24 = vunpack.c.l.b16 %v3550_v17  ;;  %v3652_v63 = vunpack.c.l.b16 %v3553_v6  ;;  %v5352_v17 = vld [vmem:[%s5978_s23 + $0x78] sm:$0xc]  ;;  %v5353_v6 = vld [vmem:[%s5978_s23 + $0x80] sm:$0x3] }
 0x1f7   : > { %v1424_v20 = vpop.f32.mrf.mxu2 }
 0x1f8   : > { %v1739_v14 = vpop.f32.mrf.mxu3  ;;  %v1468_v44 = vadd.f32 %v1424_v20, %v6446_v18  ;;  %v3226_v18 = vunpack.c.l.b16 %v3127_v19  ;;  %v5248_v19 = vld [vmem:[%s5978_s23 + $0x80] sm:$0x1] }
 0x1f9   : > { %v2199_v36 = vpop.f32.mrf.mxu0 }
 0x1fa   : > { %v1783_v46 = vadd.f32 %v1739_v14, %v1468_v44  ;;  %v3252_v55 = vpack.c.b16 %v3226_v18, %v3225_v0  ;;  %v3678_v14 = vpack.c.b16 %v3652_v63, %v3651_v24  ;;  %v3559_v18 = vrot.slane %v5353_v6, 6 }
 0x1fb   : > { %v6927_v34 = vpop.f32.mrf.mxu1 }
 0x1fc   : > { %7423 = vst [vmem:[#allocation7_spill] sm:$0xff] %v6927_v34  ;;  %v2241_v26 = vadd.f32 %v2197_v45, %v1783_v46  ;;  %v3556_v46 = vrot.slane %v5247_v29, 6  ;;  %v3132_v34 = vrot.slane %v3130_v15, 4 }
 0x1fe   : > { %v6933_v62 = vadd.f32 %v2623_v1, %v2241_v26  ;;  %v5282_v26 = vrot.slane %v5246_v30, 9  ;;  %v3558_v0 = vrot.slane %v3556_v46, 4 }
 0x1ff   : > { %v1426_v41 = vpop.f32.mrf.mxu2 }
 0x200   : > { %v1741_v58 = vpop.f32.mrf.mxu3  ;;  %v1469_v20 = vadd.f32 %v1426_v41, %v6466_v52  ;;  %v3133_v52 = vrot.slane %v5248_v19, 5  ;;  %v5378_v41 = vrot.slane %v5352_v17, 10  ;;  %v3131_v29 = vsel %vm6007_vm2, %v5282_v26, %v3130_v15 }
 0x201   : > { %v2202_v5 = vpop.f32.mrf.mxu0  ;;  %v3227_v30 = vunpack.c.l.b16 %v3131_v29  ;;  %v5251_v29 = vld [vmem:[%s5978_s23 + $0x8c] sm:$0x1] }
 0x202   : > { %v1784_v45 = vadd.f32 %v1741_v58, %v1469_v20  ;;  %v3134_v20 = vsel %vm6007_vm2, %v3132_v34, %v3133_v52  ;;  %v5250_v34 = vld [vmem:[%s5978_s23 + $0x88] sm:$0xf] }
 0x203   : > { %v2628_v44 = vpop.f32.mrf.mxu1  ;;  %v3228_v19 = vunpack.c.l.b16 %v3134_v20  ;;  %v3563_v20 = vrot.slane %v5250_v34, 6 }
 0x204   : > { %2902 = vmatmul.bf16.gmra.mxu2 %v5559_v57  ;;  %v6942_v1 = vadd.f32 %v2199_v36, %v1784_v45  ;;  %3786 = vmatmul.bf16.gmra.mxu0 %v3678_v14  ;;  %v3560_v14 = vsel %vm6279_vm5, %v3558_v0, %v3559_v18 }
 0x205   : > { %3360 = vmatmul.bf16.gmra.mxu3 %v3252_v55  ;;  %v3557_v55 = vsel %vm6279_vm5, %v5378_v41, %v3556_v46  ;;  %v3654_v15 = vunpack.c.l.b16 %v3560_v14  ;;  %v5594_v46 = vld [vmem:[%s7410_s4] sm:$0xff]  ;;  %v5560_v41 = vld [vmem:[%s5978_s23 + $0x78] sm:$0xff]  ;;  %v3253_v0 = vpack.c.b16 %v3228_v19, %v3227_v30  ;;  %v3565_v19 = vrot.slane %v3563_v20, 4 }
 0x206   : > { %4065 = vmatpush.bf16.msra.mxu1 %v5594_v46 }
 0x207   : > { %v1429_v24 = vpop.f32.mrf.mxu2 }
 0x208   : > { %v1744_v63 = vpop.f32.mrf.mxu3  ;;  %v1470_v58 = vadd.f32 %v1429_v24, %v6478_v25  ;;  %v3653_v25 = vunpack.c.l.b16 %v3557_v55  ;;  %v3137_v24 = vrot.slane %v5250_v34, 5  ;;  %v5355_v55 = vld [vmem:[%s5978_s23 + $0x8c] sm:$0x3] }
 0x209   : > { %v2204_v57 = vpop.f32.mrf.mxu0 }
 0x20a   : > { %v1785_v36 = vadd.f32 %v1744_v63, %v1470_v58  ;;  %v3679_v18 = vpack.c.b16 %v3654_v15, %v3653_v25  ;;  %v3566_v25 = vrot.slane %v5355_v55, 6 }
 0x20b   : > { %v6953_v17 = vpop.f32.mrf.mxu1 }
 0x20c   : > { %v2243_v45 = vadd.f32 %v2202_v5, %v1785_v36  ;;  %7424 = vst [vmem:[#allocation8_spill] sm:$0xff] %v6953_v17  ;;  %v5354_v36 = vld [vmem:[%s5978_s23 + $0x84] sm:$0xc]  ;;  %v3139_v17 = vrot.slane %v3137_v24, 4 }
 0x20d   : > { %v5379_v30 = vrot.slane %v5354_v36, 10 }
 0x20e   : > { %v6955_v6 = vadd.f32 %v2628_v44, %v2243_v45  ;;  %v5249_v44 = vld [vmem:[%s5978_s23 + $0x84] sm:$0xe] }
 0x20f   : > { %v1431_v26 = vpop.f32.mrf.mxu2  ;;  %v5283_v45 = vrot.slane %v5249_v44, 9 }
 0x210   : > { %v1746_v52 = vpop.f32.mrf.mxu3  ;;  %v1471_v5 = vadd.f32 %v1431_v26, %v6495_v59  ;;  %v3140_v59 = vrot.slane %v5251_v29, 5 }
 0x211   : > { %v2207_v58 = vpop.f32.mrf.mxu0  ;;  %v3138_v34 = vsel %vm6007_vm2, %v5283_v45, %v3137_v24 }
 0x212   : > { %v1786_v63 = vadd.f32 %v1746_v52, %v1471_v5  ;;  %v3229_v44 = vunpack.c.l.b16 %v3138_v34  ;;  %v5254_v34 = vld [vmem:[%s5978_s23 + $0x98] sm:$0x1] }
 0x213   : > { %v2633_v26 = vpop.f32.mrf.mxu1 }
 0x214   : > { %2907 = vmatmul.bf16.gmra.mxu2 %v5560_v41  ;;  %v6967_v14 = vadd.f32 %v2204_v57, %v1786_v63  ;;  %3791 = vmatmul.bf16.gmra.mxu0 %v3679_v18  ;;  %v3141_v57 = vsel %vm6007_vm2, %v3139_v17, %v3140_v59  ;;  %v3567_v18 = vsel %vm6279_vm5, %v3565_v19, %v3566_v25  ;;  %v5253_v17 = vld [vmem:[%s5978_s23 + $0x94] sm:$0xf] }
 0x215   : > { %3365 = vmatmul.bf16.gmra.mxu3 %v3253_v0  ;;  %v3564_v0 = vsel %vm6279_vm5, %v5379_v30, %v3563_v20  ;;  %v3230_v29 = vunpack.c.l.b16 %v3141_v57  ;;  %v3656_v36 = vunpack.c.l.b16 %v3567_v18  ;;  %v5561_v20 = vld [vmem:[%s5978_s23 + $0x84] sm:$0xff]  ;;  %v3144_v19 = vrot.slane %v5253_v17, 5 }
 0x216   : > { %v3570_v57 = vrot.slane %v5253_v17, 6 }
 0x217   : > { %v1434_v15 = vpop.f32.mrf.mxu2  ;;  %v3254_v30 = vpack.c.b16 %v3230_v29, %v3229_v44 }
 0x218   : > { %v1749_v46 = vpop.f32.mrf.mxu3  ;;  %v1472_v52 = vadd.f32 %v1434_v15, %v6513_v47  ;;  %v3655_v47 = vunpack.c.l.b16 %v3564_v0  ;;  %v3572_v29 = vrot.slane %v3570_v57, 4 }
 0x219   : > { %v2209_v41 = vpop.f32.mrf.mxu0 }
 0x21a   : > { %v1787_v5 = vadd.f32 %v1749_v46, %v1472_v52  ;;  %v5252_v52 = vld [vmem:[%s5978_s23 + $0x90] sm:$0xe] }
 0x21b   : > { %v6983_v15 = vpop.f32.mrf.mxu1  ;;  %v5284_v18 = vrot.slane %v5252_v52, 9 }
 0x21c   : > { %v2245_v63 = vadd.f32 %v2207_v58, %v1787_v5  ;;  %7425 = vst [vmem:[#allocation9_spill] sm:$0xff] %v6983_v15  ;;  %v3680_v58 = vpack.c.b16 %v3656_v36, %v3655_v47  ;;  %v5356_v5 = vld [vmem:[%s5978_s23 + $0x90] sm:$0xc] }
 0x21d   : > { %v5380_v44 = vrot.slane %v5356_v5, 10  ;;  %v3145_v17 = vsel %vm6007_vm2, %v5284_v18, %v3144_v19  ;;  %v5256_v18 = vld [vmem:[%s5978_s23 + $0xa0] sm:$0xf] }
 0x21e   : > { %v6978_v24 = vadd.f32 %v2633_v26, %v2245_v63  ;;  %v5357_v26 = vld [vmem:[%s5978_s23 + $0x98] sm:$0x3]  ;;  %v3147_v63 = vrot.slane %v5254_v34, 5  ;;  %v3231_v34 = vunpack.c.l.b16 %v3145_v17  ;;  %v5257_v17 = vld [vmem:[%s5978_s23 + $0xa4] sm:$0x1] }
 0x21f   : > { %v1436_v55 = vpop.f32.mrf.mxu2 }
 0x220   : > { %v1751_v45 = vpop.f32.mrf.mxu3  ;;  %v1473_v59 = vadd.f32 %v1436_v55, %v6533_v13  ;;  %v3146_v13 = vrot.slane %v3144_v19, 4  ;;  %v3573_v55 = vrot.slane %v5357_v26, 6 }
 0x221   : > { %v2212_v46 = vpop.f32.mrf.mxu0 }
 0x222   : > { %v1788_v25 = vadd.f32 %v1751_v45, %v1473_v59  ;;  %v3148_v59 = vsel %vm6007_vm2, %v3146_v13, %v3147_v63 }
 0x224   : > { %2912 = vmatmul.bf16.gmra.mxu2 %v5561_v20  ;;  %v6989_v0 = vadd.f32 %v2209_v41, %v1788_v25  ;;  %3796 = vmatmul.bf16.gmra.mxu0 %v3680_v58  ;;  %v3574_v58 = vsel %vm6279_vm5, %v3572_v29, %v3573_v55  ;;  %v2638_v25 = vpop.f32.mrf.mxu1  ;;  %v3151_v55 = vrot.slane %v5256_v18, 5 }
 0x225   : > { %3370 = vmatmul.bf16.gmra.mxu3 %v3254_v30  ;;  %v3571_v30 = vsel %vm6279_vm5, %v5380_v44, %v3570_v57  ;;  %v3658_v19 = vunpack.c.l.b16 %v3574_v58  ;;  %v5562_v44 = vld [vmem:[%s5978_s23 + $0x90] sm:$0xff] }
 0x226   : > { %7426 = vst [vmem:[#allocation10_spill] sm:$0xff] %v6989_v0  ;;  %v3657_v5 = vunpack.c.l.b16 %v3571_v30  ;;  %v5359_v30 = vld [vmem:[%s5978_s23 + $0xa4] sm:$0x3] }
 0x227   : > { %v1439_v47 = vpop.f32.mrf.mxu2 }
 0x228   : > { %v1754_v36 = vpop.f32.mrf.mxu3  ;;  %v1474_v45 = vadd.f32 %v1439_v47, %v6545_v43  ;;  %v3232_v43 = vunpack.c.l.b16 %v3148_v59  ;;  %v3681_v29 = vpack.c.b16 %v3658_v19, %v3657_v5  ;;  %v3577_v59 = vrot.slane %v5256_v18, 6  ;;  %v7429_v19 = vld [vmem:[#allocation5_spill] sm:$0xff] }
 0x229   : > { %v2214_v20 = vpop.f32.mrf.mxu0 }
 0x22a   : > { %v1789_v41 = vadd.f32 %v1754_v36, %v1474_v45  ;;  %v3255_v47 = vpack.c.b16 %v3232_v43, %v3231_v34  ;;  %v5255_v45 = vld [vmem:[%s5978_s23 + $0x9c] sm:$0xe]  ;;  %v3580_v34 = vrot.slane %v5359_v30, 6 }
 0x22c   : > { %v2247_v52 = vadd.f32 %v2212_v46, %v1789_v41  ;;  %v5358_v41 = vld [vmem:[%s5978_s23 + $0x9c] sm:$0xc] }
 0x22e   : > { %v7000_v26 = vadd.f32 %v2638_v25, %v2247_v52  ;;  %v5285_v25 = vrot.slane %v5255_v45, 9  ;;  %v3153_v52 = vrot.slane %v3151_v55, 4 }
 0x22f   : > { %v1441_v13 = vpop.f32.mrf.mxu2 }
 0x230   : > { %7427 = vst [vmem:[#allocation11_spill] sm:$0xff] %v7000_v26  ;;  %v1756_v63 = vpop.f32.mrf.mxu3  ;;  %v1475_v57 = vadd.f32 %v1441_v13, %v6565_v39  ;;  %v3154_v26 = vrot.slane %v5257_v17, 5  ;;  %v5381_v39 = vrot.slane %v5358_v41, 10  ;;  %v3579_v13 = vrot.slane %v3577_v59, 4 }
 0x231   : > { %v3762_v36 = vpop.f32.mrf.mxu0  ;;  %v3152_v18 = vsel %vm6007_vm2, %v5285_v25, %v3151_v55  ;;  %v5259_v55 = vld [vmem:[%s5978_s23 + $0xac] sm:$0xf] }
 0x232   : > { %v1790_v46 = vadd.f32 %v1756_v63, %v1475_v57 }
 0x234   : > { %2917 = vmatmul.bf16.gmra.mxu2 %v5562_v44  ;;  %v7009_v58 = vadd.f32 %v2214_v20, %v1790_v46  ;;  %3801 = vmatmul.bf16.gmra.mxu0 %v3681_v29  ;;  %v3155_v20 = vsel %vm6007_vm2, %v3153_v52, %v3154_v26  ;;  %v3581_v29 = vsel %vm6279_vm5, %v3579_v13, %v3580_v34  ;;  %v3233_v46 = vunpack.c.l.b16 %v3152_v18  ;;  %v7023_v26 = vld [vmem:[%s7408_s2] ss:$0 sm:$0xff] }
 0x235   : > { %3375 = vmatmul.bf16.gmra.mxu3 %v3255_v47  ;;  %v3578_v47 = vsel %vm6279_vm5, %v5381_v39, %v3577_v59  ;;  %v3234_v45 = vunpack.c.l.b16 %v3155_v20  ;;  %v3660_v41 = vunpack.c.l.b16 %v3581_v29  ;;  %v5563_v39 = vld [vmem:[%s5978_s23 + $0x9c] sm:$0xff]  ;;  %v5260_v20 = vld [vmem:[%s5978_s23 + $0xb0] sm:$0x1] }
 0x236   : > { %7428 = vst [vmem:[#allocation12_spill] sm:$0xff] %v7009_v58  ;;  %v3659_v17 = vunpack.c.l.b16 %v3578_v47  ;;  %v7031_v34 = vld [vmem:[%s7409_s3] ss:$0 sm:$0xff]  ;;  %v3584_v47 = vrot.slane %v5259_v55, 6  ;;  %v5361_v29 = vld [vmem:[%s5978_s23 + $0xb0] sm:$0x3] }
 0x237   : > { %v2878_v43 = vpop.f32.mrf.mxu2  ;;  %v3256_v13 = vpack.c.b16 %v3234_v45, %v3233_v46  ;;  %v3161_v45 = vrot.slane %v5260_v20, 5 }
 0x238   : > { %v3336_v5 = vpop.f32.mrf.mxu3  ;;  %v2958_v63 = vadd.f32 %v2878_v43, %v7429_v19  ;;  %v5258_v43 = vld [vmem:[%s5978_s23 + $0xa8] sm:$0xe]  ;;  %v3586_v15 = vrot.slane %v3584_v47, 4 }
 0x239   : > { %v3764_v44 = vpop.f32.mrf.mxu0 }
 0x23a   : > { %v3416_v57 = vadd.f32 %v3336_v5, %v2958_v63  ;;  %v3158_v5 = vrot.slane %v5259_v55, 5 }
 0x23c   : > { %v3842_v30 = vadd.f32 %v3762_v36, %v3416_v57  ;;  %v3682_v36 = vpack.c.b16 %v3660_v41, %v3659_v17  ;;  %v5360_v57 = vld [vmem:[%s5978_s23 + $0xa8] sm:$0xc]  ;;  %v3160_v46 = vrot.slane %v3158_v5, 4 }
 0x23e   : > { %v3878_v19 = vmul.f32 %v7023_v26, %v3842_v30  ;;  %v3587_v30 = vrot.slane %v5361_v29, 6 }
 0x23f   : > { %v2880_v25 = vpop.f32.mrf.mxu2 }
 0x240   : > { %v3338_v59 = vpop.f32.mrf.mxu3  ;;  %v2959_v52 = vadd.f32 %v2880_v25, %v6609_v12  ;;  %v5286_v12 = vrot.slane %v5258_v43, 9  ;;  %v5382_v25 = vrot.slane %v5360_v57, 10  ;;  %v3914_v17 = vadd.f32 %v7031_v34, %v3878_v19 }
 0x241   : > { %v3767_v18 = vpop.f32.mrf.mxu0 }
 0x242   : > { %v3417_v63 = vadd.f32 %v3338_v59, %v2959_v52 }
 0x244   : > { %v3843_v58 = vadd.f32 %v3764_v44, %v3417_v63  ;;  %2922 = vmatmul.bf16.gmra.mxu2 %v5563_v39  ;;  %3806 = vmatmul.bf16.gmra.mxu0 %v3682_v36  ;;  %v3159_v44 = vsel %vm6007_vm2, %v5286_v12, %v3158_v5  ;;  %v3162_v39 = vsel %vm6007_vm2, %v3160_v46, %v3161_v45  ;;  %v3946_v36 = vmax.f32 %v3914_v17, 0.0 }
 0x245   : > { %3380 = vmatmul.bf16.gmra.mxu3 %v3256_v13  ;;  %v3585_v13 = vsel %vm6279_vm5, %v5382_v25, %v3584_v47  ;;  %v3588_v63 = vsel %vm6279_vm5, %v3586_v15, %v3587_v30  ;;  %v3235_v20 = vunpack.c.l.b16 %v3159_v44  ;;  %v3236_v57 = vunpack.c.l.b16 %v3162_v39  ;;  %v5262_v47 = vld [vmem:[%s5978_s23 + $0xb8] sm:$0xf]  ;;  %v5564_v25 = vld [vmem:[%s5978_s23 + $0xa8] sm:$0xff]  ;;  %v5263_v44 = vld [vmem:[%s5978_s23 + $0xbc] sm:$0x1] }
 0x246   : > { %v3879_v41 = vmul.f32 %v7023_v26, %v3843_v58  ;;  %v3661_v29 = vunpack.c.l.b16 %v3585_v13  ;;  %v3662_v5 = vunpack.c.l.b16 %v3588_v63  ;;  %v3165_v15 = vrot.slane %v5262_v47, 5  ;;  %v5362_v39 = vld [vmem:[%s5978_s23 + $0xb4] sm:$0xc] }
 0x247   : > { %v2883_v59 = vpop.f32.mrf.mxu2  ;;  %v3257_v17 = vpack.c.b16 %v3236_v57, %v3235_v20  ;;  %v3591_v13 = vrot.slane %v5262_v47, 6  ;;  %v5383_v63 = vrot.slane %v5362_v39, 10 }
 0x248   : > { %v3341_v52 = vpop.f32.mrf.mxu3  ;;  %v3915_v0 = vadd.f32 %v7031_v34, %v3879_v41  ;;  %v2960_v55 = vadd.f32 %v2883_v59, %v6624_v40  ;;  %v3683_v41 = vpack.c.b16 %v3662_v5, %v3661_v29  ;;  %v5261_v59 = vld [vmem:[%s5978_s23 + $0xb4] sm:$0xe] }
 0x249   : > { %v3769_v19 = vpop.f32.mrf.mxu0  ;;  %v3593_v57 = vrot.slane %v3591_v13, 4 }
 0x24a   : > { %v3947_v58 = vmax.f32 %v3915_v0, 0.0  ;;  %v3418_v43 = vadd.f32 %v3341_v52, %v2960_v55 }
 0x24c   : > { %v3978_v40 = vpack.c.bf16 %v3947_v58, %v3946_v36  ;;  %v3844_v12 = vadd.f32 %v3767_v18, %v3418_v43  ;;  %v5363_v18 = vld [vmem:[%s5978_s23 + $0xbc] sm:$0x3]  ;;  %v5287_v58 = vrot.slane %v5261_v59, 9  ;;  %v3167_v43 = vrot.slane %v3165_v15, 4 }
 0x24d   : > { %v3594_v29 = vrot.slane %v5363_v18, 6 }
 0x24e   : > { %4066 = vmatmul.bf16.vlgmr.msra.gmra.mxu1 %v3978_v40  ;;  %v3880_v30 = vmul.f32 %v7023_v26, %v3844_v12 }
 0x24f   : > { %v2885_v46 = vpop.f32.mrf.mxu2 }
 0x250   : > { %v3343_v45 = vpop.f32.mrf.mxu3  ;;  %v2961_v0 = vadd.f32 %v2885_v46, %v6642_v11  ;;  %v3168_v11 = vrot.slane %v5263_v44, 5  ;;  %v3916_v20 = vadd.f32 %v7031_v34, %v3880_v30 }
 0x251   : > { %v3772_v55 = vpop.f32.mrf.mxu0 }
 0x252   : > { %v3419_v52 = vadd.f32 %v3343_v45, %v2961_v0  ;;  %v3169_v45 = vsel %vm6007_vm2, %v3167_v43, %v3168_v11  ;;  %v3592_v0 = vsel %vm6279_vm5, %v5383_v63, %v3591_v13  ;;  %v5265_v13 = vld [vmem:[%s5978_s23 + $0xc4] sm:$0xf]  ;;  %v5565_v11 = vld [vmem:[%s5978_s23 + $0xb4] sm:$0xff] }
 0x253   : > { %v3238_v44 = vunpack.c.l.b16 %v3169_v45  ;;  %v3663_v39 = vunpack.c.l.b16 %v3592_v0 }
 0x254   : > { %v3845_v36 = vadd.f32 %v3769_v19, %v3419_v52  ;;  %2927 = vmatmul.bf16.gmra.mxu2 %v5564_v25  ;;  %3811 = vmatmul.bf16.gmra.mxu0 %v3683_v41  ;;  %v3166_v19 = vsel %vm6007_vm2, %v5287_v58, %v3165_v15  ;;  %v3948_v41 = vmax.f32 %v3916_v20, 0.0  ;;  %v5264_v20 = vld [vmem:[%s5978_s23 + $0xc0] sm:$0xe] }
 0x255   : > { %3385 = vmatmul.bf16.gmra.mxu3 %v3257_v17  ;;  %v3237_v52 = vunpack.c.l.b16 %v3166_v19  ;;  %v3598_v19 = vrot.slane %v5265_v13, 6  ;;  %v5288_v0 = vrot.slane %v5264_v20, 9 }
 0x256   : > { %v3881_v40 = vmul.f32 %v7023_v26, %v3845_v36 }
 0x257   : > { %v2888_v5 = vpop.f32.mrf.mxu2  ;;  %v3258_v63 = vpack.c.b16 %v3238_v44, %v3237_v52 }
 0x258   : > { %v3346_v12 = vpop.f32.mrf.mxu3  ;;  %v2962_v46 = vadd.f32 %v2888_v5, %v6660_v49  ;;  %v3917_v47 = vadd.f32 %v7031_v34, %v3881_v40  ;;  %v3595_v49 = vsel %vm6279_vm5, %v3593_v57, %v3594_v29  ;;  %v3172_v57 = vrot.slane %v5265_v13, 5 }
 0x259   : > { %v3774_v17 = vpop.f32.mrf.mxu0  ;;  %v3664_v15 = vunpack.c.l.b16 %v3595_v49 }
 0x25a   : > { %v3420_v25 = vadd.f32 %v3346_v12, %v2962_v46  ;;  %v3949_v59 = vmax.f32 %v3917_v47, 0.0  ;;  %v5266_v46 = vld [vmem:[%s5978_s23 + $0xc8] sm:$0x1]  ;;  %v5364_v47 = vld [vmem:[%s5978_s23 + $0xc0] sm:$0xc] }
 0x25b   : > { %v3684_v40 = vpack.c.b16 %v3664_v15, %v3663_v39 }
 0x25c   : > { %v3979_v30 = vpack.c.bf16 %v3949_v59, %v3948_v41  ;;  %v3846_v18 = vadd.f32 %v3772_v55, %v3420_v25  ;;  %v5365_v55 = vld [vmem:[%s5978_s23 + $0xc8] sm:$0x3]  ;;  %v3174_v25 = vrot.slane %v3172_v57, 4  ;;  %v5384_v41 = vrot.slane %v5364_v47, 10  ;;  %v5268_v47 = vld [vmem:[%s5978_s23 + $0xd0] sm:$0xf] }
 0x25d   : > { %v3601_v52 = vrot.slane %v5365_v55, 6 }
 0x25e   : > { %4071 = vmatmul.bf16.gmra.mxu1 %v3979_v30  ;;  %v3882_v29 = vmul.f32 %v7023_v26, %v3846_v18  ;;  %v3600_v30 = vrot.slane %v3598_v19, 4 }
 0x25f   : > { %v2890_v36 = vpop.f32.mrf.mxu2 }
 0x260   : > { %v3348_v58 = vpop.f32.mrf.mxu3  ;;  %v2963_v43 = vadd.f32 %v2890_v36, %v6675_v35  ;;  %v3175_v35 = vrot.slane %v5266_v46, 5  ;;  %v3918_v49 = vadd.f32 %v7031_v34, %v3882_v29  ;;  %v3599_v36 = vsel %vm6279_vm5, %v5384_v41, %v3598_v19  ;;  %v5267_v41 = vld [vmem:[%s5978_s23 + $0xcc] sm:$0xe] }
 0x261   : > { %v3777_v12 = vpop.f32.mrf.mxu0 }
 0x262   : > { %v3421_v5 = vadd.f32 %v3348_v58, %v2963_v43  ;;  %v3176_v13 = vsel %vm6007_vm2, %v3174_v25, %v3175_v35 }
 0x263   : > { %v3240_v29 = vunpack.c.l.b16 %v3176_v13 }
 0x264   : > { %v3847_v45 = vadd.f32 %v3774_v17, %v3421_v5  ;;  %2932 = vmatmul.bf16.gmra.mxu2 %v5565_v11  ;;  %3816 = vmatmul.bf16.gmra.mxu0 %v3684_v40  ;;  %v3173_v17 = vsel %vm6007_vm2, %v5288_v0, %v3172_v57  ;;  %v3950_v11 = vmax.f32 %v3918_v49, 0.0  ;;  %v3665_v5 = vunpack.c.l.b16 %v3599_v36  ;;  %v5566_v0 = vld [vmem:[%s5978_s23 + $0xc0] sm:$0xff] }
 0x265   : > { %3390 = vmatmul.bf16.gmra.mxu3 %v3258_v63  ;;  %v3239_v20 = vunpack.c.l.b16 %v3173_v17  ;;  %v5289_v17 = vrot.slane %v5267_v41, 9 }
 0x266   : > { %v3883_v59 = vmul.f32 %v7023_v26, %v3847_v45 }
 0x267   : > { %v2893_v44 = vpop.f32.mrf.mxu2  ;;  %v3259_v25 = vpack.c.b16 %v3240_v29, %v3239_v20 }
 0x268   : > { %v3351_v39 = vpop.f32.mrf.mxu3  ;;  %v2964_v15 = vadd.f32 %v2893_v44, %v6690_v27  ;;  %v3919_v18 = vadd.f32 %v7031_v34, %v3883_v59  ;;  %v3602_v27 = vsel %vm6279_vm5, %v3600_v30, %v3601_v52  ;;  %v3179_v59 = vrot.slane %v5268_v47, 5  ;;  %v5269_v44 = vld [vmem:[%s5978_s23 + $0xd4] sm:$0x1] }
 0x269   : > { %v3779_v43 = vpop.f32.mrf.mxu0  ;;  %v3666_v57 = vunpack.c.l.b16 %v3602_v27 }
 0x26a   : > { %v3422_v58 = vadd.f32 %v3351_v39, %v2964_v15  ;;  %v3951_v63 = vmax.f32 %v3919_v18, 0.0  ;;  %v5366_v39 = vld [vmem:[%s5978_s23 + $0xcc] sm:$0xc]  ;;  %v3605_v15 = vrot.slane %v5268_v47, 6  ;;  %v3181_v13 = vrot.slane %v3179_v59, 4 }
 0x26b   : > { %v3685_v35 = vpack.c.b16 %v3666_v57, %v3665_v5  ;;  %v5385_v36 = vrot.slane %v5366_v39, 10 }
 0x26c   : > { %v3980_v40 = vpack.c.bf16 %v3951_v63, %v3950_v11  ;;  %v3848_v46 = vadd.f32 %v3777_v12, %v3422_v58  ;;  %v5367_v12 = vld [vmem:[%s5978_s23 + $0xd4] sm:$0x3]  ;;  %v3607_v63 = vrot.slane %v3605_v15, 4 }
 0x26d   : > { %v3608_v27 = vrot.slane %v5367_v12, 6 }
 0x26e   : > { %4076 = vmatmul.bf16.gmra.mxu1 %v3980_v40  ;;  %v3884_v49 = vmul.f32 %v7023_v26, %v3848_v46  ;;  %v3606_v46 = vsel %vm6279_vm5, %v5385_v36, %v3605_v15 }
 0x26f   : > { %v2895_v19 = vpop.f32.mrf.mxu2  ;;  %v3667_v41 = vunpack.c.l.b16 %v3606_v46 }
 0x270   : > { %v3353_v55 = vpop.f32.mrf.mxu3  ;;  %v2965_v45 = vadd.f32 %v2895_v19, %v6708_v42  ;;  %v3182_v42 = vrot.slane %v5269_v44, 5  ;;  %v3920_v11 = vadd.f32 %v7031_v34, %v3884_v49  ;;  %v2652_v49 = vadd.f32 %v6720_v56, %v6743_v22  ;;  %v5271_v44 = vld [vmem:[%s5978_s23 + $0xdc] sm:$0xf]  ;;  %v5369_v22 = vld [vmem:[%s5978_s23 + $0xe0] sm:$0x3] }
 0x271   : > { %v3782_v52 = vpop.f32.mrf.mxu0  ;;  %v3186_v36 = vrot.slane %v5271_v44, 5  ;;  %v3612_v56 = vrot.slane %v5271_v44, 6 }
 0x272   : > { %v3423_v30 = vadd.f32 %v3353_v55, %v2965_v45  ;;  %v3183_v57 = vsel %vm6007_vm2, %v3181_v13, %v3182_v42  ;;  %v3952_v55 = vmax.f32 %v3920_v11, 0.0  ;;  %v5270_v42 = vld [vmem:[%s5978_s23 + $0xd8] sm:$0xe] }
 0x274   : > { %v3849_v18 = vadd.f32 %v3779_v43, %v3423_v30  ;;  %2937 = vmatmul.bf16.gmra.mxu2 %v5566_v0  ;;  %3821 = vmatmul.bf16.gmra.mxu0 %v3685_v35  ;;  %v3180_v43 = vsel %vm6007_vm2, %v5289_v17, %v3179_v59  ;;  %v3242_v35 = vunpack.c.l.b16 %v3183_v57 }
 0x275   : > { %3395 = vmatmul.bf16.gmra.mxu3 %v3259_v25  ;;  %v3241_v25 = vunpack.c.l.b16 %v3180_v43 }
 0x276   : > { %v3885_v58 = vmul.f32 %v7023_v26, %v3849_v18  ;;  %v5567_v18 = vld [vmem:[%s5978_s23 + $0xcc] sm:$0xff] }
 0x277   : > { %v2898_v40 = vpop.f32.mrf.mxu2  ;;  %v3260_v17 = vpack.c.b16 %v3242_v35, %v3241_v25 }
 0x278   : > { %v3356_v20 = vpop.f32.mrf.mxu3  ;;  %v2966_v29 = vadd.f32 %v2898_v40, %v6728_v10  ;;  %v3921_v5 = vadd.f32 %v7031_v34, %v3885_v58  ;;  %v3609_v10 = vsel %vm6279_vm5, %v3607_v63, %v3608_v27  ;;  %v5272_v27 = vld [vmem:[%s5978_s23 + $0xe0] sm:$0x1]  ;;  %v5368_v40 = vld [vmem:[%s5978_s23 + $0xd8] sm:$0xc] }
 0x279   : > { %v3784_v19 = vpop.f32.mrf.mxu0  ;;  %v3668_v59 = vunpack.c.l.b16 %v3609_v10  ;;  %v5386_v43 = vrot.slane %v5368_v40, 10  ;;  %v5568_v40 = vld [vmem:[%s5978_s23 + $0xd8] sm:$0xff] }
 0x27a   : > { %v3424_v47 = vadd.f32 %v3356_v20, %v2966_v29  ;;  %v3953_v45 = vmax.f32 %v3921_v5, 0.0  ;;  %v5290_v20 = vrot.slane %v5270_v42, 9  ;;  %v3188_v29 = vrot.slane %v3186_v36, 4 }
 0x27b   : > { %v3686_v13 = vpack.c.b16 %v3668_v59, %v3667_v41  ;;  %v3189_v5 = vrot.slane %v5272_v27, 5  ;;  %v3613_v41 = vsel %vm6279_vm5, %v5386_v43, %v3612_v56 }
 0x27c   : > { %v3981_v0 = vpack.c.bf16 %v3953_v45, %v3952_v55  ;;  %v3850_v30 = vadd.f32 %v3782_v52, %v3424_v47  ;;  %v3614_v47 = vrot.slane %v3612_v56, 4  ;;  %v3615_v55 = vrot.slane %v5369_v22, 6 }
 0x27d   : > { %v3190_v35 = vsel %vm6007_vm2, %v3188_v29, %v3189_v5 }
 0x27e   : > { %4081 = vmatmul.bf16.gmra.mxu1 %v3981_v0  ;;  %v3886_v58 = vmul.f32 %v7023_v26, %v3850_v30 }
 0x27f   : > { %v2900_v39 = vpop.f32.mrf.mxu2 }
 0x280   : > { %v3358_v15 = vpop.f32.mrf.mxu3  ;;  %v2967_v12 = vadd.f32 %v2900_v39, %v2652_v49  ;;  %v3922_v46 = vadd.f32 %v7031_v34, %v3886_v58 }
 0x281   : > { %v3787_v63 = vpop.f32.mrf.mxu0 }
 0x282   : > { %v3425_v11 = vadd.f32 %v3358_v15, %v2967_v12  ;;  %v3954_v30 = vmax.f32 %v3922_v46, 0.0  ;;  %v3244_v12 = vunpack.c.l.b16 %v3190_v35  ;;  %v5370_v46 = vld [vmem:[%s5978_s23 + $0xe4] sm:$0xc] }
 0x284   : > { %v3851_v52 = vadd.f32 %v3784_v19, %v3425_v11  ;;  %2942 = vmatmul.bf16.gmra.mxu2 %v5567_v18  ;;  %3826 = vmatmul.bf16.gmra.mxu0 %v3686_v13  ;;  %v3187_v19 = vsel %vm6007_vm2, %v5290_v20, %v3186_v36  ;;  %v3669_v18 = vunpack.c.l.b16 %v3613_v41  ;;  %v2654_v13 = vadd.f32 %v6752_v2, %v6775_v31  ;;  %v5274_v36 = vld [vmem:[%s5978_s23 + $0xe8] sm:$0xf]  ;;  %v5371_v31 = vld [vmem:[%s5978_s23 + $0xec] sm:$0x3] }
 0x285   : > { %3400 = vmatmul.bf16.gmra.mxu3 %v3260_v17  ;;  %v3243_v15 = vunpack.c.l.b16 %v3187_v19  ;;  %v3193_v20 = vrot.slane %v5274_v36, 5  ;;  %v3619_v2 = vrot.slane %v5274_v36, 6  ;;  %v3622_v35 = vrot.slane %v5371_v31, 6 }
 0x286   : > { %v3887_v57 = vmul.f32 %v7023_v26, %v3851_v52  ;;  %v5273_v52 = vld [vmem:[%s5978_s23 + $0xe4] sm:$0xe] }
 0x287   : > { %v2903_v45 = vpop.f32.mrf.mxu2  ;;  %v3261_v56 = vpack.c.b16 %v3244_v12, %v3243_v15  ;;  %v3621_v19 = vrot.slane %v3619_v2, 4 }
 0x288   : > { %v3361_v10 = vpop.f32.mrf.mxu3  ;;  %v2968_v0 = vadd.f32 %v2903_v45, %v6760_v48  ;;  %v3923_v25 = vadd.f32 %v7031_v34, %v3887_v57  ;;  %v3616_v48 = vsel %vm6279_vm5, %v3614_v47, %v3615_v55  ;;  %v5275_v57 = vld [vmem:[%s5978_s23 + $0xec] sm:$0x1]  ;;  %v5291_v47 = vrot.slane %v5273_v52, 9  ;;  %v5569_v52 = vld [vmem:[%s5978_s23 + $0xe4] sm:$0xff]  ;;  %s5473_s23 = sshll.u32 %s5966_s11, 7 }
 0x289   : > { %v3789_v49 = vpop.f32.mrf.mxu0  ;;  %v3670_v17 = vunpack.c.l.b16 %v3616_v48  ;;  %v3195_v55 = vrot.slane %v3193_v20, 4  ;;  %v3196_v45 = vrot.slane %v5275_v57, 5  ;;  %s7177_s12 = scalar_lea.vmem %s7413_s7, %s5473_s23  ;;  %s5786_s23 = scalar_lea.hbm %s5785_s25, 256 }
 0x28a   : > { %v3426_v59 = vadd.f32 %v3361_v10, %v2968_v0  ;;  %v3955_v44 = vmax.f32 %v3923_v25, 0.0  ;;  %v5387_v10 = vrot.slane %v5370_v46, 10  ;;  %p5787_p12 = scmp.ne.s32.totalorder %s5785_s25, %s5786_s23  ;;  %p5792_p2 = scmp.lt.s32.totalorder %s5790_s16, %s5786_s23 }
 0x28b   : > { %v3687_v22 = vpack.c.b16 %v3670_v17, %v3669_v18  ;;  %v3197_v48 = vsel %vm6007_vm2, %v3195_v55, %v3196_v45 }
 0x28c   : > { %v3982_v39 = vpack.c.bf16 %v3955_v44, %v3954_v30  ;;  %v3852_v42 = vadd.f32 %v3787_v63, %v3426_v59  ;;  %v3246_v36 = vunpack.c.l.b16 %v3197_v48  ;;  %p5788_p13 = pnand %p5787_p12, %p5937_p4  ;;  %p5793_p3 = por %p5792_p2, %p5791_p1 }
 0x28e   : > { %4086 = vmatmul.bf16.gmra.mxu1 %v3982_v39  ;;  %v3888_v29 = vmul.f32 %v7023_v26, %v3852_v42  ;;  %v3620_v39 = vsel %vm6279_vm5, %v5387_v10, %v3619_v2  ;;  %p5789_p0 = pneg %p5788_p13 }
 0x28f   : > { %v2905_v58 = vpop.f32.mrf.mxu2 }
 0x290   : > { %v3363_v11 = vpop.f32.mrf.mxu3  ;;  %v2969_v27 = vadd.f32 %v2905_v58, %v2654_v13  ;;  %v3924_v25 = vadd.f32 %v7031_v34, %v3888_v29  ;;  %v3623_v13 = vsel %vm6279_vm5, %v3621_v19, %v3622_v35  ;;  %v3671_v58 = vunpack.c.l.b16 %v3620_v39  ;;  %p5794_p5 = pnand %p5793_p3, %p5789_p0 }
 0x291   : > { %v3792_v43 = vpop.f32.mrf.mxu0 }
 0x292   : > { %v3427_v5 = vadd.f32 %v3363_v11, %v2969_v27  ;;  %v3956_v18 = vmax.f32 %v3924_v25, 0.0  ;;  %v3672_v11 = vunpack.c.l.b16 %v3623_v13  ;;  %v2658_v25 = vadd.f32 %v6808_v33, %v6826_v4 }
 0x294   : > { %v3853_v63 = vadd.f32 %v3789_v49, %v3427_v5  ;;  %2947 = vmatmul.bf16.gmra.mxu2 %v5568_v40  ;;  %3831 = vmatmul.bf16.gmra.mxu0 %v3687_v22  ;;  %v3194_v49 = vsel %vm6007_vm2, %v5291_v47, %v3193_v20  ;;  %v3688_v29 = vpack.c.b16 %v3672_v11, %v3671_v58 }
 0x295   : > { %3405 = vmatmul.bf16.gmra.mxu3 %v3261_v56  ;;  %v3245_v42 = vunpack.c.l.b16 %v3194_v49 }
 0x296   : > { %v3889_v0 = vmul.f32 %v7023_v26, %v3853_v63 }
 0x297   : > { %v2908_v41 = vpop.f32.mrf.mxu2  ;;  %v3262_v20 = vpack.c.b16 %v3246_v36, %v3245_v42  ;;  %v2660_v36 = vadd.f32 %v6833_v54, %v6848_v50 }
 0x298   : > { %v3366_v59 = vpop.f32.mrf.mxu3  ;;  %v2970_v30 = vadd.f32 %v2908_v41, %v6792_v32  ;;  %v3925_v44 = vadd.f32 %v7031_v34, %v3889_v0 }
 0x299   : > { %v3794_v12 = vpop.f32.mrf.mxu0 }
 0x29a   : > { %v3428_v15 = vadd.f32 %v3366_v59, %v2970_v30  ;;  %v3957_v17 = vmax.f32 %v3925_v44, 0.0 }
 0x29c   : > { %v3983_v32 = vpack.c.bf16 %v3957_v17, %v3956_v18  ;;  %v3854_v27 = vadd.f32 %v3792_v43, %v3428_v15 }
 0x29e   : > { %4091 = vmatmul.bf16.gmra.mxu1 %v3983_v32  ;;  %v3890_v5 = vmul.f32 %v7023_v26, %v3854_v27 }
 0x29f   : > { %v2910_v40 = vpop.f32.mrf.mxu2 }
 0x2a0   : > { %v3368_v56 = vpop.f32.mrf.mxu3  ;;  %v2971_v22 = vadd.f32 %v2910_v40, %v2656_v23  ;;  %v3926_v60 = vadd.f32 %v7031_v34, %v3890_v5 }
 0x2a1   : > { %v3797_v57 = vpop.f32.mrf.mxu0 }
 0x2a2   : > { %v3429_v38 = vadd.f32 %v3368_v56, %v2971_v22  ;;  %v3958_v45 = vmax.f32 %v3926_v60, 0.0  ;;  %v7170_v22 = vpop.f32.mrf.mxu1 }
 0x2a4   : > { %v3855_v46 = vadd.f32 %v3794_v12, %v3429_v38  ;;  %2952 = vmatmul.bf16.gmra.mxu2 %v5569_v52  ;;  %3836 = vmatmul.bf16.gmra.mxu0 %v3688_v29  ;;  %v7184_v38 = vld [vmem:[%s7411_s5] ss:$0 sm:$0xff] }
 0x2a5   : > { %3410 = vmatmul.bf16.gmra.mxu3 %v3262_v20 }
 0x2a6   : > { %v3891_v2 = vmul.f32 %v7023_v26, %v3855_v46  ;;  %v5604_v46 = vld [vmem:[%s7177_s12] sm:$0xff]  }
 0x2a7   : > { %v2913_v21 = vpop.f32.mrf.mxu2 }
 0x2a8   : > { %v3371_v43 = vpop.f32.mrf.mxu3  ;;  %v2972_v31 = vadd.f32 %v2913_v21, %v6814_v28  ;;  %v3927_v63 = vadd.f32 %v7031_v34, %v3891_v2  ;;  %v7191_v21 = vld [vmem:[%s7412_s6] ss:$0 sm:$0xff] }
 0x2a9   : > { %v3799_v55 = vpop.f32.mrf.mxu0 }
 0x2aa   : > { %v3430_v47 = vadd.f32 %v3371_v43, %v2972_v31  ;;  %v3959_v10 = vmax.f32 %v3927_v63, 0.0 }
 0x2ac   : > { %v3984_v0 = vpack.c.bf16 %v3959_v10, %v3958_v45  ;;  %v3856_v19 = vadd.f32 %v3797_v57, %v3430_v47  ;;  %v5605_v47 = vunpack.c.l.bf16 %v5604_v46  ;;  %v2662_v45 = vadd.f32 %v6855_v9, %v6873_v37 }
 0x2ae   : > { %4096 = vmatmul.bf16.gmra.mxu1 %v3984_v0  ;;  %v3892_v30 = vmul.f32 %v7023_v26, %v3856_v19 }
 0x2af   : > { %v2915_v35 = vpop.f32.mrf.mxu2 }
 0x2b0   : > { %v3373_v41 = vpop.f32.mrf.mxu3  ;;  %v2973_v59 = vadd.f32 %v2915_v35, %v2658_v25  ;;  %v3928_v39 = vadd.f32 %v7031_v34, %v3892_v30 }
 0x2b1   : > { %v3802_v49 = vpop.f32.mrf.mxu0 }
 0x2b2   : > { %v3431_v44 = vadd.f32 %v3373_v41, %v2973_v59  ;;  %v3960_v13 = vmax.f32 %v3928_v39, 0.0 }
 0x2b4   : > { %v3857_v28 = vadd.f32 %v3799_v55, %v3431_v44 }
 0x2b6   : > { %v3893_v48 = vmul.f32 %v7023_v26, %v3857_v28 }
 0x2b7   : > { %v2918_v15 = vpop.f32.mrf.mxu2 }
 0x2b8   : > { %v3376_v12 = vpop.f32.mrf.mxu3  ;;  %v2974_v18 = vadd.f32 %v2918_v15, %v6839_v3  ;;  %v3929_v33 = vadd.f32 %v7031_v34, %v3893_v48  ;;  %v5606_v48 = vunpack.c.h.bf16 %v5604_v46 }
 0x2b9   : > { %v3804_v17 = vpop.f32.mrf.mxu0 }
 0x2ba   : > { %v3432_v4 = vadd.f32 %v3376_v12, %v2974_v18  ;;  %v3961_v32 = vmax.f32 %v3929_v33, 0.0 }
 0x2bc   : > { %v3985_v42 = vpack.c.bf16 %v3961_v32, %v3960_v13  ;;  %v3858_v58 = vadd.f32 %v3802_v49, %v3432_v4  ;;  %v5667_v32 = vld [vmem:[%s7177_s12 + $0x8] sm:$0xff]  }
 0x2be   : > { %4101 = vmatmul.bf16.gmra.mxu1 %v3985_v42  ;;  %v3894_v40 = vmul.f32 %v7023_v26, %v3858_v58 }
 0x2bf   : > { %v2920_v11 = vpop.f32.mrf.mxu2 }
 0x2c0   : > { %v3378_v23 = vpop.f32.mrf.mxu3  ;;  %v2975_v27 = vadd.f32 %v2920_v11, %v2660_v36  ;;  %v3930_v54 = vadd.f32 %v7031_v34, %v3894_v40 }
 0x2c1   : > { %v3807_v3 = vpop.f32.mrf.mxu0 }
 0x2c2   : > { %v3433_v56 = vadd.f32 %v3378_v23, %v2975_v27  ;;  %v3962_v43 = vmax.f32 %v3930_v54, 0.0 }
 0x2c4   : > { %v3859_v52 = vadd.f32 %v3804_v17, %v3433_v56  ;;  %v5609_v56 = vunpack.c.l.bf16 %v5667_v32 }
 0x2c6   : > { %v3895_v20 = vmul.f32 %v7023_v26, %v3859_v52  ;;  %v2664_v52 = vadd.f32 %v6880_v8, %v6895_v7  ;;  %v5610_v8 = vunpack.c.h.bf16 %v5667_v32 }
 0x2c7   : > { %v2923_v50 = vpop.f32.mrf.mxu2 }
 0x2c8   : > { %v3381_v29 = vpop.f32.mrf.mxu3  ;;  %v2976_v5 = vadd.f32 %v2923_v50, %v6861_v61  ;;  %v3931_v57 = vadd.f32 %v7031_v34, %v3895_v20 }
 0x2c9   : > { %v3809_v60 = vpop.f32.mrf.mxu0 }
 0x2ca   : > { %v3434_v2 = vadd.f32 %v3381_v29, %v2976_v5  ;;  %v3963_v31 = vmax.f32 %v3931_v57, 0.0 }
 0x2cb   : > { %v4067_v61 = vpop.f32.mrf.mxu1 }
 0x2cc   : > { %v4151_v63 = vmul.f32 %v7184_v38, %v4067_v61  ;;  %v3986_v55 = vpack.c.bf16 %v3963_v31, %v3962_v43  ;;  %v3860_v10 = vadd.f32 %v3807_v3, %v3434_v2 }
 0x2ce   : > { %v4187_v0 = vadd.f32 %v7191_v21, %v4151_v63  ;;  %4106 = vmatmul.bf16.gmra.mxu1 %v3986_v55  ;;  %v3896_v59 = vmul.f32 %v7023_v26, %v3860_v10 }
 0x2cf   : > { %v2925_v25 = vpop.f32.mrf.mxu2 }
 0x2d0   : > { %v3383_v19 = vpop.f32.mrf.mxu3  ;;  %v4283_v35 = vadd.f32 %v5605_v47, %v4187_v0  ;;  %v2977_v41 = vadd.f32 %v2925_v25, %v2662_v45  ;;  %v3932_v12 = vadd.f32 %v7031_v34, %v3896_v59 }
 0x2d1   : > { %v3812_v49 = vpop.f32.mrf.mxu0 }
 0x2d2   : > { %v4315_v30 = vmax.f32 %v4283_v35, 0.0  ;;  %v3435_v44 = vadd.f32 %v3383_v19, %v2977_v41  ;;  %v3964_v11 = vmax.f32 %v3932_v12, 0.0  ;;  %v5668_v19 = vld [vmem:[%s7177_s12 + $0x10] sm:$0xff]  }
 0x2d3   : > { %v4069_v28 = vpop.f32.mrf.mxu1 }
 0x2d4   : > { %4347 = vst [vmem:[%s7201_s24] sm:$0xff] %v4315_v30  ;;  %v3861_v9 = vadd.f32 %v3809_v60, %v3435_v44  ;;  %v4152_v37 = vmul.f32 %v7184_v38, %v4069_v28 }
 0x2d6   : > { %v3897_v39 = vmul.f32 %v7023_v26, %v3861_v9  ;;  %v4188_v15 = vadd.f32 %v7191_v21, %v4152_v37  ;;  %v5613_v9 = vunpack.c.l.bf16 %v5668_v19 }
 0x2d7   : > { %v2928_v18 = vpop.f32.mrf.mxu2 }
 0x2d8   : > { %v3386_v33 = vpop.f32.mrf.mxu3  ;;  %v4284_v4 = vadd.f32 %v5606_v48, %v4188_v15  ;;  %v2978_v17 = vadd.f32 %v2928_v18, %v6886_v51  ;;  %v3933_v13 = vadd.f32 %v7031_v34, %v3897_v39  ;;  %v7430_v48 = vld [vmem:[#allocation6_spill] sm:$0xff] }
 0x2d9   : > { %v3814_v58 = vpop.f32.mrf.mxu0  ;;  %v2666_v39 = vadd.f32 %v7430_v48, %v6920_v16  ;;  %v5614_v16 = vunpack.c.h.bf16 %v5668_v19 }
 0x2da   : > { %v4316_v42 = vmax.f32 %v4284_v4, 0.0  ;;  %v3436_v36 = vadd.f32 %v3386_v33, %v2978_v17  ;;  %v3965_v23 = vmax.f32 %v3933_v13, 0.0 }
 0x2db   : > { %v4072_v27 = vpop.f32.mrf.mxu1 }
 0x2dc   : > { %4348 = vst [vmem:[%s7201_s24 + $0x8] sm:$0xff] %v4316_v42  ;;  %v4153_v40 = vmul.f32 %v7184_v38, %v4072_v27  ;;  %v3987_v3 = vpack.c.bf16 %v3965_v23, %v3964_v11  ;;  %v3862_v20 = vadd.f32 %v3812_v49, %v3436_v36 }
 0x2de   : > { %v4189_v51 = vadd.f32 %v7191_v21, %v4153_v40  ;;  %4111 = vmatmul.bf16.gmra.mxu1 %v3987_v3  ;;  %v3898_v57 = vmul.f32 %v7023_v26, %v3862_v20 }
 0x2df   : > { %v2930_v54 = vpop.f32.mrf.mxu2 }
 0x2e0   : > { %v3388_v50 = vpop.f32.mrf.mxu3  ;;  %v4285_v29 = vadd.f32 %v5609_v56, %v4189_v51  ;;  %v2979_v5 = vadd.f32 %v2930_v54, %v2664_v52  ;;  %v3934_v47 = vadd.f32 %v7031_v34, %v3898_v57  ;;  %v5669_v54 = vld [vmem:[%s7177_s12 + $0x18] sm:$0xff]  }
 0x2e1   : > { %v3817_v60 = vpop.f32.mrf.mxu0 }
 0x2e2   : > { %v4317_v46 = vmax.f32 %v4285_v29, 0.0  ;;  %v3437_v2 = vadd.f32 %v3388_v50, %v2979_v5  ;;  %v3966_v30 = vmax.f32 %v3934_v47, 0.0 }
 0x2e3   : > { %v4074_v43 = vpop.f32.mrf.mxu1 }
 0x2e4   : > { %4349 = vst [vmem:[%s7201_s24 + $0x10] sm:$0xff] %v4317_v46  ;;  %v3863_v31 = vadd.f32 %v3814_v58, %v3437_v2  ;;  %v4154_v61 = vmul.f32 %v7184_v38, %v4074_v43  ;;  %v5617_v43 = vunpack.c.l.bf16 %v5669_v54 }
 0x2e6   : > { %v3899_v7 = vmul.f32 %v7023_v26, %v3863_v31  ;;  %v4190_v63 = vadd.f32 %v7191_v21, %v4154_v61  ;;  %v7431_v61 = vld [vmem:[#allocation7_spill] sm:$0xff] }
 0x2e7   : > { %v2933_v55 = vpop.f32.mrf.mxu2 }
 0x2e8   : > { %v3391_v45 = vpop.f32.mrf.mxu3  ;;  %v4286_v10 = vadd.f32 %v5610_v8, %v4190_v63  ;;  %v2980_v0 = vadd.f32 %v2933_v55, %v6908_v53  ;;  %v3935_v25 = vadd.f32 %v7031_v34, %v3899_v7  ;;  %v2668_v8 = vadd.f32 %v7431_v61, %v6942_v1  ;;  %v5671_v61 = vld [vmem:[%s7177_s12 + $0x28] sm:$0xff]  }
 0x2e9   : > { %v3819_v59 = vpop.f32.mrf.mxu0  ;;  %v5618_v1 = vunpack.c.h.bf16 %v5669_v54 }
 0x2ea   : > { %v4318_v35 = vmax.f32 %v4286_v10, 0.0  ;;  %v3438_v41 = vadd.f32 %v3391_v45, %v2980_v0  ;;  %v3967_v44 = vmax.f32 %v3935_v25, 0.0 }
 0x2eb   : > { %v4077_v49 = vpop.f32.mrf.mxu1 }
 0x2ec   : > { %4350 = vst [vmem:[%s7201_s24 + $0x18] sm:$0xff] %v4318_v35  ;;  %v4155_v28 = vmul.f32 %v7184_v38, %v4077_v49  ;;  %v3988_v37 = vpack.c.bf16 %v3967_v44, %v3966_v30  ;;  %v3864_v15 = vadd.f32 %v3817_v60, %v3438_v41 }
 0x2ee   : > { %v4191_v53 = vadd.f32 %v7191_v21, %v4155_v28  ;;  %4116 = vmatmul.bf16.gmra.mxu1 %v3988_v37  ;;  %v3900_v17 = vmul.f32 %v7023_v26, %v3864_v15  ;;  %v5670_v15 = vld [vmem:[%s7177_s12 + $0x20] sm:$0xff]  }
 0x2ef   : > { %v2935_v12 = vpop.f32.mrf.mxu2  ;;  %v5622_v54 = vunpack.c.h.bf16 %v5670_v15 }
 0x2f0   : > { %v3393_v18 = vpop.f32.mrf.mxu3  ;;  %v4287_v33 = vadd.f32 %v5613_v9, %v4191_v53  ;;  %v2981_v4 = vadd.f32 %v2935_v12, %v2666_v39  ;;  %v3936_v40 = vadd.f32 %v7031_v34, %v3900_v17 }
 0x2f1   : > { %v3822_v42 = vpop.f32.mrf.mxu0 }
 0x2f2   : > { %v4319_v13 = vmax.f32 %v4287_v33, 0.0  ;;  %v3439_v32 = vadd.f32 %v3393_v18, %v2981_v4  ;;  %v3968_v57 = vmax.f32 %v3936_v40, 0.0 }
 0x2f3   : > { %v4079_v36 = vpop.f32.mrf.mxu1 }
 0x2f4   : > { %4351 = vst [vmem:[%s7201_s24 + $0x20] sm:$0xff] %v4319_v13  ;;  %v3865_v58 = vadd.f32 %v3819_v59, %v3439_v32  ;;  %v4156_v11 = vmul.f32 %v7184_v38, %v4079_v36  ;;  %v5621_v13 = vunpack.c.l.bf16 %v5670_v15  ;;  %v5626_v15 = vunpack.c.h.bf16 %v5671_v61 }
 0x2f6   : > { %v3901_v23 = vmul.f32 %v7023_v26, %v3865_v58  ;;  %v4192_v27 = vadd.f32 %v7191_v21, %v4156_v11 }
 0x2f7   : > { %v2938_v56 = vpop.f32.mrf.mxu2 }
 0x2f8   : > { %v3396_v3 = vpop.f32.mrf.mxu3  ;;  %v4288_v52 = vadd.f32 %v5614_v16, %v4192_v27  ;;  %v2982_v20 = vadd.f32 %v2938_v56, %v6933_v62  ;;  %v3937_v51 = vadd.f32 %v7031_v34, %v3901_v23  ;;  %v7261_v27 = vld [vmem:[%s7408_s2] ss:$0 sm:$0xff] }
 0x2f9   : > { %v3824_v5 = vpop.f32.mrf.mxu0 }
 0x2fa   : > { %v4320_v50 = vmax.f32 %v4288_v52, 0.0  ;;  %v3440_v29 = vadd.f32 %v3396_v3, %v2982_v20  ;;  %v3969_v46 = vmax.f32 %v3937_v51, 0.0 }
 0x2fb   : > { %v4082_v2 = vpop.f32.mrf.mxu1 }
 0x2fc   : > { %4352 = vst [vmem:[%s7201_s24 + $0x28] sm:$0xff] %v4320_v50  ;;  %v4157_v60 = vmul.f32 %v7184_v38, %v4082_v2  ;;  %v3989_v31 = vpack.c.bf16 %v3969_v46, %v3968_v57  ;;  %v3866_v7 = vadd.f32 %v3822_v42, %v3440_v29  ;;  %v7432_v42 = vld [vmem:[#allocation8_spill] sm:$0xff] }
 0x2fd   : > { %v2670_v36 = vadd.f32 %v7432_v42, %v6967_v14 }
 0x2fe   : > { %v4193_v62 = vadd.f32 %v7191_v21, %v4157_v60  ;;  %4121 = vmatmul.bf16.gmra.mxu1 %v3989_v31  ;;  %v3902_v10 = vmul.f32 %v7023_v26, %v3866_v7 }
 0x2ff   : > { %v2940_v63 = vpop.f32.mrf.mxu2 }
 0x300   : > { %v3398_v47 = vpop.f32.mrf.mxu3  ;;  %v4289_v55 = vadd.f32 %v5617_v43, %v4193_v62  ;;  %v2983_v45 = vadd.f32 %v2940_v63, %v2668_v8  ;;  %v3938_v49 = vadd.f32 %v7031_v34, %v3902_v10 }
 0x301   : > { %v3827_v19 = vpop.f32.mrf.mxu0 }
 0x302   : > { %v4321_v0 = vmax.f32 %v4289_v55, 0.0  ;;  %v3441_v25 = vadd.f32 %v3398_v47, %v2983_v45  ;;  %v3970_v33 = vmax.f32 %v3938_v49, 0.0  ;;  %v5625_v45 = vunpack.c.l.bf16 %v5671_v61 }
 0x303   : > { %v4084_v35 = vpop.f32.mrf.mxu1 }
 0x304   : > { %4353 = vst [vmem:[%s7201_s24 + $0x30] sm:$0xff] %v4321_v0  ;;  %v3867_v41 = vadd.f32 %v3824_v5, %v3441_v25  ;;  %v4158_v59 = vmul.f32 %v7184_v38, %v4084_v35  ;;  %v7271_v5 = vld [vmem:[%s7409_s3] ss:$0 sm:$0xff]  ;;  %v7433_v0 = vld [vmem:[#allocation10_spill] sm:$0xff] }
 0x305   : > { %v7434_v25 = vld [vmem:[#allocation9_spill] sm:$0xff] }
 0x306   : > { %v3903_v30 = vmul.f32 %v7023_v26, %v3867_v41  ;;  %v4194_v44 = vadd.f32 %v7191_v21, %v4158_v59 }
 0x307   : > { %v2943_v28 = vpop.f32.mrf.mxu2 }
 0x308   : > { %v3401_v9 = vpop.f32.mrf.mxu3  ;;  %v4290_v37 = vadd.f32 %v5618_v1, %v4194_v44  ;;  %v2984_v48 = vadd.f32 %v2943_v28, %v6955_v6  ;;  %v3939_v39 = vadd.f32 %v7031_v34, %v3903_v30 }
 0x309   : > { %v3829_v18 = vpop.f32.mrf.mxu0 }
 0x30a   : > { %v4322_v53 = vmax.f32 %v4290_v37, 0.0  ;;  %v3442_v12 = vadd.f32 %v3401_v9, %v2984_v48  ;;  %v3971_v4 = vmax.f32 %v3939_v39, 0.0 }
 0x30b   : > { %v4087_v17 = vpop.f32.mrf.mxu1 }
 0x30c   : > { %4354 = vst [vmem:[%s7201_s24 + $0x38] sm:$0xff] %v4322_v53  ;;  %v4159_v26 = vmul.f32 %v7184_v38, %v4087_v17  ;;  %v3990_v32 = vpack.c.bf16 %v3971_v4, %v3970_v33  ;;  %v3868_v58 = vadd.f32 %v3827_v19, %v3442_v12  ;;  %v2672_v19 = vadd.f32 %v7434_v25, %v7433_v0 }
 0x30e   : > { %v4195_v6 = vadd.f32 %v7191_v21, %v4159_v26  ;;  %4126 = vmatmul.bf16.gmra.mxu1 %v3990_v32  ;;  %v3904_v40 = vmul.f32 %v7261_v27, %v3868_v58  ;;  %v7435_v26 = vld [vmem:[#allocation11_spill] sm:$0xff] }
 0x30f   : > { %v2945_v34 = vpop.f32.mrf.mxu2 }
 0x310   : > { %v3403_v11 = vpop.f32.mrf.mxu3  ;;  %v4291_v16 = vadd.f32 %v5621_v13, %v4195_v6  ;;  %v2985_v23 = vadd.f32 %v2945_v34, %v2670_v36  ;;  %v3940_v57 = vadd.f32 %v7271_v5, %v3904_v40  ;;  %v5672_v36 = vld [vmem:[%s7177_s12 + $0x30] sm:$0xff]  }
 0x311   : > { %v3832_v20 = vpop.f32.mrf.mxu0  ;;  %v5629_v40 = vunpack.c.l.bf16 %v5672_v36  ;;  %v5630_v61 = vunpack.c.h.bf16 %v5672_v36 }
 0x312   : > { %v4323_v56 = vmax.f32 %v4291_v16, 0.0  ;;  %v3443_v3 = vadd.f32 %v3403_v11, %v2985_v23  ;;  %v3972_v62 = vmax.f32 %v3940_v57, 0.0 }
 0x313   : > { %v4089_v52 = vpop.f32.mrf.mxu1 }
 0x314   : > { %4355 = vst [vmem:[%s7201_s24 + $0x40] sm:$0xff] %v4323_v56  ;;  %v3869_v14 = vadd.f32 %v3829_v18, %v3443_v3  ;;  %v4160_v51 = vmul.f32 %v7184_v38, %v4089_v52  ;;  %v7436_v3 = vld [vmem:[#allocation12_spill] sm:$0xff] }
 0x315   : > { %v2674_v52 = vadd.f32 %v7170_v22, %v7436_v3 }
 0x316   : > { %v3905_v50 = vmul.f32 %v7261_v27, %v3869_v14  ;;  %v4196_v29 = vadd.f32 %v7191_v21, %v4160_v51 }
 0x317   : > { %v2948_v46 = vpop.f32.mrf.mxu2 }
 0x318   : > { %v3406_v2 = vpop.f32.mrf.mxu3  ;;  %v4292_v60 = vadd.f32 %v5622_v54, %v4196_v29  ;;  %v2986_v43 = vadd.f32 %v2948_v46, %v6978_v24  ;;  %v3941_v31 = vadd.f32 %v7271_v5, %v3905_v50 }
 0x319   : > { %v3834_v41 = vpop.f32.mrf.mxu0 }
 0x31a   : > { %v4324_v8 = vmax.f32 %v4292_v60, 0.0  ;;  %v3444_v7 = vadd.f32 %v3406_v2, %v2986_v43  ;;  %v3973_v63 = vmax.f32 %v3941_v31, 0.0 }
 0x31b   : > { %v4092_v47 = vpop.f32.mrf.mxu1 }
 0x31c   : > { %4356 = vst [vmem:[%s7201_s24 + $0x48] sm:$0xff] %v4324_v8  ;;  %v4161_v55 = vmul.f32 %v7184_v38, %v4092_v47  ;;  %v3991_v10 = vpack.c.bf16 %v3973_v63, %v3972_v62  ;;  %v3870_v35 = vadd.f32 %v3832_v20, %v3444_v7 }
 0x31e   : > { %v4197_v24 = vadd.f32 %v7191_v21, %v4161_v55  ;;  %4131 = vmatmul.bf16.gmra.mxu1 %v3991_v10  ;;  %v3906_v49 = vmul.f32 %v7261_v27, %v3870_v35  ;;  %v5673_v55 = vld [vmem:[%s7177_s12 + $0x38] sm:$0xff]  }
 0x31f   : > { %v2950_v59 = vpop.f32.mrf.mxu2  ;;  %v5633_v35 = vunpack.c.l.bf16 %v5673_v55 }
 0x320   : > { %v3408_v1 = vpop.f32.mrf.mxu3  ;;  %v4293_v30 = vadd.f32 %v5625_v45, %v4197_v24  ;;  %v2987_v44 = vadd.f32 %v2950_v59, %v2672_v19  ;;  %v3942_v18 = vadd.f32 %v7271_v5, %v3906_v49 }
 0x321   : > { %v3837_v42 = vpop.f32.mrf.mxu0 }
 0x322   : > { %v4325_v28 = vmax.f32 %v4293_v30, 0.0  ;;  %v3445_v9 = vadd.f32 %v3408_v1, %v2987_v44  ;;  %v3974_v34 = vmax.f32 %v3942_v18, 0.0  ;;  %v5634_v30 = vunpack.c.h.bf16 %v5673_v55 }
 0x323   : > { %v4094_v37 = vpop.f32.mrf.mxu1 }
 0x324   : > { %4357 = vst [vmem:[%s7201_s24 + $0x50] sm:$0xff] %v4325_v28  ;;  %v3871_v48 = vadd.f32 %v3834_v41, %v3445_v9  ;;  %v4162_v39 = vmul.f32 %v7184_v38, %v4094_v37  ;;  %v5674_v28 = vld [vmem:[%s7177_s12 + $0x40] sm:$0xff]  }
 0x326   : > { %v3907_v53 = vmul.f32 %v7261_v27, %v3871_v48  ;;  %v4198_v12 = vadd.f32 %v7191_v21, %v4162_v39  ;;  %v5637_v39 = vunpack.c.l.bf16 %v5674_v28 }
 0x327   : > { %v2953_v33 = vpop.f32.mrf.mxu2 }
 0x328   : > { %v3411_v4 = vpop.f32.mrf.mxu3  ;;  %v4294_v17 = vadd.f32 %v5626_v15, %v4198_v12  ;;  %v2988_v13 = vadd.f32 %v2953_v33, %v7435_v26  ;;  %v3943_v32 = vadd.f32 %v7271_v5, %v3907_v53 }
 0x329   : > { %v3839_v60 = vpop.f32.mrf.mxu0 }
 0x32a   : > { %v4326_v58 = vmax.f32 %v4294_v17, 0.0  ;;  %v3446_v6 = vadd.f32 %v3411_v4, %v2988_v13  ;;  %v3975_v11 = vmax.f32 %v3943_v32, 0.0  ;;  %v5638_v4 = vunpack.c.h.bf16 %v5674_v28  ;;  %v5675_v13 = vld [vmem:[%s7177_s12 + $0x48] sm:$0xff]  }
 0x32b   : > { %v4097_v16 = vpop.f32.mrf.mxu1 }
 0x32c   : > { %4358 = vst [vmem:[%s7201_s24 + $0x58] sm:$0xff] %v4326_v58  ;;  %v4163_v23 = vmul.f32 %v7184_v38, %v4097_v16  ;;  %v3992_v56 = vpack.c.bf16 %v3975_v11, %v3974_v34  ;;  %v3872_v14 = vadd.f32 %v3837_v42, %v3446_v6  ;;  %v5641_v58 = vunpack.c.l.bf16 %v5675_v13 }
 0x32e   : > { %v4199_v20 = vadd.f32 %v7191_v21, %v4163_v23  ;;  %4136 = vmatmul.bf16.gmra.mxu1 %v3992_v56  ;;  %v3908_v57 = vmul.f32 %v7261_v27, %v3872_v14 }
 0x32f   : > { %v2955_v51 = vpop.f32.mrf.mxu2 }
 0x330   : > { %v4295_v54 = vadd.f32 %v5629_v40, %v4199_v20  ;;  %v2989_v50 = vadd.f32 %v2955_v51, %v2674_v52  ;;  %v3413_v29 = vpop.f32.mrf.mxu3  ;;  %v3944_v62 = vadd.f32 %v7271_v5, %v3908_v57  ;;  %v5642_v40 = vunpack.c.h.bf16 %v5675_v13  ;;  %v5676_v52 = vld [vmem:[%s7177_s12 + $0x50] sm:$0xff]  }
 0x332   : > { %v4327_v46 = vmax.f32 %v4295_v54, 0.0  ;;  %v3447_v2 = vadd.f32 %v3413_v29, %v2989_v50  ;;  %v3976_v10 = vmax.f32 %v3944_v62, 0.0  ;;  %v5645_v54 = vunpack.c.l.bf16 %v5676_v52 }
 0x333   : > { %v4099_v43 = vpop.f32.mrf.mxu1 }
 0x334   : > { %4359 = vst [vmem:[%s7201_s24 + $0x60] sm:$0xff] %v4327_v46  ;;  %v3873_v31 = vadd.f32 %v3839_v60, %v3447_v2  ;;  %v4164_v22 = vmul.f32 %v7184_v38, %v4099_v43  ;;  %v5646_v60 = vunpack.c.h.bf16 %v5676_v52 }
 0x336   : > { %v3909_v8 = vmul.f32 %v7261_v27, %v3873_v31  ;;  %v4200_v7 = vadd.f32 %v7191_v21, %v4164_v22  ;;  %v5677_v22 = vld [vmem:[%s7177_s12 + $0x58] sm:$0xff]  }
 0x337   : > { %v5649_v62 = vunpack.c.l.bf16 %v5677_v22 }
 0x338   : > { %v4296_v63 = vadd.f32 %v5630_v61, %v4200_v7  ;;  %v3945_v47 = vadd.f32 %v7271_v5, %v3909_v8 }
 0x33a   : > { %v4328_v45 = vmax.f32 %v4296_v63, 0.0  ;;  %v3977_v0 = vmax.f32 %v3945_v47, 0.0 }
 0x33b   : > { %v4102_v25 = vpop.f32.mrf.mxu1 }
 0x33c   : > { %4360 = vst [vmem:[%s7201_s24 + $0x68] sm:$0xff] %v4328_v45  ;;  %v4165_v19 = vmul.f32 %v7184_v38, %v4102_v25  ;;  %v3993_v27 = vpack.c.bf16 %v3977_v0, %v3976_v10  ;;  %v5650_v0 = vunpack.c.h.bf16 %v5677_v22 }
 0x33e   : > { %v4201_v41 = vadd.f32 %v7191_v21, %v4165_v19  ;;  %4141 = vmatmul.bf16.gmra.mxu1 %v3993_v27 }
 0x340   : > { %v4297_v24 = vadd.f32 %v5633_v35, %v4201_v41  ;;  %v5678_v35 = vld [vmem:[%s7177_s12 + $0x60] sm:$0xff]  }
 0x341   : > { %v5654_v28 = vunpack.c.h.bf16 %v5678_v35 }
 0x342   : > { %v4329_v59 = vmax.f32 %v4297_v24, 0.0 }
 0x343   : > { %v4104_v1 = vpop.f32.mrf.mxu1 }
 0x344   : > { %4361 = vst [vmem:[%s7201_s24 + $0x70] sm:$0xff] %v4329_v59  ;;  %v4166_v5 = vmul.f32 %v7184_v38, %v4104_v1  ;;  %v5653_v59 = vunpack.c.l.bf16 %v5678_v35 }
 0x346   : > { %v4202_v44 = vadd.f32 %v7191_v21, %v4166_v5 }
 0x348   : > { %v4298_v49 = vadd.f32 %v5634_v30, %v4202_v44 }
 0x34a   : > { %v4330_v9 = vmax.f32 %v4298_v49, 0.0 }
 0x34b   : > { %v4107_v37 = vpop.f32.mrf.mxu1 }
 0x34c   : > { %4362 = vst [vmem:[%s7201_s24 + $0x78] sm:$0xff] %v4330_v9  ;;  %v4167_v48 = vmul.f32 %v7184_v38, %v4107_v37 }
 0x34e   : > { %v4203_v15 = vadd.f32 %v7191_v21, %v4167_v48  ;;  %v5679_v48 = vld [vmem:[%s7177_s12 + $0x68] sm:$0xff]  }
 0x34f   : > { %v5658_v13 = vunpack.c.h.bf16 %v5679_v48 }
 0x350   : > { %v4299_v53 = vadd.f32 %v5637_v39, %v4203_v15 }
 0x352   : > { %v4331_v12 = vmax.f32 %v4299_v53, 0.0 }
 0x353   : > { %v4109_v18 = vpop.f32.mrf.mxu1 }
 0x354   : > { %4363 = vst [vmem:[%s7201_s24 + $0x80] sm:$0xff] %v4331_v12  ;;  %v4168_v33 = vmul.f32 %v7184_v38, %v4109_v18  ;;  %v5657_v12 = vunpack.c.l.bf16 %v5679_v48 }
 0x356   : > { %v4204_v17 = vadd.f32 %v7191_v21, %v4168_v33 }
 0x358   : > { %v4300_v26 = vadd.f32 %v5638_v4, %v4204_v17 }
 0x35a   : > { %v4332_v32 = vmax.f32 %v4300_v26, 0.0 }
 0x35b   : > { %v4112_v42 = vpop.f32.mrf.mxu1 }
 0x35c   : > { %4364 = vst [vmem:[%s7201_s24 + $0x88] sm:$0xff] %v4332_v32  ;;  %v4169_v36 = vmul.f32 %v7184_v38, %v4112_v42 }
 0x35e   : > { %v4205_v6 = vadd.f32 %v7191_v21, %v4169_v36  ;;  %v5680_v36 = vld [vmem:[%s7177_s12 + $0x70] sm:$0xff]  }
 0x35f   : > { %v5662_v52 = vunpack.c.h.bf16 %v5680_v36 }
 0x360   : > { %v4301_v34 = vadd.f32 %v5641_v58, %v4205_v6 }
 0x362   : > { %v4333_v11 = vmax.f32 %v4301_v34, 0.0 }
 0x363   : > { %v4114_v16 = vpop.f32.mrf.mxu1 }
 0x364   : > { %4365 = vst [vmem:[%s7201_s24 + $0x90] sm:$0xff] %v4333_v11  ;;  %v4170_v23 = vmul.f32 %v7184_v38, %v4114_v16  ;;  %v5661_v11 = vunpack.c.l.bf16 %v5680_v36 }
 0x366   : > { %v4206_v56 = vadd.f32 %v7191_v21, %v4170_v23 }
 0x368   : > { %v4302_v3 = vadd.f32 %v5642_v40, %v4206_v56 }
 0x36a   : > { %v4334_v14 = vmax.f32 %v4302_v3, 0.0 }
 0x36b   : > { %v4117_v20 = vpop.f32.mrf.mxu1 }
 0x36c   : > { %4366 = vst [vmem:[%s7201_s24 + $0x98] sm:$0xff] %v4334_v14  ;;  %v4171_v51 = vmul.f32 %v7184_v38, %v4117_v20 }
 0x36e   : > { %v4207_v50 = vadd.f32 %v7191_v21, %v4171_v51  ;;  %v5681_v51 = vld [vmem:[%s7177_s12 + $0x78] sm:$0xff]   ;;  %s4392_s12 = sshll.u32 %s7201_s24, 4  ;;  %s4393_s12 = int_to_ptr.vmem [resolvable:$true] %s4392_s12 }
 0x36f   : > { %v5666_v22 = vunpack.c.h.bf16 %v5681_v51 }
 0x370   : > { %v4303_v29 = vadd.f32 %v5645_v54, %v4207_v50 }
 0x372   : > { %v4335_v57 = vmax.f32 %v4303_v29, 0.0 }
 0x373   : > { %v4119_v46 = vpop.f32.mrf.mxu1 }
 0x374   : > { %4367 = vst [vmem:[%s7201_s24 + $0xa0] sm:$0xff] %v4335_v57  ;;  %v4172_v2 = vmul.f32 %v7184_v38, %v4119_v46  ;;  %v5665_v57 = vunpack.c.l.bf16 %v5681_v51 }
 0x376   : > { %v4208_v43 = vadd.f32 %v7191_v21, %v4172_v2 }
 0x378   : > { %v4304_v31 = vadd.f32 %v5646_v60, %v4208_v43 }
 0x37a   : > { %v4336_v61 = vmax.f32 %v4304_v31, 0.0 }
 0x37b   : > { %v4122_v8 = vpop.f32.mrf.mxu1 }
 0x37c   : > { %4368 = vst [vmem:[%s7201_s24 + $0xa8] sm:$0xff] %v4336_v61  ;;  %v4173_v7 = vmul.f32 %v7184_v38, %v4122_v8 }
 0x37e   : > { %v4209_v63 = vadd.f32 %v7191_v21, %v4173_v7 }
 0x380   : > { %v4305_v47 = vadd.f32 %v5649_v62, %v4209_v63 }
 0x382   : > { %v4337_v55 = vmax.f32 %v4305_v47, 0.0 }
 0x383   : > { %v4124_v45 = vpop.f32.mrf.mxu1 }
 0x384   : > { %4369 = vst [vmem:[%s7201_s24 + $0xb0] sm:$0xff] %v4337_v55  ;;  %v4174_v10 = vmul.f32 %v7184_v38, %v4124_v45 }
 0x386   : > { %v4210_v25 = vadd.f32 %v7191_v21, %v4174_v10 }
 0x388   : > { %v4306_v19 = vadd.f32 %v5650_v0, %v4210_v25 }
 0x38a   : > { %v4338_v27 = vmax.f32 %v4306_v19, 0.0 }
 0x38b   : > { %v4127_v41 = vpop.f32.mrf.mxu1 }
 0x38c   : > { %4370 = vst [vmem:[%s7201_s24 + $0xb8] sm:$0xff] %v4338_v27  ;;  %v4175_v24 = vmul.f32 %v7184_v38, %v4127_v41 }
 0x38e   : > { %v4211_v1 = vadd.f32 %v7191_v21, %v4175_v24 }
 0x390   : > { %v4307_v5 = vadd.f32 %v5653_v59, %v4211_v1 }
 0x392   : > { %v4339_v30 = vmax.f32 %v4307_v5, 0.0 }
 0x393   : > { %v4129_v44 = vpop.f32.mrf.mxu1 }
 0x394   : > { %4371 = vst [vmem:[%s7201_s24 + $0xc0] sm:$0xff] %v4339_v30  ;;  %v4176_v49 = vmul.f32 %v7184_v38, %v4129_v44 }
 0x396   : > { %v4212_v9 = vadd.f32 %v7191_v21, %v4176_v49 }
 0x398   : > { %v4308_v37 = vadd.f32 %v5654_v28, %v4212_v9 }
 0x39a   : > { %v4340_v39 = vmax.f32 %v4308_v37, 0.0 }
 0x39b   : > { %v4132_v15 = vpop.f32.mrf.mxu1 }
 0x39c   : > { %4372 = vst [vmem:[%s7201_s24 + $0xc8] sm:$0xff] %v4340_v39  ;;  %v4177_v53 = vmul.f32 %v7184_v38, %v4132_v15 }
 0x39e   : > { %v4213_v18 = vadd.f32 %v7191_v21, %v4177_v53 }
 0x3a0   : > { %v4309_v33 = vadd.f32 %v5657_v12, %v4213_v18 }
 0x3a2   : > { %v4341_v4 = vmax.f32 %v4309_v33, 0.0 }
 0x3a3   : > { %v4134_v17 = vpop.f32.mrf.mxu1 }
 0x3a4   : > { %4373 = vst [vmem:[%s7201_s24 + $0xd0] sm:$0xff] %v4341_v4  ;;  %v4178_v26 = vmul.f32 %v7184_v38, %v4134_v17 }
 0x3a6   : > { %v4214_v32 = vadd.f32 %v7191_v21, %v4178_v26 }
 0x3a8   : > { %v4310_v42 = vadd.f32 %v5658_v13, %v4214_v32 }
 0x3aa   : > { %v4342_v58 = vmax.f32 %v4310_v42, 0.0 }
 0x3ab   : > { %v4137_v6 = vpop.f32.mrf.mxu1 }
 0x3ac   : > { %4374 = vst [vmem:[%s7201_s24 + $0xd8] sm:$0xff] %v4342_v58  ;;  %v4179_v34 = vmul.f32 %v7184_v38, %v4137_v6 }
 0x3ae   : > { %v4215_v16 = vadd.f32 %v7191_v21, %v4179_v34 }
 0x3b0   : > { %v4311_v23 = vadd.f32 %v5661_v11, %v4215_v16 }
 0x3b2   : > { %v4343_v40 = vmax.f32 %v4311_v23, 0.0 }
 0x3b3   : > { %v4139_v56 = vpop.f32.mrf.mxu1 }
 0x3b4   : > { %4375 = vst [vmem:[%s7201_s24 + $0xe0] sm:$0xff] %v4343_v40  ;;  %v4180_v3 = vmul.f32 %v7184_v38, %v4139_v56 }
 0x3b6   : > { %v4216_v14 = vadd.f32 %v7191_v21, %v4180_v3 }
 0x3b8   : > { %v4312_v20 = vadd.f32 %v5662_v52, %v4216_v14 }
 0x3ba   : > { %v4344_v54 = vmax.f32 %v4312_v20, 0.0 }
 0x3bb   : > { %v4142_v50 = vpop.f32.mrf.mxu1 }
 0x3bc   : > { %4376 = vst [vmem:[%s7201_s24 + $0xe8] sm:$0xff] %v4344_v54  ;;  %v4181_v29 = vmul.f32 %v7184_v38, %v4142_v50 }
 0x3be   : > { %v4217_v46 = vadd.f32 %v7191_v21, %v4181_v29 }
 0x3c0   : > { %v4313_v2 = vadd.f32 %v5665_v57, %v4217_v46 }
 0x3c2   : > { %v4345_v60 = vmax.f32 %v4313_v2, 0.0 }
 0x3c3   : > { %v4144_v43 = vpop.f32.mrf.mxu1 }
 0x3c4   : > { %4377 = vst [vmem:[%s7201_s24 + $0xf0] sm:$0xff] %v4345_v60  ;;  %v4182_v31 = vmul.f32 %v7184_v38, %v4144_v43 }
 0x3c6   : > { %v4218_v61 = vadd.f32 %v7191_v21, %v4182_v31 }
 0x3c8   : > { %v4314_v8 = vadd.f32 %v5666_v22, %v4218_v61 }
 0x3ca   : > { %v4346_v7 = vmax.f32 %v4314_v8, 0.0 }
 0x3cc   : > { %4378 = vst [vmem:[%s7201_s24 + $0xf8] sm:$0xff] %v4346_v7 }
 0x3cd   : > { %5797 = shalt.err (!%p5794_p5)
}
 0x3ce   : > { %s5850_s21 = smov 128   ;;  %s5851_s24 = smov 8  }
 0x3cf   : > { %5699 = dma.vmem_to_hbm [thread:$0]  (%p5937_p4), %s4393_s12, 4096, %s4395_s22, %s4380_s30, %s5850_s21, %s5850_s21, %s5851_s24  }
 0x3d0 PF: > { %p5705_p6 = scmp.ge.s32.totalorder %s5848_s10, 2  ;;  %s4409_s20 = sand.u32 1, %s5828_s27  }
 0x3d1   : > { %s4410_s26 = scalar_lea.sflag [#allocation3], %s4409_s20 }
 0x3d2   : > { %p5702_p7 = pnand %p5705_p6, %p5944_p8 }
 0x3d4   : > { %p5703_p9 = pneg %p5702_p7 }
 0x3d6   : > { %5823 = dma.done.wait (%p5703_p9), %s4410_s26, 4096  }
 0x3d7   : > { %5825 = vsyncadd (%p5703_p9), %s4410_s26, 4294963200  ;;  %s21_s10 = sadd.s32 1, %s5848_s10   ;;  %s7437_s27 = smov %s5832_s28 }
 0x3d8   : > { %p18_p10 = scmp.ge.s32.totalorder %s21_s10, 4   ;;  %s7438_s28 = smov %s5836_s29 }
 0x3d9   : > { %s7439_s29 = smov %s5950_s18  ;;  %s7440_s30 = smov %s5844_s9 }
 0x3da   : > { %s7441_s9 = smov %s7443_s13  ;;  %20 = sbr.rel (!%p18_p10) target bundleno = 4 (0x4), region = 103 }
 0x3df   :  { %4416 = vsyncpa [#allocation3], 1 }
 0x3e0   :  { %4418 = vsyncpa [#allocation3 + $0x1], 1 }

</bundles_post_ra>
